<compile_context>
chip_gen: v5e
topology: v5e:2x2
jax: 0.10.0
libtpu: 0.0.40
codegen_flags: <defaults>
</compile_context>

<pallas_src>
import functools

import jax
import jax.numpy as jnp
from jax import lax
from jax.experimental import pallas as pl
from jax.experimental.pallas import tpu as pltpu


# ---------------------------------------------------------------------------
# Fused SPPF kernel (one batch element per grid step).
# ---------------------------------------------------------------------------
def _sppf_fused_kernel(x_ref, cv1_w_ref, cv1_b_ref, q_w_ref, q_b_ref,
                       k_w_ref, k_b_ref, v_w_ref, v_b_ref, gamma_ref,
                       cv2_w_ref, cv2_b_ref, h_row_ref, w_row_ref,
                       h_col_ref, w_col_ref, o_ref, *, H, W):
    HW = H * W
    f32 = jnp.float32

    def silu(y):
        # y * sigmoid(y); exp and reciprocal both land on the EUP slot.
        return y * pl.reciprocal(1.0 + jnp.exp(-y), approx=True)

    # ---- cv1: 1x1 conv (BN scale pre-folded into the weight) + SiLU --------
    x = x_ref[0].astype(f32)                                       # (C1, HW)
    xc = jnp.dot(cv1_w_ref[...], x, preferred_element_type=f32) + cv1_b_ref[...]
    xc = silu(xc)                                                  # (C_, HW)

    # ---- stride-1 "same" pools on the flat lane-dense (C_, HW) layout ------
    h_idx = h_row_ref[...]                                         # (1, HW) i32
    w_idx = w_row_ref[...]                                         # (1, HW) i32

    def shift_w(a, d, pad):
        # y[:, h*W + w] = a[:, h*W + (w + d)]; `pad` where w+d leaves the row.
        r = pltpu.roll(a, shift=(-d) % HW, axis=1)
        valid = jnp.logical_and(w_idx + d >= 0, w_idx + d < W)
        return jnp.where(valid, r, pad)

    def shift_h(a, d, pad):
        # y[:, h*W + w] = a[:, (h + d)*W + w]; `pad` where h+d leaves the map.
        r = pltpu.roll(a, shift=(-d * W) % HW, axis=1)
        valid = jnp.logical_and(h_idx + d >= 0, h_idx + d < H)
        return jnp.where(valid, r, pad)

    def maxpool5(a):
        r = a
        for d in (-2, -1, 1, 2):
            r = jnp.maximum(r, shift_w(a, d, -jnp.inf))
        o = r
        for d in (-2, -1, 1, 2):
            o = jnp.maximum(o, shift_h(r, d, -jnp.inf))
        return o

    y1 = maxpool5(xc)
    y2 = maxpool5(y1)
    y3 = maxpool5(y2)

    # Telescoped separable average pools (count_include_pad=True -> /k^2).
    s = xc
    for d in (1, 2):
        s = s + shift_w(xc, d, 0.0) + shift_w(xc, -d, 0.0)
    sum5w = s
    for d in (3, 4):
        s = s + shift_w(xc, d, 0.0) + shift_w(xc, -d, 0.0)
    sum9w = s
    for d in (5, 6):
        s = s + shift_w(xc, d, 0.0) + shift_w(xc, -d, 0.0)
    sum13w = s

    def hsum(a, half):
        t = a
        for d in range(1, half + 1):
            t = t + shift_h(a, d, 0.0) + shift_h(a, -d, 0.0)
        return t

    a3 = hsum(sum5w, 2) * (1.0 / 25.0)
    a2 = hsum(sum9w, 4) * (1.0 / 81.0)
    a1 = hsum(sum13w, 6) * (1.0 / 169.0)

    cat = jnp.concatenate([xc, y1, y2, y3, a1, a2, a3], axis=0)    # (7C_, HW)

    # ---- criss-cross attention as one dense masked (HW, HW) attention ------
    q = jnp.dot(q_w_ref[...], cat, preferred_element_type=f32) + q_b_ref[...]
    k = jnp.dot(k_w_ref[...], cat, preferred_element_type=f32) + k_b_ref[...]
    v = jnp.dot(v_w_ref[...], cat, preferred_element_type=f32) + v_b_ref[...]

    e = jnp.dot(q.T, k, preferred_element_type=f32)                # (HW, HW)
    same_h = h_col_ref[...] == h_row_ref[...]                      # (HW, HW)
    same_w = w_col_ref[...] == w_row_ref[...]
    e = jnp.where(jnp.logical_or(same_h, same_w), e, -jnp.inf)

    m = jnp.max(e, axis=-1, keepdims=True)                         # (HW, 1)
    p = jnp.exp(e - m)
    att = p * pl.reciprocal(jnp.sum(p, axis=-1, keepdims=True), approx=True)

    # out[c, p] = sum_{p'} v[c, p'] * att[p, p']  (native trans-b matmul).
    out = lax.dot_general(v, att, (((1,), (1,)), ((), ())),
                          preferred_element_type=f32)              # (7C_, HW)
    attended = gamma_ref[...] * out + cat

    # ---- cv2: 1x1 conv (BN folded) + SiLU, single lane-dense store ---------
    y = jnp.dot(cv2_w_ref[...], attended, preferred_element_type=f32) + cv2_b_ref[...]
    o_ref[0] = silu(y).astype(o_ref.dtype)


# ---------------------------------------------------------------------------
# Host wrapper: parameter prep (BN fold, Cq padding, index LUTs) + pallas_call.
# ---------------------------------------------------------------------------
def sppf_forward(x, params):
    B, C1, H, W = x.shape
    HW = H * W

    # Fold BN scale into the 1x1 conv weights (free host-side precompute).
    cv1_w = (params['cv1_w'] * params['cv1_scale']).astype(jnp.float32)
    cv1_b = params['cv1_shift'].astype(jnp.float32)
    cv2_w = (params['cv2_w'] * params['cv2_scale']).astype(jnp.float32)
    cv2_b = params['cv2_shift'].astype(jnp.float32)

    # Zero-pad q/k channels up to a sublane multiple of 8 (numerically free).
    q_w, q_b = params['q_w'], params['q_b']
    k_w, k_b = params['k_w'], params['k_b']
    v_w, v_b = params['v_w'], params['v_b']
    cq = q_w.shape[0]
    cq_pad = max(8, -(-cq // 8) * 8)
    if cq_pad != cq:
        pad = ((0, cq_pad - cq), (0, 0))
        q_w, q_b = jnp.pad(q_w, pad), jnp.pad(q_b, pad)
        k_w, k_b = jnp.pad(k_w, pad), jnp.pad(k_b, pad)
    gamma = jnp.reshape(jnp.asarray(params['gamma'], jnp.float32), (1, 1))

    C_ = cv1_w.shape[0]
    Ccat = 7 * C_
    C2 = cv2_w.shape[0]

    # Flat-position -> (h, w) lookup vectors (avoids in-kernel int div/mod).
    pos = jnp.arange(HW, dtype=jnp.int32)
    h_row = (pos // W).reshape(1, HW)
    w_row = (pos % W).reshape(1, HW)
    h_col = h_row.reshape(HW, 1)
    w_col = w_row.reshape(HW, 1)

    kernel = functools.partial(_sppf_fused_kernel, H=H, W=W)
    out_flat = pl.pallas_call(
        kernel,
        out_shape=jax.ShapeDtypeStruct((B, C2, HW), x.dtype),
        grid=(B,),
        in_specs=[
            pl.BlockSpec((1, C1, HW), lambda b: (b, 0, 0)),      # x
            pl.BlockSpec((C_, C1), lambda b: (0, 0)),            # cv1_w
            pl.BlockSpec((C_, 1), lambda b: (0, 0)),             # cv1_b
            pl.BlockSpec((cq_pad, Ccat), lambda b: (0, 0)),      # q_w
            pl.BlockSpec((cq_pad, 1), lambda b: (0, 0)),         # q_b
            pl.BlockSpec((cq_pad, Ccat), lambda b: (0, 0)),      # k_w
            pl.BlockSpec((cq_pad, 1), lambda b: (0, 0)),         # k_b
            pl.BlockSpec((Ccat, Ccat), lambda b: (0, 0)),        # v_w
            pl.BlockSpec((Ccat, 1), lambda b: (0, 0)),           # v_b
            pl.BlockSpec((1, 1), lambda b: (0, 0)),              # gamma
            pl.BlockSpec((C2, Ccat), lambda b: (0, 0)),          # cv2_w
            pl.BlockSpec((C2, 1), lambda b: (0, 0)),             # cv2_b
            pl.BlockSpec((1, HW), lambda b: (0, 0)),             # h_row
            pl.BlockSpec((1, HW), lambda b: (0, 0)),             # w_row
            pl.BlockSpec((HW, 1), lambda b: (0, 0)),             # h_col
            pl.BlockSpec((HW, 1), lambda b: (0, 0)),             # w_col
        ],
        out_specs=pl.BlockSpec((1, C2, HW), lambda b: (b, 0, 0)),
        compiler_params=pltpu.CompilerParams(
            dimension_semantics=("parallel",)),
    )(x.reshape(B, C1, HW), cv1_w, cv1_b, q_w, q_b, k_w, k_b, v_w, v_b,
      gamma, cv2_w, cv2_b, h_row, w_row, h_col, w_col)
    return out_flat.reshape(B, C2, H, W)


# ---------------------------------------------------------------------------
# Pure-JAX reference (mirrors the PyTorch module semantics).
# ---------------------------------------------------------------------------
def _silu(x):
    return x * (1.0 / (1.0 + jnp.exp(-x)))


def _ref_conv_bn_act(x, w, scale, shift):
    y = jnp.einsum('oc,bchw->bohw', w, x)
    return _silu(y * scale[:, 0][None, :, None, None]
                 + shift[:, 0][None, :, None, None])


def _ref_maxpool(x, k):
    p = k // 2
    return lax.reduce_window(x, -jnp.inf, lax.max, (1, 1, k, k), (1, 1, 1, 1),
                             [(0, 0), (0, 0), (p, p), (p, p)])


def _ref_avgpool(x, k):
    p = k // 2
    s = lax.reduce_window(x, 0.0, lax.add, (1, 1, k, k), (1, 1, 1, 1),
                          [(0, 0), (0, 0), (p, p), (p, p)])
    return s / float(k * k)


def _ref_criss_cross(x, wq, bq, wk, bk, wv, bv, gamma):
    B, C, H, W = x.shape
    q = jnp.einsum('oc,bchw->bohw', wq, x) + bq[:, 0][None, :, None, None]
    k = jnp.einsum('oc,bchw->bohw', wk, x) + bk[:, 0][None, :, None, None]
    v = jnp.einsum('oc,bchw->bohw', wv, x) + bv[:, 0][None, :, None, None]
    energy_h = jnp.einsum('bchw,bcgw->bhwg', q, k)
    energy_h = jnp.where(jnp.eye(H, dtype=bool)[None, :, None, :], -jnp.inf, energy_h)
    energy_w = jnp.einsum('bchw,bchv->bhwv', q, k)
    att = jax.nn.softmax(jnp.concatenate([energy_h, energy_w], axis=-1), axis=-1)
    out_h = jnp.einsum('bcgw,bhwg->bchw', v, att[..., :H])
    out_w = jnp.einsum('bchv,bhwv->bchw', v, att[..., H:])
    return gamma * (out_h + out_w) + x


def sppf_reference(x, params):
    xc = _ref_conv_bn_act(x, params['cv1_w'], params['cv1_scale'], params['cv1_shift'])
    y1 = _ref_maxpool(xc, 5)
    y2 = _ref_maxpool(y1, 5)
    y3 = _ref_maxpool(y2, 5)
    a1 = _ref_avgpool(xc, 13)
    a2 = _ref_avgpool(xc, 9)
    a3 = _ref_avgpool(xc, 5)
    cat = jnp.concatenate([xc, y1, y2, y3, a1, a2, a3], axis=1)
    att = _ref_criss_cross(cat, params['q_w'], params['q_b'], params['k_w'],
                           params['k_b'], params['v_w'], params['v_b'],
                           params['gamma'])
    return _ref_conv_bn_act(att, params['cv2_w'], params['cv2_scale'], params['cv2_shift'])


if __name__ == "__main__":
    B, c1, c2, H, W = 2, 16, 16, 16, 16
    c_ = c1 // 2            # 8
    ccat = 7 * c_           # 56
    cq = ccat // 8          # 7

    key = jax.random.PRNGKey(0)
    k_x, k_cv1, k_cv2, k_q, k_k, k_v = jax.random.split(key, 6)

    def conv_bn_params(key, cin, cout):
        k1, k2, k3, k4, k5 = jax.random.split(key, 5)
        w = jax.random.normal(k1, (cout, cin), jnp.float32) * (cin ** -0.5)
        bn_w = 1.0 + 0.1 * jax.random.normal(k2, (cout,), jnp.float32)
        bn_b = 0.1 * jax.random.normal(k3, (cout,), jnp.float32)
        bn_mean = 0.1 * jax.random.normal(k4, (cout,), jnp.float32)
        bn_var = jax.random.uniform(k5, (cout,), jnp.float32, minval=0.5, maxval=1.5)
        scale = bn_w / jnp.sqrt(bn_var + 1e-5)
        shift = bn_b - bn_mean * scale
        return w, scale.reshape(cout, 1), shift.reshape(cout, 1)

    def conv_bias_params(key, cin, cout):
        k1, k2 = jax.random.split(key)
        w = 0.1 * jax.random.normal(k1, (cout, cin), jnp.float32)
        b = 0.1 * jax.random.normal(k2, (cout, 1), jnp.float32)
        return w, b

    x = jax.random.normal(k_x, (B, c1, H, W), jnp.float32)

    cv1_w, cv1_scale, cv1_shift = conv_bn_params(k_cv1, c1, c_)
    cv2_w, cv2_scale, cv2_shift = conv_bn_params(k_cv2, ccat, c2)
    q_w, q_b = conv_bias_params(k_q, ccat, cq)
    key_w, key_b = conv_bias_params(k_k, ccat, cq)
    v_w, v_b = conv_bias_params(k_v, ccat, ccat)
    # gamma is an nn.Parameter (init 0 in PyTorch); nonzero so the attention
    # path is actually exercised by the check.
    gamma = jnp.float32(0.3)

    params = dict(cv1_w=cv1_w, cv1_scale=cv1_scale, cv1_shift=cv1_shift,
                  cv2_w=cv2_w, cv2_scale=cv2_scale, cv2_shift=cv2_shift,
                  q_w=q_w, q_b=q_b, k_w=key_w, k_b=key_b, v_w=v_w, v_b=v_b,
                  gamma=gamma)

    out = jax.jit(sppf_forward)(x, params)
    out = jax.block_until_ready(out)

    ref = sppf_reference(x, params)
    assert out.shape == (B, c2, H, W), out.shape
    max_err = float(jnp.max(jnp.abs(out - ref)))
    assert jnp.allclose(out, ref, atol=2e-2, rtol=2e-2), f"max_err={max_err}"
    print("KERNEL_OK")
</pallas_src>

<mosaic_0001>
module attributes {stable_mosaic.version = 11 : i64} {
  func.func @_sppf_fused_kernel(%arg0: i32, %arg1: memref<1x16x256xf32, #tpu.memory_space<vmem>>, %arg2: memref<8x16xf32, #tpu.memory_space<vmem>>, %arg3: memref<8x1xf32, #tpu.memory_space<vmem>>, %arg4: memref<8x56xf32, #tpu.memory_space<vmem>>, %arg5: memref<8x1xf32, #tpu.memory_space<vmem>>, %arg6: memref<8x56xf32, #tpu.memory_space<vmem>>, %arg7: memref<8x1xf32, #tpu.memory_space<vmem>>, %arg8: memref<56x56xf32, #tpu.memory_space<vmem>>, %arg9: memref<56x1xf32, #tpu.memory_space<vmem>>, %arg10: memref<1x1xf32, #tpu.memory_space<vmem>>, %arg11: memref<16x56xf32, #tpu.memory_space<vmem>>, %arg12: memref<16x1xf32, #tpu.memory_space<vmem>>, %arg13: memref<1x256xi32, #tpu.memory_space<vmem>>, %arg14: memref<1x256xi32, #tpu.memory_space<vmem>>, %arg15: memref<256x1xi32, #tpu.memory_space<vmem>>, %arg16: memref<256x1xi32, #tpu.memory_space<vmem>>, %arg17: memref<1x16x256xf32, #tpu.memory_space<vmem>>) attributes {dimension_semantics = [#tpu.dimension_semantics<parallel>], iteration_bounds = array<i64: 2>, scalar_prefetch = 0 : i64, scratch_operands = 0 : i64, tpu.core_type = #tpu.core_type<tc>, window_params = [{transform_indices = @transform_0, window_bounds = array<i64: 1, 16, 256>}, {pipeline_mode = #tpu.pipeline_mode<synchronous>, transform_indices = @transform_1, window_bounds = array<i64: 8, 16>}, {pipeline_mode = #tpu.pipeline_mode<synchronous>, transform_indices = @transform_2, window_bounds = array<i64: 8, 1>}, {pipeline_mode = #tpu.pipeline_mode<synchronous>, transform_indices = @transform_3, window_bounds = array<i64: 8, 56>}, {pipeline_mode = #tpu.pipeline_mode<synchronous>, transform_indices = @transform_4, window_bounds = array<i64: 8, 1>}, {pipeline_mode = #tpu.pipeline_mode<synchronous>, transform_indices = @transform_5, window_bounds = array<i64: 8, 56>}, {pipeline_mode = #tpu.pipeline_mode<synchronous>, transform_indices = @transform_6, window_bounds = array<i64: 8, 1>}, {pipeline_mode = #tpu.pipeline_mode<synchronous>, transform_indices = @transform_7, window_bounds = array<i64: 56, 56>}, {pipeline_mode = #tpu.pipeline_mode<synchronous>, transform_indices = @transform_8, window_bounds = array<i64: 56, 1>}, {pipeline_mode = #tpu.pipeline_mode<synchronous>, transform_indices = @transform_9, window_bounds = array<i64: 1, 1>}, {pipeline_mode = #tpu.pipeline_mode<synchronous>, transform_indices = @transform_10, window_bounds = array<i64: 16, 56>}, {pipeline_mode = #tpu.pipeline_mode<synchronous>, transform_indices = @transform_11, window_bounds = array<i64: 16, 1>}, {pipeline_mode = #tpu.pipeline_mode<synchronous>, transform_indices = @transform_12, window_bounds = array<i64: 1, 256>}, {pipeline_mode = #tpu.pipeline_mode<synchronous>, transform_indices = @transform_13, window_bounds = array<i64: 1, 256>}, {pipeline_mode = #tpu.pipeline_mode<synchronous>, transform_indices = @transform_14, window_bounds = array<i64: 256, 1>}, {pipeline_mode = #tpu.pipeline_mode<synchronous>, transform_indices = @transform_15, window_bounds = array<i64: 256, 1>}, {transform_indices = @transform_16, window_bounds = array<i64: 1, 16, 256>}]} {
    %c0 = arith.constant 0 : index
    %c0_0 = arith.constant 0 : index
    %c0_1 = arith.constant 0 : index
    %0 = vector.load %arg1[%c0, %c0_0, %c0_1] : memref<1x16x256xf32, #tpu.memory_space<vmem>>, vector<1x16x256xf32>
    %1 = vector.shape_cast %0 : vector<1x16x256xf32> to vector<16x256xf32>
    %c0_2 = arith.constant 0 : index
    %c0_3 = arith.constant 0 : index
    %2 = vector.load %arg2[%c0_2, %c0_3] : memref<8x16xf32, #tpu.memory_space<vmem>>, vector<8x16xf32>
    %cst = arith.constant dense<0.000000e+00> : vector<8x256xf32>
    %3 = tpu.matmul %2, %1, %cst {dimension_numbers = #tpu.dot_dimension_numbers<[1], [0], [0], [1], [0, 0, 1, 1], [], []>} : vector<8x16xf32>, vector<16x256xf32>, vector<8x256xf32> -> vector<8x256xf32>
    %c0_4 = arith.constant 0 : index
    %c0_5 = arith.constant 0 : index
    %4 = vector.load %arg3[%c0_4, %c0_5] : memref<8x1xf32, #tpu.memory_space<vmem>>, vector<8x1xf32>
    %5 = vector.broadcast %4 : vector<8x1xf32> to vector<8x256xf32>
    %6 = arith.addf %3, %5 : vector<8x256xf32>
    %cst_6 = arith.constant 0.000000e+00 : f32
    %7 = vector.broadcast %cst_6 : f32 to vector<8x256xf32>
    %8 = arith.subf %7, %6 : vector<8x256xf32>
    %9 = math.exp %8 : vector<8x256xf32>
    %cst_7 = arith.constant 1.000000e+00 : f32
    %10 = vector.broadcast %cst_7 : f32 to vector<8x256xf32>
    %11 = arith.addf %10, %9 : vector<8x256xf32>
    %12 = tpu.reciprocal %11 {approx = true} : vector<8x256xf32> -> vector<8x256xf32>
    %13 = arith.mulf %6, %12 : vector<8x256xf32>
    %c0_8 = arith.constant 0 : index
    %c0_9 = arith.constant 0 : index
    %14 = vector.load %arg13[%c0_8, %c0_9] : memref<1x256xi32, #tpu.memory_space<vmem>>, vector<1x256xi32>
    %c0_10 = arith.constant 0 : index
    %c0_11 = arith.constant 0 : index
    %15 = vector.load %arg14[%c0_10, %c0_11] : memref<1x256xi32, #tpu.memory_space<vmem>>, vector<1x256xi32>
    %c2_i32 = arith.constant 2 : i32
    %16 = tpu.dynamic_rotate %13 by %c2_i32 dim 1 : vector<8x256xf32>, i32 -> vector<8x256xf32>
    %c-2_i32 = arith.constant -2 : i32
    %17 = vector.broadcast %c-2_i32 : i32 to vector<1x256xi32>
    %18 = arith.addi %15, %17 : vector<1x256xi32>
    %c0_i32 = arith.constant 0 : i32
    %19 = vector.broadcast %c0_i32 : i32 to vector<1x256xi32>
    %20 = arith.cmpi sge, %18, %19 : vector<1x256xi32>
    %c-2_i32_12 = arith.constant -2 : i32
    %21 = vector.broadcast %c-2_i32_12 : i32 to vector<1x256xi32>
    %22 = arith.addi %15, %21 : vector<1x256xi32>
    %c16_i32 = arith.constant 16 : i32
    %23 = vector.broadcast %c16_i32 : i32 to vector<1x256xi32>
    %24 = arith.cmpi slt, %22, %23 : vector<1x256xi32>
    %25 = arith.andi %20, %24 : vector<1x256xi1>
    %cst_13 = arith.constant 0xFF800000 : f32
    %26 = vector.shape_cast %25 : vector<1x256xi1> to vector<1x256xi1>
    %27 = vector.broadcast %26 : vector<1x256xi1> to vector<8x256xi1>
    %28 = vector.broadcast %cst_13 : f32 to vector<8x256xf32>
    %29 = arith.select %27, %16, %28 : vector<8x256xi1>, vector<8x256xf32>
    %30 = arith.maximumf %13, %29 : vector<8x256xf32>
    %c1_i32 = arith.constant 1 : i32
    %31 = tpu.dynamic_rotate %13 by %c1_i32 dim 1 : vector<8x256xf32>, i32 -> vector<8x256xf32>
    %c-1_i32 = arith.constant -1 : i32
    %32 = vector.broadcast %c-1_i32 : i32 to vector<1x256xi32>
    %33 = arith.addi %15, %32 : vector<1x256xi32>
    %c0_i32_14 = arith.constant 0 : i32
    %34 = vector.broadcast %c0_i32_14 : i32 to vector<1x256xi32>
    %35 = arith.cmpi sge, %33, %34 : vector<1x256xi32>
    %c-1_i32_15 = arith.constant -1 : i32
    %36 = vector.broadcast %c-1_i32_15 : i32 to vector<1x256xi32>
    %37 = arith.addi %15, %36 : vector<1x256xi32>
    %c16_i32_16 = arith.constant 16 : i32
    %38 = vector.broadcast %c16_i32_16 : i32 to vector<1x256xi32>
    %39 = arith.cmpi slt, %37, %38 : vector<1x256xi32>
    %40 = arith.andi %35, %39 : vector<1x256xi1>
    %cst_17 = arith.constant 0xFF800000 : f32
    %41 = vector.shape_cast %40 : vector<1x256xi1> to vector<1x256xi1>
    %42 = vector.broadcast %41 : vector<1x256xi1> to vector<8x256xi1>
    %43 = vector.broadcast %cst_17 : f32 to vector<8x256xf32>
    %44 = arith.select %42, %31, %43 : vector<8x256xi1>, vector<8x256xf32>
    %45 = arith.maximumf %30, %44 : vector<8x256xf32>
    %c255_i32 = arith.constant 255 : i32
    %46 = tpu.dynamic_rotate %13 by %c255_i32 dim 1 : vector<8x256xf32>, i32 -> vector<8x256xf32>
    %c1_i32_18 = arith.constant 1 : i32
    %47 = vector.broadcast %c1_i32_18 : i32 to vector<1x256xi32>
    %48 = arith.addi %15, %47 : vector<1x256xi32>
    %c0_i32_19 = arith.constant 0 : i32
    %49 = vector.broadcast %c0_i32_19 : i32 to vector<1x256xi32>
    %50 = arith.cmpi sge, %48, %49 : vector<1x256xi32>
    %c1_i32_20 = arith.constant 1 : i32
    %51 = vector.broadcast %c1_i32_20 : i32 to vector<1x256xi32>
    %52 = arith.addi %15, %51 : vector<1x256xi32>
    %c16_i32_21 = arith.constant 16 : i32
    %53 = vector.broadcast %c16_i32_21 : i32 to vector<1x256xi32>
    %54 = arith.cmpi slt, %52, %53 : vector<1x256xi32>
    %55 = arith.andi %50, %54 : vector<1x256xi1>
    %cst_22 = arith.constant 0xFF800000 : f32
    %56 = vector.shape_cast %55 : vector<1x256xi1> to vector<1x256xi1>
    %57 = vector.broadcast %56 : vector<1x256xi1> to vector<8x256xi1>
    %58 = vector.broadcast %cst_22 : f32 to vector<8x256xf32>
    %59 = arith.select %57, %46, %58 : vector<8x256xi1>, vector<8x256xf32>
    %60 = arith.maximumf %45, %59 : vector<8x256xf32>
    %c254_i32 = arith.constant 254 : i32
    %61 = tpu.dynamic_rotate %13 by %c254_i32 dim 1 : vector<8x256xf32>, i32 -> vector<8x256xf32>
    %c2_i32_23 = arith.constant 2 : i32
    %62 = vector.broadcast %c2_i32_23 : i32 to vector<1x256xi32>
    %63 = arith.addi %15, %62 : vector<1x256xi32>
    %c0_i32_24 = arith.constant 0 : i32
    %64 = vector.broadcast %c0_i32_24 : i32 to vector<1x256xi32>
    %65 = arith.cmpi sge, %63, %64 : vector<1x256xi32>
    %c2_i32_25 = arith.constant 2 : i32
    %66 = vector.broadcast %c2_i32_25 : i32 to vector<1x256xi32>
    %67 = arith.addi %15, %66 : vector<1x256xi32>
    %c16_i32_26 = arith.constant 16 : i32
    %68 = vector.broadcast %c16_i32_26 : i32 to vector<1x256xi32>
    %69 = arith.cmpi slt, %67, %68 : vector<1x256xi32>
    %70 = arith.andi %65, %69 : vector<1x256xi1>
    %cst_27 = arith.constant 0xFF800000 : f32
    %71 = vector.shape_cast %70 : vector<1x256xi1> to vector<1x256xi1>
    %72 = vector.broadcast %71 : vector<1x256xi1> to vector<8x256xi1>
    %73 = vector.broadcast %cst_27 : f32 to vector<8x256xf32>
    %74 = arith.select %72, %61, %73 : vector<8x256xi1>, vector<8x256xf32>
    %75 = arith.maximumf %60, %74 : vector<8x256xf32>
    %c32_i32 = arith.constant 32 : i32
    %76 = tpu.dynamic_rotate %75 by %c32_i32 dim 1 : vector<8x256xf32>, i32 -> vector<8x256xf32>
    %c-2_i32_28 = arith.constant -2 : i32
    %77 = vector.broadcast %c-2_i32_28 : i32 to vector<1x256xi32>
    %78 = arith.addi %14, %77 : vector<1x256xi32>
    %c0_i32_29 = arith.constant 0 : i32
    %79 = vector.broadcast %c0_i32_29 : i32 to vector<1x256xi32>
    %80 = arith.cmpi sge, %78, %79 : vector<1x256xi32>
    %c-2_i32_30 = arith.constant -2 : i32
    %81 = vector.broadcast %c-2_i32_30 : i32 to vector<1x256xi32>
    %82 = arith.addi %14, %81 : vector<1x256xi32>
    %c16_i32_31 = arith.constant 16 : i32
    %83 = vector.broadcast %c16_i32_31 : i32 to vector<1x256xi32>
    %84 = arith.cmpi slt, %82, %83 : vector<1x256xi32>
    %85 = arith.andi %80, %84 : vector<1x256xi1>
    %cst_32 = arith.constant 0xFF800000 : f32
    %86 = vector.shape_cast %85 : vector<1x256xi1> to vector<1x256xi1>
    %87 = vector.broadcast %86 : vector<1x256xi1> to vector<8x256xi1>
    %88 = vector.broadcast %cst_32 : f32 to vector<8x256xf32>
    %89 = arith.select %87, %76, %88 : vector<8x256xi1>, vector<8x256xf32>
    %90 = arith.maximumf %75, %89 : vector<8x256xf32>
    %c16_i32_33 = arith.constant 16 : i32
    %91 = tpu.dynamic_rotate %75 by %c16_i32_33 dim 1 : vector<8x256xf32>, i32 -> vector<8x256xf32>
    %c-1_i32_34 = arith.constant -1 : i32
    %92 = vector.broadcast %c-1_i32_34 : i32 to vector<1x256xi32>
    %93 = arith.addi %14, %92 : vector<1x256xi32>
    %c0_i32_35 = arith.constant 0 : i32
    %94 = vector.broadcast %c0_i32_35 : i32 to vector<1x256xi32>
    %95 = arith.cmpi sge, %93, %94 : vector<1x256xi32>
    %c-1_i32_36 = arith.constant -1 : i32
    %96 = vector.broadcast %c-1_i32_36 : i32 to vector<1x256xi32>
    %97 = arith.addi %14, %96 : vector<1x256xi32>
    %c16_i32_37 = arith.constant 16 : i32
    %98 = vector.broadcast %c16_i32_37 : i32 to vector<1x256xi32>
    %99 = arith.cmpi slt, %97, %98 : vector<1x256xi32>
    %100 = arith.andi %95, %99 : vector<1x256xi1>
    %cst_38 = arith.constant 0xFF800000 : f32
    %101 = vector.shape_cast %100 : vector<1x256xi1> to vector<1x256xi1>
    %102 = vector.broadcast %101 : vector<1x256xi1> to vector<8x256xi1>
    %103 = vector.broadcast %cst_38 : f32 to vector<8x256xf32>
    %104 = arith.select %102, %91, %103 : vector<8x256xi1>, vector<8x256xf32>
    %105 = arith.maximumf %90, %104 : vector<8x256xf32>
    %c240_i32 = arith.constant 240 : i32
    %106 = tpu.dynamic_rotate %75 by %c240_i32 dim 1 : vector<8x256xf32>, i32 -> vector<8x256xf32>
    %c1_i32_39 = arith.constant 1 : i32
    %107 = vector.broadcast %c1_i32_39 : i32 to vector<1x256xi32>
    %108 = arith.addi %14, %107 : vector<1x256xi32>
    %c0_i32_40 = arith.constant 0 : i32
    %109 = vector.broadcast %c0_i32_40 : i32 to vector<1x256xi32>
    %110 = arith.cmpi sge, %108, %109 : vector<1x256xi32>
    %c1_i32_41 = arith.constant 1 : i32
    %111 = vector.broadcast %c1_i32_41 : i32 to vector<1x256xi32>
    %112 = arith.addi %14, %111 : vector<1x256xi32>
    %c16_i32_42 = arith.constant 16 : i32
    %113 = vector.broadcast %c16_i32_42 : i32 to vector<1x256xi32>
    %114 = arith.cmpi slt, %112, %113 : vector<1x256xi32>
    %115 = arith.andi %110, %114 : vector<1x256xi1>
    %cst_43 = arith.constant 0xFF800000 : f32
    %116 = vector.shape_cast %115 : vector<1x256xi1> to vector<1x256xi1>
    %117 = vector.broadcast %116 : vector<1x256xi1> to vector<8x256xi1>
    %118 = vector.broadcast %cst_43 : f32 to vector<8x256xf32>
    %119 = arith.select %117, %106, %118 : vector<8x256xi1>, vector<8x256xf32>
    %120 = arith.maximumf %105, %119 : vector<8x256xf32>
    %c224_i32 = arith.constant 224 : i32
    %121 = tpu.dynamic_rotate %75 by %c224_i32 dim 1 : vector<8x256xf32>, i32 -> vector<8x256xf32>
    %c2_i32_44 = arith.constant 2 : i32
    %122 = vector.broadcast %c2_i32_44 : i32 to vector<1x256xi32>
    %123 = arith.addi %14, %122 : vector<1x256xi32>
    %c0_i32_45 = arith.constant 0 : i32
    %124 = vector.broadcast %c0_i32_45 : i32 to vector<1x256xi32>
    %125 = arith.cmpi sge, %123, %124 : vector<1x256xi32>
    %c2_i32_46 = arith.constant 2 : i32
    %126 = vector.broadcast %c2_i32_46 : i32 to vector<1x256xi32>
    %127 = arith.addi %14, %126 : vector<1x256xi32>
    %c16_i32_47 = arith.constant 16 : i32
    %128 = vector.broadcast %c16_i32_47 : i32 to vector<1x256xi32>
    %129 = arith.cmpi slt, %127, %128 : vector<1x256xi32>
    %130 = arith.andi %125, %129 : vector<1x256xi1>
    %cst_48 = arith.constant 0xFF800000 : f32
    %131 = vector.shape_cast %130 : vector<1x256xi1> to vector<1x256xi1>
    %132 = vector.broadcast %131 : vector<1x256xi1> to vector<8x256xi1>
    %133 = vector.broadcast %cst_48 : f32 to vector<8x256xf32>
    %134 = arith.select %132, %121, %133 : vector<8x256xi1>, vector<8x256xf32>
    %135 = arith.maximumf %120, %134 : vector<8x256xf32>
    %c2_i32_49 = arith.constant 2 : i32
    %136 = tpu.dynamic_rotate %135 by %c2_i32_49 dim 1 : vector<8x256xf32>, i32 -> vector<8x256xf32>
    %c-2_i32_50 = arith.constant -2 : i32
    %137 = vector.broadcast %c-2_i32_50 : i32 to vector<1x256xi32>
    %138 = arith.addi %15, %137 : vector<1x256xi32>
    %c0_i32_51 = arith.constant 0 : i32
    %139 = vector.broadcast %c0_i32_51 : i32 to vector<1x256xi32>
    %140 = arith.cmpi sge, %138, %139 : vector<1x256xi32>
    %c-2_i32_52 = arith.constant -2 : i32
    %141 = vector.broadcast %c-2_i32_52 : i32 to vector<1x256xi32>
    %142 = arith.addi %15, %141 : vector<1x256xi32>
    %c16_i32_53 = arith.constant 16 : i32
    %143 = vector.broadcast %c16_i32_53 : i32 to vector<1x256xi32>
    %144 = arith.cmpi slt, %142, %143 : vector<1x256xi32>
    %145 = arith.andi %140, %144 : vector<1x256xi1>
    %cst_54 = arith.constant 0xFF800000 : f32
    %146 = vector.shape_cast %145 : vector<1x256xi1> to vector<1x256xi1>
    %147 = vector.broadcast %146 : vector<1x256xi1> to vector<8x256xi1>
    %148 = vector.broadcast %cst_54 : f32 to vector<8x256xf32>
    %149 = arith.select %147, %136, %148 : vector<8x256xi1>, vector<8x256xf32>
    %150 = arith.maximumf %135, %149 : vector<8x256xf32>
    %c1_i32_55 = arith.constant 1 : i32
    %151 = tpu.dynamic_rotate %135 by %c1_i32_55 dim 1 : vector<8x256xf32>, i32 -> vector<8x256xf32>
    %c-1_i32_56 = arith.constant -1 : i32
    %152 = vector.broadcast %c-1_i32_56 : i32 to vector<1x256xi32>
    %153 = arith.addi %15, %152 : vector<1x256xi32>
    %c0_i32_57 = arith.constant 0 : i32
    %154 = vector.broadcast %c0_i32_57 : i32 to vector<1x256xi32>
    %155 = arith.cmpi sge, %153, %154 : vector<1x256xi32>
    %c-1_i32_58 = arith.constant -1 : i32
    %156 = vector.broadcast %c-1_i32_58 : i32 to vector<1x256xi32>
    %157 = arith.addi %15, %156 : vector<1x256xi32>
    %c16_i32_59 = arith.constant 16 : i32
    %158 = vector.broadcast %c16_i32_59 : i32 to vector<1x256xi32>
    %159 = arith.cmpi slt, %157, %158 : vector<1x256xi32>
    %160 = arith.andi %155, %159 : vector<1x256xi1>
    %cst_60 = arith.constant 0xFF800000 : f32
    %161 = vector.shape_cast %160 : vector<1x256xi1> to vector<1x256xi1>
    %162 = vector.broadcast %161 : vector<1x256xi1> to vector<8x256xi1>
    %163 = vector.broadcast %cst_60 : f32 to vector<8x256xf32>
    %164 = arith.select %162, %151, %163 : vector<8x256xi1>, vector<8x256xf32>
    %165 = arith.maximumf %150, %164 : vector<8x256xf32>
    %c255_i32_61 = arith.constant 255 : i32
    %166 = tpu.dynamic_rotate %135 by %c255_i32_61 dim 1 : vector<8x256xf32>, i32 -> vector<8x256xf32>
    %c1_i32_62 = arith.constant 1 : i32
    %167 = vector.broadcast %c1_i32_62 : i32 to vector<1x256xi32>
    %168 = arith.addi %15, %167 : vector<1x256xi32>
    %c0_i32_63 = arith.constant 0 : i32
    %169 = vector.broadcast %c0_i32_63 : i32 to vector<1x256xi32>
    %170 = arith.cmpi sge, %168, %169 : vector<1x256xi32>
    %c1_i32_64 = arith.constant 1 : i32
    %171 = vector.broadcast %c1_i32_64 : i32 to vector<1x256xi32>
    %172 = arith.addi %15, %171 : vector<1x256xi32>
    %c16_i32_65 = arith.constant 16 : i32
    %173 = vector.broadcast %c16_i32_65 : i32 to vector<1x256xi32>
    %174 = arith.cmpi slt, %172, %173 : vector<1x256xi32>
    %175 = arith.andi %170, %174 : vector<1x256xi1>
    %cst_66 = arith.constant 0xFF800000 : f32
    %176 = vector.shape_cast %175 : vector<1x256xi1> to vector<1x256xi1>
    %177 = vector.broadcast %176 : vector<1x256xi1> to vector<8x256xi1>
    %178 = vector.broadcast %cst_66 : f32 to vector<8x256xf32>
    %179 = arith.select %177, %166, %178 : vector<8x256xi1>, vector<8x256xf32>
    %180 = arith.maximumf %165, %179 : vector<8x256xf32>
    %c254_i32_67 = arith.constant 254 : i32
    %181 = tpu.dynamic_rotate %135 by %c254_i32_67 dim 1 : vector<8x256xf32>, i32 -> vector<8x256xf32>
    %c2_i32_68 = arith.constant 2 : i32
    %182 = vector.broadcast %c2_i32_68 : i32 to vector<1x256xi32>
    %183 = arith.addi %15, %182 : vector<1x256xi32>
    %c0_i32_69 = arith.constant 0 : i32
    %184 = vector.broadcast %c0_i32_69 : i32 to vector<1x256xi32>
    %185 = arith.cmpi sge, %183, %184 : vector<1x256xi32>
    %c2_i32_70 = arith.constant 2 : i32
    %186 = vector.broadcast %c2_i32_70 : i32 to vector<1x256xi32>
    %187 = arith.addi %15, %186 : vector<1x256xi32>
    %c16_i32_71 = arith.constant 16 : i32
    %188 = vector.broadcast %c16_i32_71 : i32 to vector<1x256xi32>
    %189 = arith.cmpi slt, %187, %188 : vector<1x256xi32>
    %190 = arith.andi %185, %189 : vector<1x256xi1>
    %cst_72 = arith.constant 0xFF800000 : f32
    %191 = vector.shape_cast %190 : vector<1x256xi1> to vector<1x256xi1>
    %192 = vector.broadcast %191 : vector<1x256xi1> to vector<8x256xi1>
    %193 = vector.broadcast %cst_72 : f32 to vector<8x256xf32>
    %194 = arith.select %192, %181, %193 : vector<8x256xi1>, vector<8x256xf32>
    %195 = arith.maximumf %180, %194 : vector<8x256xf32>
    %c32_i32_73 = arith.constant 32 : i32
    %196 = tpu.dynamic_rotate %195 by %c32_i32_73 dim 1 : vector<8x256xf32>, i32 -> vector<8x256xf32>
    %c-2_i32_74 = arith.constant -2 : i32
    %197 = vector.broadcast %c-2_i32_74 : i32 to vector<1x256xi32>
    %198 = arith.addi %14, %197 : vector<1x256xi32>
    %c0_i32_75 = arith.constant 0 : i32
    %199 = vector.broadcast %c0_i32_75 : i32 to vector<1x256xi32>
    %200 = arith.cmpi sge, %198, %199 : vector<1x256xi32>
    %c-2_i32_76 = arith.constant -2 : i32
    %201 = vector.broadcast %c-2_i32_76 : i32 to vector<1x256xi32>
    %202 = arith.addi %14, %201 : vector<1x256xi32>
    %c16_i32_77 = arith.constant 16 : i32
    %203 = vector.broadcast %c16_i32_77 : i32 to vector<1x256xi32>
    %204 = arith.cmpi slt, %202, %203 : vector<1x256xi32>
    %205 = arith.andi %200, %204 : vector<1x256xi1>
    %cst_78 = arith.constant 0xFF800000 : f32
    %206 = vector.shape_cast %205 : vector<1x256xi1> to vector<1x256xi1>
    %207 = vector.broadcast %206 : vector<1x256xi1> to vector<8x256xi1>
    %208 = vector.broadcast %cst_78 : f32 to vector<8x256xf32>
    %209 = arith.select %207, %196, %208 : vector<8x256xi1>, vector<8x256xf32>
    %210 = arith.maximumf %195, %209 : vector<8x256xf32>
    %c16_i32_79 = arith.constant 16 : i32
    %211 = tpu.dynamic_rotate %195 by %c16_i32_79 dim 1 : vector<8x256xf32>, i32 -> vector<8x256xf32>
    %c-1_i32_80 = arith.constant -1 : i32
    %212 = vector.broadcast %c-1_i32_80 : i32 to vector<1x256xi32>
    %213 = arith.addi %14, %212 : vector<1x256xi32>
    %c0_i32_81 = arith.constant 0 : i32
    %214 = vector.broadcast %c0_i32_81 : i32 to vector<1x256xi32>
    %215 = arith.cmpi sge, %213, %214 : vector<1x256xi32>
    %c-1_i32_82 = arith.constant -1 : i32
    %216 = vector.broadcast %c-1_i32_82 : i32 to vector<1x256xi32>
    %217 = arith.addi %14, %216 : vector<1x256xi32>
    %c16_i32_83 = arith.constant 16 : i32
    %218 = vector.broadcast %c16_i32_83 : i32 to vector<1x256xi32>
    %219 = arith.cmpi slt, %217, %218 : vector<1x256xi32>
    %220 = arith.andi %215, %219 : vector<1x256xi1>
    %cst_84 = arith.constant 0xFF800000 : f32
    %221 = vector.shape_cast %220 : vector<1x256xi1> to vector<1x256xi1>
    %222 = vector.broadcast %221 : vector<1x256xi1> to vector<8x256xi1>
    %223 = vector.broadcast %cst_84 : f32 to vector<8x256xf32>
    %224 = arith.select %222, %211, %223 : vector<8x256xi1>, vector<8x256xf32>
    %225 = arith.maximumf %210, %224 : vector<8x256xf32>
    %c240_i32_85 = arith.constant 240 : i32
    %226 = tpu.dynamic_rotate %195 by %c240_i32_85 dim 1 : vector<8x256xf32>, i32 -> vector<8x256xf32>
    %c1_i32_86 = arith.constant 1 : i32
    %227 = vector.broadcast %c1_i32_86 : i32 to vector<1x256xi32>
    %228 = arith.addi %14, %227 : vector<1x256xi32>
    %c0_i32_87 = arith.constant 0 : i32
    %229 = vector.broadcast %c0_i32_87 : i32 to vector<1x256xi32>
    %230 = arith.cmpi sge, %228, %229 : vector<1x256xi32>
    %c1_i32_88 = arith.constant 1 : i32
    %231 = vector.broadcast %c1_i32_88 : i32 to vector<1x256xi32>
    %232 = arith.addi %14, %231 : vector<1x256xi32>
    %c16_i32_89 = arith.constant 16 : i32
    %233 = vector.broadcast %c16_i32_89 : i32 to vector<1x256xi32>
    %234 = arith.cmpi slt, %232, %233 : vector<1x256xi32>
    %235 = arith.andi %230, %234 : vector<1x256xi1>
    %cst_90 = arith.constant 0xFF800000 : f32
    %236 = vector.shape_cast %235 : vector<1x256xi1> to vector<1x256xi1>
    %237 = vector.broadcast %236 : vector<1x256xi1> to vector<8x256xi1>
    %238 = vector.broadcast %cst_90 : f32 to vector<8x256xf32>
    %239 = arith.select %237, %226, %238 : vector<8x256xi1>, vector<8x256xf32>
    %240 = arith.maximumf %225, %239 : vector<8x256xf32>
    %c224_i32_91 = arith.constant 224 : i32
    %241 = tpu.dynamic_rotate %195 by %c224_i32_91 dim 1 : vector<8x256xf32>, i32 -> vector<8x256xf32>
    %c2_i32_92 = arith.constant 2 : i32
    %242 = vector.broadcast %c2_i32_92 : i32 to vector<1x256xi32>
    %243 = arith.addi %14, %242 : vector<1x256xi32>
    %c0_i32_93 = arith.constant 0 : i32
    %244 = vector.broadcast %c0_i32_93 : i32 to vector<1x256xi32>
    %245 = arith.cmpi sge, %243, %244 : vector<1x256xi32>
    %c2_i32_94 = arith.constant 2 : i32
    %246 = vector.broadcast %c2_i32_94 : i32 to vector<1x256xi32>
    %247 = arith.addi %14, %246 : vector<1x256xi32>
    %c16_i32_95 = arith.constant 16 : i32
    %248 = vector.broadcast %c16_i32_95 : i32 to vector<1x256xi32>
    %249 = arith.cmpi slt, %247, %248 : vector<1x256xi32>
    %250 = arith.andi %245, %249 : vector<1x256xi1>
    %cst_96 = arith.constant 0xFF800000 : f32
    %251 = vector.shape_cast %250 : vector<1x256xi1> to vector<1x256xi1>
    %252 = vector.broadcast %251 : vector<1x256xi1> to vector<8x256xi1>
    %253 = vector.broadcast %cst_96 : f32 to vector<8x256xf32>
    %254 = arith.select %252, %241, %253 : vector<8x256xi1>, vector<8x256xf32>
    %255 = arith.maximumf %240, %254 : vector<8x256xf32>
    %c2_i32_97 = arith.constant 2 : i32
    %256 = tpu.dynamic_rotate %255 by %c2_i32_97 dim 1 : vector<8x256xf32>, i32 -> vector<8x256xf32>
    %c-2_i32_98 = arith.constant -2 : i32
    %257 = vector.broadcast %c-2_i32_98 : i32 to vector<1x256xi32>
    %258 = arith.addi %15, %257 : vector<1x256xi32>
    %c0_i32_99 = arith.constant 0 : i32
    %259 = vector.broadcast %c0_i32_99 : i32 to vector<1x256xi32>
    %260 = arith.cmpi sge, %258, %259 : vector<1x256xi32>
    %c-2_i32_100 = arith.constant -2 : i32
    %261 = vector.broadcast %c-2_i32_100 : i32 to vector<1x256xi32>
    %262 = arith.addi %15, %261 : vector<1x256xi32>
    %c16_i32_101 = arith.constant 16 : i32
    %263 = vector.broadcast %c16_i32_101 : i32 to vector<1x256xi32>
    %264 = arith.cmpi slt, %262, %263 : vector<1x256xi32>
    %265 = arith.andi %260, %264 : vector<1x256xi1>
    %cst_102 = arith.constant 0xFF800000 : f32
    %266 = vector.shape_cast %265 : vector<1x256xi1> to vector<1x256xi1>
    %267 = vector.broadcast %266 : vector<1x256xi1> to vector<8x256xi1>
    %268 = vector.broadcast %cst_102 : f32 to vector<8x256xf32>
    %269 = arith.select %267, %256, %268 : vector<8x256xi1>, vector<8x256xf32>
    %270 = arith.maximumf %255, %269 : vector<8x256xf32>
    %c1_i32_103 = arith.constant 1 : i32
    %271 = tpu.dynamic_rotate %255 by %c1_i32_103 dim 1 : vector<8x256xf32>, i32 -> vector<8x256xf32>
    %c-1_i32_104 = arith.constant -1 : i32
    %272 = vector.broadcast %c-1_i32_104 : i32 to vector<1x256xi32>
    %273 = arith.addi %15, %272 : vector<1x256xi32>
    %c0_i32_105 = arith.constant 0 : i32
    %274 = vector.broadcast %c0_i32_105 : i32 to vector<1x256xi32>
    %275 = arith.cmpi sge, %273, %274 : vector<1x256xi32>
    %c-1_i32_106 = arith.constant -1 : i32
    %276 = vector.broadcast %c-1_i32_106 : i32 to vector<1x256xi32>
    %277 = arith.addi %15, %276 : vector<1x256xi32>
    %c16_i32_107 = arith.constant 16 : i32
    %278 = vector.broadcast %c16_i32_107 : i32 to vector<1x256xi32>
    %279 = arith.cmpi slt, %277, %278 : vector<1x256xi32>
    %280 = arith.andi %275, %279 : vector<1x256xi1>
    %cst_108 = arith.constant 0xFF800000 : f32
    %281 = vector.shape_cast %280 : vector<1x256xi1> to vector<1x256xi1>
    %282 = vector.broadcast %281 : vector<1x256xi1> to vector<8x256xi1>
    %283 = vector.broadcast %cst_108 : f32 to vector<8x256xf32>
    %284 = arith.select %282, %271, %283 : vector<8x256xi1>, vector<8x256xf32>
    %285 = arith.maximumf %270, %284 : vector<8x256xf32>
    %c255_i32_109 = arith.constant 255 : i32
    %286 = tpu.dynamic_rotate %255 by %c255_i32_109 dim 1 : vector<8x256xf32>, i32 -> vector<8x256xf32>
    %c1_i32_110 = arith.constant 1 : i32
    %287 = vector.broadcast %c1_i32_110 : i32 to vector<1x256xi32>
    %288 = arith.addi %15, %287 : vector<1x256xi32>
    %c0_i32_111 = arith.constant 0 : i32
    %289 = vector.broadcast %c0_i32_111 : i32 to vector<1x256xi32>
    %290 = arith.cmpi sge, %288, %289 : vector<1x256xi32>
    %c1_i32_112 = arith.constant 1 : i32
    %291 = vector.broadcast %c1_i32_112 : i32 to vector<1x256xi32>
    %292 = arith.addi %15, %291 : vector<1x256xi32>
    %c16_i32_113 = arith.constant 16 : i32
    %293 = vector.broadcast %c16_i32_113 : i32 to vector<1x256xi32>
    %294 = arith.cmpi slt, %292, %293 : vector<1x256xi32>
    %295 = arith.andi %290, %294 : vector<1x256xi1>
    %cst_114 = arith.constant 0xFF800000 : f32
    %296 = vector.shape_cast %295 : vector<1x256xi1> to vector<1x256xi1>
    %297 = vector.broadcast %296 : vector<1x256xi1> to vector<8x256xi1>
    %298 = vector.broadcast %cst_114 : f32 to vector<8x256xf32>
    %299 = arith.select %297, %286, %298 : vector<8x256xi1>, vector<8x256xf32>
    %300 = arith.maximumf %285, %299 : vector<8x256xf32>
    %c254_i32_115 = arith.constant 254 : i32
    %301 = tpu.dynamic_rotate %255 by %c254_i32_115 dim 1 : vector<8x256xf32>, i32 -> vector<8x256xf32>
    %c2_i32_116 = arith.constant 2 : i32
    %302 = vector.broadcast %c2_i32_116 : i32 to vector<1x256xi32>
    %303 = arith.addi %15, %302 : vector<1x256xi32>
    %c0_i32_117 = arith.constant 0 : i32
    %304 = vector.broadcast %c0_i32_117 : i32 to vector<1x256xi32>
    %305 = arith.cmpi sge, %303, %304 : vector<1x256xi32>
    %c2_i32_118 = arith.constant 2 : i32
    %306 = vector.broadcast %c2_i32_118 : i32 to vector<1x256xi32>
    %307 = arith.addi %15, %306 : vector<1x256xi32>
    %c16_i32_119 = arith.constant 16 : i32
    %308 = vector.broadcast %c16_i32_119 : i32 to vector<1x256xi32>
    %309 = arith.cmpi slt, %307, %308 : vector<1x256xi32>
    %310 = arith.andi %305, %309 : vector<1x256xi1>
    %cst_120 = arith.constant 0xFF800000 : f32
    %311 = vector.shape_cast %310 : vector<1x256xi1> to vector<1x256xi1>
    %312 = vector.broadcast %311 : vector<1x256xi1> to vector<8x256xi1>
    %313 = vector.broadcast %cst_120 : f32 to vector<8x256xf32>
    %314 = arith.select %312, %301, %313 : vector<8x256xi1>, vector<8x256xf32>
    %315 = arith.maximumf %300, %314 : vector<8x256xf32>
    %c32_i32_121 = arith.constant 32 : i32
    %316 = tpu.dynamic_rotate %315 by %c32_i32_121 dim 1 : vector<8x256xf32>, i32 -> vector<8x256xf32>
    %c-2_i32_122 = arith.constant -2 : i32
    %317 = vector.broadcast %c-2_i32_122 : i32 to vector<1x256xi32>
    %318 = arith.addi %14, %317 : vector<1x256xi32>
    %c0_i32_123 = arith.constant 0 : i32
    %319 = vector.broadcast %c0_i32_123 : i32 to vector<1x256xi32>
    %320 = arith.cmpi sge, %318, %319 : vector<1x256xi32>
    %c-2_i32_124 = arith.constant -2 : i32
    %321 = vector.broadcast %c-2_i32_124 : i32 to vector<1x256xi32>
    %322 = arith.addi %14, %321 : vector<1x256xi32>
    %c16_i32_125 = arith.constant 16 : i32
    %323 = vector.broadcast %c16_i32_125 : i32 to vector<1x256xi32>
    %324 = arith.cmpi slt, %322, %323 : vector<1x256xi32>
    %325 = arith.andi %320, %324 : vector<1x256xi1>
    %cst_126 = arith.constant 0xFF800000 : f32
    %326 = vector.shape_cast %325 : vector<1x256xi1> to vector<1x256xi1>
    %327 = vector.broadcast %326 : vector<1x256xi1> to vector<8x256xi1>
    %328 = vector.broadcast %cst_126 : f32 to vector<8x256xf32>
    %329 = arith.select %327, %316, %328 : vector<8x256xi1>, vector<8x256xf32>
    %330 = arith.maximumf %315, %329 : vector<8x256xf32>
    %c16_i32_127 = arith.constant 16 : i32
    %331 = tpu.dynamic_rotate %315 by %c16_i32_127 dim 1 : vector<8x256xf32>, i32 -> vector<8x256xf32>
    %c-1_i32_128 = arith.constant -1 : i32
    %332 = vector.broadcast %c-1_i32_128 : i32 to vector<1x256xi32>
    %333 = arith.addi %14, %332 : vector<1x256xi32>
    %c0_i32_129 = arith.constant 0 : i32
    %334 = vector.broadcast %c0_i32_129 : i32 to vector<1x256xi32>
    %335 = arith.cmpi sge, %333, %334 : vector<1x256xi32>
    %c-1_i32_130 = arith.constant -1 : i32
    %336 = vector.broadcast %c-1_i32_130 : i32 to vector<1x256xi32>
    %337 = arith.addi %14, %336 : vector<1x256xi32>
    %c16_i32_131 = arith.constant 16 : i32
    %338 = vector.broadcast %c16_i32_131 : i32 to vector<1x256xi32>
    %339 = arith.cmpi slt, %337, %338 : vector<1x256xi32>
    %340 = arith.andi %335, %339 : vector<1x256xi1>
    %cst_132 = arith.constant 0xFF800000 : f32
    %341 = vector.shape_cast %340 : vector<1x256xi1> to vector<1x256xi1>
    %342 = vector.broadcast %341 : vector<1x256xi1> to vector<8x256xi1>
    %343 = vector.broadcast %cst_132 : f32 to vector<8x256xf32>
    %344 = arith.select %342, %331, %343 : vector<8x256xi1>, vector<8x256xf32>
    %345 = arith.maximumf %330, %344 : vector<8x256xf32>
    %c240_i32_133 = arith.constant 240 : i32
    %346 = tpu.dynamic_rotate %315 by %c240_i32_133 dim 1 : vector<8x256xf32>, i32 -> vector<8x256xf32>
    %c1_i32_134 = arith.constant 1 : i32
    %347 = vector.broadcast %c1_i32_134 : i32 to vector<1x256xi32>
    %348 = arith.addi %14, %347 : vector<1x256xi32>
    %c0_i32_135 = arith.constant 0 : i32
    %349 = vector.broadcast %c0_i32_135 : i32 to vector<1x256xi32>
    %350 = arith.cmpi sge, %348, %349 : vector<1x256xi32>
    %c1_i32_136 = arith.constant 1 : i32
    %351 = vector.broadcast %c1_i32_136 : i32 to vector<1x256xi32>
    %352 = arith.addi %14, %351 : vector<1x256xi32>
    %c16_i32_137 = arith.constant 16 : i32
    %353 = vector.broadcast %c16_i32_137 : i32 to vector<1x256xi32>
    %354 = arith.cmpi slt, %352, %353 : vector<1x256xi32>
    %355 = arith.andi %350, %354 : vector<1x256xi1>
    %cst_138 = arith.constant 0xFF800000 : f32
    %356 = vector.shape_cast %355 : vector<1x256xi1> to vector<1x256xi1>
    %357 = vector.broadcast %356 : vector<1x256xi1> to vector<8x256xi1>
    %358 = vector.broadcast %cst_138 : f32 to vector<8x256xf32>
    %359 = arith.select %357, %346, %358 : vector<8x256xi1>, vector<8x256xf32>
    %360 = arith.maximumf %345, %359 : vector<8x256xf32>
    %c224_i32_139 = arith.constant 224 : i32
    %361 = tpu.dynamic_rotate %315 by %c224_i32_139 dim 1 : vector<8x256xf32>, i32 -> vector<8x256xf32>
    %c2_i32_140 = arith.constant 2 : i32
    %362 = vector.broadcast %c2_i32_140 : i32 to vector<1x256xi32>
    %363 = arith.addi %14, %362 : vector<1x256xi32>
    %c0_i32_141 = arith.constant 0 : i32
    %364 = vector.broadcast %c0_i32_141 : i32 to vector<1x256xi32>
    %365 = arith.cmpi sge, %363, %364 : vector<1x256xi32>
    %c2_i32_142 = arith.constant 2 : i32
    %366 = vector.broadcast %c2_i32_142 : i32 to vector<1x256xi32>
    %367 = arith.addi %14, %366 : vector<1x256xi32>
    %c16_i32_143 = arith.constant 16 : i32
    %368 = vector.broadcast %c16_i32_143 : i32 to vector<1x256xi32>
    %369 = arith.cmpi slt, %367, %368 : vector<1x256xi32>
    %370 = arith.andi %365, %369 : vector<1x256xi1>
    %cst_144 = arith.constant 0xFF800000 : f32
    %371 = vector.shape_cast %370 : vector<1x256xi1> to vector<1x256xi1>
    %372 = vector.broadcast %371 : vector<1x256xi1> to vector<8x256xi1>
    %373 = vector.broadcast %cst_144 : f32 to vector<8x256xf32>
    %374 = arith.select %372, %361, %373 : vector<8x256xi1>, vector<8x256xf32>
    %375 = arith.maximumf %360, %374 : vector<8x256xf32>
    %c255_i32_145 = arith.constant 255 : i32
    %376 = tpu.dynamic_rotate %13 by %c255_i32_145 dim 1 : vector<8x256xf32>, i32 -> vector<8x256xf32>
    %c1_i32_146 = arith.constant 1 : i32
    %377 = vector.broadcast %c1_i32_146 : i32 to vector<1x256xi32>
    %378 = arith.addi %15, %377 : vector<1x256xi32>
    %c0_i32_147 = arith.constant 0 : i32
    %379 = vector.broadcast %c0_i32_147 : i32 to vector<1x256xi32>
    %380 = arith.cmpi sge, %378, %379 : vector<1x256xi32>
    %c1_i32_148 = arith.constant 1 : i32
    %381 = vector.broadcast %c1_i32_148 : i32 to vector<1x256xi32>
    %382 = arith.addi %15, %381 : vector<1x256xi32>
    %c16_i32_149 = arith.constant 16 : i32
    %383 = vector.broadcast %c16_i32_149 : i32 to vector<1x256xi32>
    %384 = arith.cmpi slt, %382, %383 : vector<1x256xi32>
    %385 = arith.andi %380, %384 : vector<1x256xi1>
    %cst_150 = arith.constant 0.000000e+00 : f32
    %386 = vector.shape_cast %385 : vector<1x256xi1> to vector<1x256xi1>
    %387 = vector.broadcast %386 : vector<1x256xi1> to vector<8x256xi1>
    %388 = vector.broadcast %cst_150 : f32 to vector<8x256xf32>
    %389 = arith.select %387, %376, %388 : vector<8x256xi1>, vector<8x256xf32>
    %390 = arith.addf %13, %389 : vector<8x256xf32>
    %c1_i32_151 = arith.constant 1 : i32
    %391 = tpu.dynamic_rotate %13 by %c1_i32_151 dim 1 : vector<8x256xf32>, i32 -> vector<8x256xf32>
    %c-1_i32_152 = arith.constant -1 : i32
    %392 = vector.broadcast %c-1_i32_152 : i32 to vector<1x256xi32>
    %393 = arith.addi %15, %392 : vector<1x256xi32>
    %c0_i32_153 = arith.constant 0 : i32
    %394 = vector.broadcast %c0_i32_153 : i32 to vector<1x256xi32>
    %395 = arith.cmpi sge, %393, %394 : vector<1x256xi32>
    %c-1_i32_154 = arith.constant -1 : i32
    %396 = vector.broadcast %c-1_i32_154 : i32 to vector<1x256xi32>
    %397 = arith.addi %15, %396 : vector<1x256xi32>
    %c16_i32_155 = arith.constant 16 : i32
    %398 = vector.broadcast %c16_i32_155 : i32 to vector<1x256xi32>
    %399 = arith.cmpi slt, %397, %398 : vector<1x256xi32>
    %400 = arith.andi %395, %399 : vector<1x256xi1>
    %cst_156 = arith.constant 0.000000e+00 : f32
    %401 = vector.shape_cast %400 : vector<1x256xi1> to vector<1x256xi1>
    %402 = vector.broadcast %401 : vector<1x256xi1> to vector<8x256xi1>
    %403 = vector.broadcast %cst_156 : f32 to vector<8x256xf32>
    %404 = arith.select %402, %391, %403 : vector<8x256xi1>, vector<8x256xf32>
    %405 = arith.addf %390, %404 : vector<8x256xf32>
    %c254_i32_157 = arith.constant 254 : i32
    %406 = tpu.dynamic_rotate %13 by %c254_i32_157 dim 1 : vector<8x256xf32>, i32 -> vector<8x256xf32>
    %c2_i32_158 = arith.constant 2 : i32
    %407 = vector.broadcast %c2_i32_158 : i32 to vector<1x256xi32>
    %408 = arith.addi %15, %407 : vector<1x256xi32>
    %c0_i32_159 = arith.constant 0 : i32
    %409 = vector.broadcast %c0_i32_159 : i32 to vector<1x256xi32>
    %410 = arith.cmpi sge, %408, %409 : vector<1x256xi32>
    %c2_i32_160 = arith.constant 2 : i32
    %411 = vector.broadcast %c2_i32_160 : i32 to vector<1x256xi32>
    %412 = arith.addi %15, %411 : vector<1x256xi32>
    %c16_i32_161 = arith.constant 16 : i32
    %413 = vector.broadcast %c16_i32_161 : i32 to vector<1x256xi32>
    %414 = arith.cmpi slt, %412, %413 : vector<1x256xi32>
    %415 = arith.andi %410, %414 : vector<1x256xi1>
    %cst_162 = arith.constant 0.000000e+00 : f32
    %416 = vector.shape_cast %415 : vector<1x256xi1> to vector<1x256xi1>
    %417 = vector.broadcast %416 : vector<1x256xi1> to vector<8x256xi1>
    %418 = vector.broadcast %cst_162 : f32 to vector<8x256xf32>
    %419 = arith.select %417, %406, %418 : vector<8x256xi1>, vector<8x256xf32>
    %420 = arith.addf %405, %419 : vector<8x256xf32>
    %c2_i32_163 = arith.constant 2 : i32
    %421 = tpu.dynamic_rotate %13 by %c2_i32_163 dim 1 : vector<8x256xf32>, i32 -> vector<8x256xf32>
    %c-2_i32_164 = arith.constant -2 : i32
    %422 = vector.broadcast %c-2_i32_164 : i32 to vector<1x256xi32>
    %423 = arith.addi %15, %422 : vector<1x256xi32>
    %c0_i32_165 = arith.constant 0 : i32
    %424 = vector.broadcast %c0_i32_165 : i32 to vector<1x256xi32>
    %425 = arith.cmpi sge, %423, %424 : vector<1x256xi32>
    %c-2_i32_166 = arith.constant -2 : i32
    %426 = vector.broadcast %c-2_i32_166 : i32 to vector<1x256xi32>
    %427 = arith.addi %15, %426 : vector<1x256xi32>
    %c16_i32_167 = arith.constant 16 : i32
    %428 = vector.broadcast %c16_i32_167 : i32 to vector<1x256xi32>
    %429 = arith.cmpi slt, %427, %428 : vector<1x256xi32>
    %430 = arith.andi %425, %429 : vector<1x256xi1>
    %cst_168 = arith.constant 0.000000e+00 : f32
    %431 = vector.shape_cast %430 : vector<1x256xi1> to vector<1x256xi1>
    %432 = vector.broadcast %431 : vector<1x256xi1> to vector<8x256xi1>
    %433 = vector.broadcast %cst_168 : f32 to vector<8x256xf32>
    %434 = arith.select %432, %421, %433 : vector<8x256xi1>, vector<8x256xf32>
    %435 = arith.addf %420, %434 : vector<8x256xf32>
    %c253_i32 = arith.constant 253 : i32
    %436 = tpu.dynamic_rotate %13 by %c253_i32 dim 1 : vector<8x256xf32>, i32 -> vector<8x256xf32>
    %c3_i32 = arith.constant 3 : i32
    %437 = vector.broadcast %c3_i32 : i32 to vector<1x256xi32>
    %438 = arith.addi %15, %437 : vector<1x256xi32>
    %c0_i32_169 = arith.constant 0 : i32
    %439 = vector.broadcast %c0_i32_169 : i32 to vector<1x256xi32>
    %440 = arith.cmpi sge, %438, %439 : vector<1x256xi32>
    %c3_i32_170 = arith.constant 3 : i32
    %441 = vector.broadcast %c3_i32_170 : i32 to vector<1x256xi32>
    %442 = arith.addi %15, %441 : vector<1x256xi32>
    %c16_i32_171 = arith.constant 16 : i32
    %443 = vector.broadcast %c16_i32_171 : i32 to vector<1x256xi32>
    %444 = arith.cmpi slt, %442, %443 : vector<1x256xi32>
    %445 = arith.andi %440, %444 : vector<1x256xi1>
    %cst_172 = arith.constant 0.000000e+00 : f32
    %446 = vector.shape_cast %445 : vector<1x256xi1> to vector<1x256xi1>
    %447 = vector.broadcast %446 : vector<1x256xi1> to vector<8x256xi1>
    %448 = vector.broadcast %cst_172 : f32 to vector<8x256xf32>
    %449 = arith.select %447, %436, %448 : vector<8x256xi1>, vector<8x256xf32>
    %450 = arith.addf %435, %449 : vector<8x256xf32>
    %c3_i32_173 = arith.constant 3 : i32
    %451 = tpu.dynamic_rotate %13 by %c3_i32_173 dim 1 : vector<8x256xf32>, i32 -> vector<8x256xf32>
    %c-3_i32 = arith.constant -3 : i32
    %452 = vector.broadcast %c-3_i32 : i32 to vector<1x256xi32>
    %453 = arith.addi %15, %452 : vector<1x256xi32>
    %c0_i32_174 = arith.constant 0 : i32
    %454 = vector.broadcast %c0_i32_174 : i32 to vector<1x256xi32>
    %455 = arith.cmpi sge, %453, %454 : vector<1x256xi32>
    %c-3_i32_175 = arith.constant -3 : i32
    %456 = vector.broadcast %c-3_i32_175 : i32 to vector<1x256xi32>
    %457 = arith.addi %15, %456 : vector<1x256xi32>
    %c16_i32_176 = arith.constant 16 : i32
    %458 = vector.broadcast %c16_i32_176 : i32 to vector<1x256xi32>
    %459 = arith.cmpi slt, %457, %458 : vector<1x256xi32>
    %460 = arith.andi %455, %459 : vector<1x256xi1>
    %cst_177 = arith.constant 0.000000e+00 : f32
    %461 = vector.shape_cast %460 : vector<1x256xi1> to vector<1x256xi1>
    %462 = vector.broadcast %461 : vector<1x256xi1> to vector<8x256xi1>
    %463 = vector.broadcast %cst_177 : f32 to vector<8x256xf32>
    %464 = arith.select %462, %451, %463 : vector<8x256xi1>, vector<8x256xf32>
    %465 = arith.addf %450, %464 : vector<8x256xf32>
    %c252_i32 = arith.constant 252 : i32
    %466 = tpu.dynamic_rotate %13 by %c252_i32 dim 1 : vector<8x256xf32>, i32 -> vector<8x256xf32>
    %c4_i32 = arith.constant 4 : i32
    %467 = vector.broadcast %c4_i32 : i32 to vector<1x256xi32>
    %468 = arith.addi %15, %467 : vector<1x256xi32>
    %c0_i32_178 = arith.constant 0 : i32
    %469 = vector.broadcast %c0_i32_178 : i32 to vector<1x256xi32>
    %470 = arith.cmpi sge, %468, %469 : vector<1x256xi32>
    %c4_i32_179 = arith.constant 4 : i32
    %471 = vector.broadcast %c4_i32_179 : i32 to vector<1x256xi32>
    %472 = arith.addi %15, %471 : vector<1x256xi32>
    %c16_i32_180 = arith.constant 16 : i32
    %473 = vector.broadcast %c16_i32_180 : i32 to vector<1x256xi32>
    %474 = arith.cmpi slt, %472, %473 : vector<1x256xi32>
    %475 = arith.andi %470, %474 : vector<1x256xi1>
    %cst_181 = arith.constant 0.000000e+00 : f32
    %476 = vector.shape_cast %475 : vector<1x256xi1> to vector<1x256xi1>
    %477 = vector.broadcast %476 : vector<1x256xi1> to vector<8x256xi1>
    %478 = vector.broadcast %cst_181 : f32 to vector<8x256xf32>
    %479 = arith.select %477, %466, %478 : vector<8x256xi1>, vector<8x256xf32>
    %480 = arith.addf %465, %479 : vector<8x256xf32>
    %c4_i32_182 = arith.constant 4 : i32
    %481 = tpu.dynamic_rotate %13 by %c4_i32_182 dim 1 : vector<8x256xf32>, i32 -> vector<8x256xf32>
    %c-4_i32 = arith.constant -4 : i32
    %482 = vector.broadcast %c-4_i32 : i32 to vector<1x256xi32>
    %483 = arith.addi %15, %482 : vector<1x256xi32>
    %c0_i32_183 = arith.constant 0 : i32
    %484 = vector.broadcast %c0_i32_183 : i32 to vector<1x256xi32>
    %485 = arith.cmpi sge, %483, %484 : vector<1x256xi32>
    %c-4_i32_184 = arith.constant -4 : i32
    %486 = vector.broadcast %c-4_i32_184 : i32 to vector<1x256xi32>
    %487 = arith.addi %15, %486 : vector<1x256xi32>
    %c16_i32_185 = arith.constant 16 : i32
    %488 = vector.broadcast %c16_i32_185 : i32 to vector<1x256xi32>
    %489 = arith.cmpi slt, %487, %488 : vector<1x256xi32>
    %490 = arith.andi %485, %489 : vector<1x256xi1>
    %cst_186 = arith.constant 0.000000e+00 : f32
    %491 = vector.shape_cast %490 : vector<1x256xi1> to vector<1x256xi1>
    %492 = vector.broadcast %491 : vector<1x256xi1> to vector<8x256xi1>
    %493 = vector.broadcast %cst_186 : f32 to vector<8x256xf32>
    %494 = arith.select %492, %481, %493 : vector<8x256xi1>, vector<8x256xf32>
    %495 = arith.addf %480, %494 : vector<8x256xf32>
    %c251_i32 = arith.constant 251 : i32
    %496 = tpu.dynamic_rotate %13 by %c251_i32 dim 1 : vector<8x256xf32>, i32 -> vector<8x256xf32>
    %c5_i32 = arith.constant 5 : i32
    %497 = vector.broadcast %c5_i32 : i32 to vector<1x256xi32>
    %498 = arith.addi %15, %497 : vector<1x256xi32>
    %c0_i32_187 = arith.constant 0 : i32
    %499 = vector.broadcast %c0_i32_187 : i32 to vector<1x256xi32>
    %500 = arith.cmpi sge, %498, %499 : vector<1x256xi32>
    %c5_i32_188 = arith.constant 5 : i32
    %501 = vector.broadcast %c5_i32_188 : i32 to vector<1x256xi32>
    %502 = arith.addi %15, %501 : vector<1x256xi32>
    %c16_i32_189 = arith.constant 16 : i32
    %503 = vector.broadcast %c16_i32_189 : i32 to vector<1x256xi32>
    %504 = arith.cmpi slt, %502, %503 : vector<1x256xi32>
    %505 = arith.andi %500, %504 : vector<1x256xi1>
    %cst_190 = arith.constant 0.000000e+00 : f32
    %506 = vector.shape_cast %505 : vector<1x256xi1> to vector<1x256xi1>
    %507 = vector.broadcast %506 : vector<1x256xi1> to vector<8x256xi1>
    %508 = vector.broadcast %cst_190 : f32 to vector<8x256xf32>
    %509 = arith.select %507, %496, %508 : vector<8x256xi1>, vector<8x256xf32>
    %510 = arith.addf %495, %509 : vector<8x256xf32>
    %c5_i32_191 = arith.constant 5 : i32
    %511 = tpu.dynamic_rotate %13 by %c5_i32_191 dim 1 : vector<8x256xf32>, i32 -> vector<8x256xf32>
    %c-5_i32 = arith.constant -5 : i32
    %512 = vector.broadcast %c-5_i32 : i32 to vector<1x256xi32>
    %513 = arith.addi %15, %512 : vector<1x256xi32>
    %c0_i32_192 = arith.constant 0 : i32
    %514 = vector.broadcast %c0_i32_192 : i32 to vector<1x256xi32>
    %515 = arith.cmpi sge, %513, %514 : vector<1x256xi32>
    %c-5_i32_193 = arith.constant -5 : i32
    %516 = vector.broadcast %c-5_i32_193 : i32 to vector<1x256xi32>
    %517 = arith.addi %15, %516 : vector<1x256xi32>
    %c16_i32_194 = arith.constant 16 : i32
    %518 = vector.broadcast %c16_i32_194 : i32 to vector<1x256xi32>
    %519 = arith.cmpi slt, %517, %518 : vector<1x256xi32>
    %520 = arith.andi %515, %519 : vector<1x256xi1>
    %cst_195 = arith.constant 0.000000e+00 : f32
    %521 = vector.shape_cast %520 : vector<1x256xi1> to vector<1x256xi1>
    %522 = vector.broadcast %521 : vector<1x256xi1> to vector<8x256xi1>
    %523 = vector.broadcast %cst_195 : f32 to vector<8x256xf32>
    %524 = arith.select %522, %511, %523 : vector<8x256xi1>, vector<8x256xf32>
    %525 = arith.addf %510, %524 : vector<8x256xf32>
    %c250_i32 = arith.constant 250 : i32
    %526 = tpu.dynamic_rotate %13 by %c250_i32 dim 1 : vector<8x256xf32>, i32 -> vector<8x256xf32>
    %c6_i32 = arith.constant 6 : i32
    %527 = vector.broadcast %c6_i32 : i32 to vector<1x256xi32>
    %528 = arith.addi %15, %527 : vector<1x256xi32>
    %c0_i32_196 = arith.constant 0 : i32
    %529 = vector.broadcast %c0_i32_196 : i32 to vector<1x256xi32>
    %530 = arith.cmpi sge, %528, %529 : vector<1x256xi32>
    %c6_i32_197 = arith.constant 6 : i32
    %531 = vector.broadcast %c6_i32_197 : i32 to vector<1x256xi32>
    %532 = arith.addi %15, %531 : vector<1x256xi32>
    %c16_i32_198 = arith.constant 16 : i32
    %533 = vector.broadcast %c16_i32_198 : i32 to vector<1x256xi32>
    %534 = arith.cmpi slt, %532, %533 : vector<1x256xi32>
    %535 = arith.andi %530, %534 : vector<1x256xi1>
    %cst_199 = arith.constant 0.000000e+00 : f32
    %536 = vector.shape_cast %535 : vector<1x256xi1> to vector<1x256xi1>
    %537 = vector.broadcast %536 : vector<1x256xi1> to vector<8x256xi1>
    %538 = vector.broadcast %cst_199 : f32 to vector<8x256xf32>
    %539 = arith.select %537, %526, %538 : vector<8x256xi1>, vector<8x256xf32>
    %540 = arith.addf %525, %539 : vector<8x256xf32>
    %c6_i32_200 = arith.constant 6 : i32
    %541 = tpu.dynamic_rotate %13 by %c6_i32_200 dim 1 : vector<8x256xf32>, i32 -> vector<8x256xf32>
    %c-6_i32 = arith.constant -6 : i32
    %542 = vector.broadcast %c-6_i32 : i32 to vector<1x256xi32>
    %543 = arith.addi %15, %542 : vector<1x256xi32>
    %c0_i32_201 = arith.constant 0 : i32
    %544 = vector.broadcast %c0_i32_201 : i32 to vector<1x256xi32>
    %545 = arith.cmpi sge, %543, %544 : vector<1x256xi32>
    %c-6_i32_202 = arith.constant -6 : i32
    %546 = vector.broadcast %c-6_i32_202 : i32 to vector<1x256xi32>
    %547 = arith.addi %15, %546 : vector<1x256xi32>
    %c16_i32_203 = arith.constant 16 : i32
    %548 = vector.broadcast %c16_i32_203 : i32 to vector<1x256xi32>
    %549 = arith.cmpi slt, %547, %548 : vector<1x256xi32>
    %550 = arith.andi %545, %549 : vector<1x256xi1>
    %cst_204 = arith.constant 0.000000e+00 : f32
    %551 = vector.shape_cast %550 : vector<1x256xi1> to vector<1x256xi1>
    %552 = vector.broadcast %551 : vector<1x256xi1> to vector<8x256xi1>
    %553 = vector.broadcast %cst_204 : f32 to vector<8x256xf32>
    %554 = arith.select %552, %541, %553 : vector<8x256xi1>, vector<8x256xf32>
    %555 = arith.addf %540, %554 : vector<8x256xf32>
    %c240_i32_205 = arith.constant 240 : i32
    %556 = tpu.dynamic_rotate %435 by %c240_i32_205 dim 1 : vector<8x256xf32>, i32 -> vector<8x256xf32>
    %c1_i32_206 = arith.constant 1 : i32
    %557 = vector.broadcast %c1_i32_206 : i32 to vector<1x256xi32>
    %558 = arith.addi %14, %557 : vector<1x256xi32>
    %c0_i32_207 = arith.constant 0 : i32
    %559 = vector.broadcast %c0_i32_207 : i32 to vector<1x256xi32>
    %560 = arith.cmpi sge, %558, %559 : vector<1x256xi32>
    %c1_i32_208 = arith.constant 1 : i32
    %561 = vector.broadcast %c1_i32_208 : i32 to vector<1x256xi32>
    %562 = arith.addi %14, %561 : vector<1x256xi32>
    %c16_i32_209 = arith.constant 16 : i32
    %563 = vector.broadcast %c16_i32_209 : i32 to vector<1x256xi32>
    %564 = arith.cmpi slt, %562, %563 : vector<1x256xi32>
    %565 = arith.andi %560, %564 : vector<1x256xi1>
    %cst_210 = arith.constant 0.000000e+00 : f32
    %566 = vector.shape_cast %565 : vector<1x256xi1> to vector<1x256xi1>
    %567 = vector.broadcast %566 : vector<1x256xi1> to vector<8x256xi1>
    %568 = vector.broadcast %cst_210 : f32 to vector<8x256xf32>
    %569 = arith.select %567, %556, %568 : vector<8x256xi1>, vector<8x256xf32>
    %570 = arith.addf %435, %569 : vector<8x256xf32>
    %c16_i32_211 = arith.constant 16 : i32
    %571 = tpu.dynamic_rotate %435 by %c16_i32_211 dim 1 : vector<8x256xf32>, i32 -> vector<8x256xf32>
    %c-1_i32_212 = arith.constant -1 : i32
    %572 = vector.broadcast %c-1_i32_212 : i32 to vector<1x256xi32>
    %573 = arith.addi %14, %572 : vector<1x256xi32>
    %c0_i32_213 = arith.constant 0 : i32
    %574 = vector.broadcast %c0_i32_213 : i32 to vector<1x256xi32>
    %575 = arith.cmpi sge, %573, %574 : vector<1x256xi32>
    %c-1_i32_214 = arith.constant -1 : i32
    %576 = vector.broadcast %c-1_i32_214 : i32 to vector<1x256xi32>
    %577 = arith.addi %14, %576 : vector<1x256xi32>
    %c16_i32_215 = arith.constant 16 : i32
    %578 = vector.broadcast %c16_i32_215 : i32 to vector<1x256xi32>
    %579 = arith.cmpi slt, %577, %578 : vector<1x256xi32>
    %580 = arith.andi %575, %579 : vector<1x256xi1>
    %cst_216 = arith.constant 0.000000e+00 : f32
    %581 = vector.shape_cast %580 : vector<1x256xi1> to vector<1x256xi1>
    %582 = vector.broadcast %581 : vector<1x256xi1> to vector<8x256xi1>
    %583 = vector.broadcast %cst_216 : f32 to vector<8x256xf32>
    %584 = arith.select %582, %571, %583 : vector<8x256xi1>, vector<8x256xf32>
    %585 = arith.addf %570, %584 : vector<8x256xf32>
    %c224_i32_217 = arith.constant 224 : i32
    %586 = tpu.dynamic_rotate %435 by %c224_i32_217 dim 1 : vector<8x256xf32>, i32 -> vector<8x256xf32>
    %c2_i32_218 = arith.constant 2 : i32
    %587 = vector.broadcast %c2_i32_218 : i32 to vector<1x256xi32>
    %588 = arith.addi %14, %587 : vector<1x256xi32>
    %c0_i32_219 = arith.constant 0 : i32
    %589 = vector.broadcast %c0_i32_219 : i32 to vector<1x256xi32>
    %590 = arith.cmpi sge, %588, %589 : vector<1x256xi32>
    %c2_i32_220 = arith.constant 2 : i32
    %591 = vector.broadcast %c2_i32_220 : i32 to vector<1x256xi32>
    %592 = arith.addi %14, %591 : vector<1x256xi32>
    %c16_i32_221 = arith.constant 16 : i32
    %593 = vector.broadcast %c16_i32_221 : i32 to vector<1x256xi32>
    %594 = arith.cmpi slt, %592, %593 : vector<1x256xi32>
    %595 = arith.andi %590, %594 : vector<1x256xi1>
    %cst_222 = arith.constant 0.000000e+00 : f32
    %596 = vector.shape_cast %595 : vector<1x256xi1> to vector<1x256xi1>
    %597 = vector.broadcast %596 : vector<1x256xi1> to vector<8x256xi1>
    %598 = vector.broadcast %cst_222 : f32 to vector<8x256xf32>
    %599 = arith.select %597, %586, %598 : vector<8x256xi1>, vector<8x256xf32>
    %600 = arith.addf %585, %599 : vector<8x256xf32>
    %c32_i32_223 = arith.constant 32 : i32
    %601 = tpu.dynamic_rotate %435 by %c32_i32_223 dim 1 : vector<8x256xf32>, i32 -> vector<8x256xf32>
    %c-2_i32_224 = arith.constant -2 : i32
    %602 = vector.broadcast %c-2_i32_224 : i32 to vector<1x256xi32>
    %603 = arith.addi %14, %602 : vector<1x256xi32>
    %c0_i32_225 = arith.constant 0 : i32
    %604 = vector.broadcast %c0_i32_225 : i32 to vector<1x256xi32>
    %605 = arith.cmpi sge, %603, %604 : vector<1x256xi32>
    %c-2_i32_226 = arith.constant -2 : i32
    %606 = vector.broadcast %c-2_i32_226 : i32 to vector<1x256xi32>
    %607 = arith.addi %14, %606 : vector<1x256xi32>
    %c16_i32_227 = arith.constant 16 : i32
    %608 = vector.broadcast %c16_i32_227 : i32 to vector<1x256xi32>
    %609 = arith.cmpi slt, %607, %608 : vector<1x256xi32>
    %610 = arith.andi %605, %609 : vector<1x256xi1>
    %cst_228 = arith.constant 0.000000e+00 : f32
    %611 = vector.shape_cast %610 : vector<1x256xi1> to vector<1x256xi1>
    %612 = vector.broadcast %611 : vector<1x256xi1> to vector<8x256xi1>
    %613 = vector.broadcast %cst_228 : f32 to vector<8x256xf32>
    %614 = arith.select %612, %601, %613 : vector<8x256xi1>, vector<8x256xf32>
    %615 = arith.addf %600, %614 : vector<8x256xf32>
    %cst_229 = arith.constant 4.000000e-02 : f32
    %616 = vector.broadcast %cst_229 : f32 to vector<8x256xf32>
    %617 = arith.mulf %615, %616 : vector<8x256xf32>
    %c240_i32_230 = arith.constant 240 : i32
    %618 = tpu.dynamic_rotate %495 by %c240_i32_230 dim 1 : vector<8x256xf32>, i32 -> vector<8x256xf32>
    %c1_i32_231 = arith.constant 1 : i32
    %619 = vector.broadcast %c1_i32_231 : i32 to vector<1x256xi32>
    %620 = arith.addi %14, %619 : vector<1x256xi32>
    %c0_i32_232 = arith.constant 0 : i32
    %621 = vector.broadcast %c0_i32_232 : i32 to vector<1x256xi32>
    %622 = arith.cmpi sge, %620, %621 : vector<1x256xi32>
    %c1_i32_233 = arith.constant 1 : i32
    %623 = vector.broadcast %c1_i32_233 : i32 to vector<1x256xi32>
    %624 = arith.addi %14, %623 : vector<1x256xi32>
    %c16_i32_234 = arith.constant 16 : i32
    %625 = vector.broadcast %c16_i32_234 : i32 to vector<1x256xi32>
    %626 = arith.cmpi slt, %624, %625 : vector<1x256xi32>
    %627 = arith.andi %622, %626 : vector<1x256xi1>
    %cst_235 = arith.constant 0.000000e+00 : f32
    %628 = vector.shape_cast %627 : vector<1x256xi1> to vector<1x256xi1>
    %629 = vector.broadcast %628 : vector<1x256xi1> to vector<8x256xi1>
    %630 = vector.broadcast %cst_235 : f32 to vector<8x256xf32>
    %631 = arith.select %629, %618, %630 : vector<8x256xi1>, vector<8x256xf32>
    %632 = arith.addf %495, %631 : vector<8x256xf32>
    %c16_i32_236 = arith.constant 16 : i32
    %633 = tpu.dynamic_rotate %495 by %c16_i32_236 dim 1 : vector<8x256xf32>, i32 -> vector<8x256xf32>
    %c-1_i32_237 = arith.constant -1 : i32
    %634 = vector.broadcast %c-1_i32_237 : i32 to vector<1x256xi32>
    %635 = arith.addi %14, %634 : vector<1x256xi32>
    %c0_i32_238 = arith.constant 0 : i32
    %636 = vector.broadcast %c0_i32_238 : i32 to vector<1x256xi32>
    %637 = arith.cmpi sge, %635, %636 : vector<1x256xi32>
    %c-1_i32_239 = arith.constant -1 : i32
    %638 = vector.broadcast %c-1_i32_239 : i32 to vector<1x256xi32>
    %639 = arith.addi %14, %638 : vector<1x256xi32>
    %c16_i32_240 = arith.constant 16 : i32
    %640 = vector.broadcast %c16_i32_240 : i32 to vector<1x256xi32>
    %641 = arith.cmpi slt, %639, %640 : vector<1x256xi32>
    %642 = arith.andi %637, %641 : vector<1x256xi1>
    %cst_241 = arith.constant 0.000000e+00 : f32
    %643 = vector.shape_cast %642 : vector<1x256xi1> to vector<1x256xi1>
    %644 = vector.broadcast %643 : vector<1x256xi1> to vector<8x256xi1>
    %645 = vector.broadcast %cst_241 : f32 to vector<8x256xf32>
    %646 = arith.select %644, %633, %645 : vector<8x256xi1>, vector<8x256xf32>
    %647 = arith.addf %632, %646 : vector<8x256xf32>
    %c224_i32_242 = arith.constant 224 : i32
    %648 = tpu.dynamic_rotate %495 by %c224_i32_242 dim 1 : vector<8x256xf32>, i32 -> vector<8x256xf32>
    %c2_i32_243 = arith.constant 2 : i32
    %649 = vector.broadcast %c2_i32_243 : i32 to vector<1x256xi32>
    %650 = arith.addi %14, %649 : vector<1x256xi32>
    %c0_i32_244 = arith.constant 0 : i32
    %651 = vector.broadcast %c0_i32_244 : i32 to vector<1x256xi32>
    %652 = arith.cmpi sge, %650, %651 : vector<1x256xi32>
    %c2_i32_245 = arith.constant 2 : i32
    %653 = vector.broadcast %c2_i32_245 : i32 to vector<1x256xi32>
    %654 = arith.addi %14, %653 : vector<1x256xi32>
    %c16_i32_246 = arith.constant 16 : i32
    %655 = vector.broadcast %c16_i32_246 : i32 to vector<1x256xi32>
    %656 = arith.cmpi slt, %654, %655 : vector<1x256xi32>
    %657 = arith.andi %652, %656 : vector<1x256xi1>
    %cst_247 = arith.constant 0.000000e+00 : f32
    %658 = vector.shape_cast %657 : vector<1x256xi1> to vector<1x256xi1>
    %659 = vector.broadcast %658 : vector<1x256xi1> to vector<8x256xi1>
    %660 = vector.broadcast %cst_247 : f32 to vector<8x256xf32>
    %661 = arith.select %659, %648, %660 : vector<8x256xi1>, vector<8x256xf32>
    %662 = arith.addf %647, %661 : vector<8x256xf32>
    %c32_i32_248 = arith.constant 32 : i32
    %663 = tpu.dynamic_rotate %495 by %c32_i32_248 dim 1 : vector<8x256xf32>, i32 -> vector<8x256xf32>
    %c-2_i32_249 = arith.constant -2 : i32
    %664 = vector.broadcast %c-2_i32_249 : i32 to vector<1x256xi32>
    %665 = arith.addi %14, %664 : vector<1x256xi32>
    %c0_i32_250 = arith.constant 0 : i32
    %666 = vector.broadcast %c0_i32_250 : i32 to vector<1x256xi32>
    %667 = arith.cmpi sge, %665, %666 : vector<1x256xi32>
    %c-2_i32_251 = arith.constant -2 : i32
    %668 = vector.broadcast %c-2_i32_251 : i32 to vector<1x256xi32>
    %669 = arith.addi %14, %668 : vector<1x256xi32>
    %c16_i32_252 = arith.constant 16 : i32
    %670 = vector.broadcast %c16_i32_252 : i32 to vector<1x256xi32>
    %671 = arith.cmpi slt, %669, %670 : vector<1x256xi32>
    %672 = arith.andi %667, %671 : vector<1x256xi1>
    %cst_253 = arith.constant 0.000000e+00 : f32
    %673 = vector.shape_cast %672 : vector<1x256xi1> to vector<1x256xi1>
    %674 = vector.broadcast %673 : vector<1x256xi1> to vector<8x256xi1>
    %675 = vector.broadcast %cst_253 : f32 to vector<8x256xf32>
    %676 = arith.select %674, %663, %675 : vector<8x256xi1>, vector<8x256xf32>
    %677 = arith.addf %662, %676 : vector<8x256xf32>
    %c208_i32 = arith.constant 208 : i32
    %678 = tpu.dynamic_rotate %495 by %c208_i32 dim 1 : vector<8x256xf32>, i32 -> vector<8x256xf32>
    %c3_i32_254 = arith.constant 3 : i32
    %679 = vector.broadcast %c3_i32_254 : i32 to vector<1x256xi32>
    %680 = arith.addi %14, %679 : vector<1x256xi32>
    %c0_i32_255 = arith.constant 0 : i32
    %681 = vector.broadcast %c0_i32_255 : i32 to vector<1x256xi32>
    %682 = arith.cmpi sge, %680, %681 : vector<1x256xi32>
    %c3_i32_256 = arith.constant 3 : i32
    %683 = vector.broadcast %c3_i32_256 : i32 to vector<1x256xi32>
    %684 = arith.addi %14, %683 : vector<1x256xi32>
    %c16_i32_257 = arith.constant 16 : i32
    %685 = vector.broadcast %c16_i32_257 : i32 to vector<1x256xi32>
    %686 = arith.cmpi slt, %684, %685 : vector<1x256xi32>
    %687 = arith.andi %682, %686 : vector<1x256xi1>
    %cst_258 = arith.constant 0.000000e+00 : f32
    %688 = vector.shape_cast %687 : vector<1x256xi1> to vector<1x256xi1>
    %689 = vector.broadcast %688 : vector<1x256xi1> to vector<8x256xi1>
    %690 = vector.broadcast %cst_258 : f32 to vector<8x256xf32>
    %691 = arith.select %689, %678, %690 : vector<8x256xi1>, vector<8x256xf32>
    %692 = arith.addf %677, %691 : vector<8x256xf32>
    %c48_i32 = arith.constant 48 : i32
    %693 = tpu.dynamic_rotate %495 by %c48_i32 dim 1 : vector<8x256xf32>, i32 -> vector<8x256xf32>
    %c-3_i32_259 = arith.constant -3 : i32
    %694 = vector.broadcast %c-3_i32_259 : i32 to vector<1x256xi32>
    %695 = arith.addi %14, %694 : vector<1x256xi32>
    %c0_i32_260 = arith.constant 0 : i32
    %696 = vector.broadcast %c0_i32_260 : i32 to vector<1x256xi32>
    %697 = arith.cmpi sge, %695, %696 : vector<1x256xi32>
    %c-3_i32_261 = arith.constant -3 : i32
    %698 = vector.broadcast %c-3_i32_261 : i32 to vector<1x256xi32>
    %699 = arith.addi %14, %698 : vector<1x256xi32>
    %c16_i32_262 = arith.constant 16 : i32
    %700 = vector.broadcast %c16_i32_262 : i32 to vector<1x256xi32>
    %701 = arith.cmpi slt, %699, %700 : vector<1x256xi32>
    %702 = arith.andi %697, %701 : vector<1x256xi1>
    %cst_263 = arith.constant 0.000000e+00 : f32
    %703 = vector.shape_cast %702 : vector<1x256xi1> to vector<1x256xi1>
    %704 = vector.broadcast %703 : vector<1x256xi1> to vector<8x256xi1>
    %705 = vector.broadcast %cst_263 : f32 to vector<8x256xf32>
    %706 = arith.select %704, %693, %705 : vector<8x256xi1>, vector<8x256xf32>
    %707 = arith.addf %692, %706 : vector<8x256xf32>
    %c192_i32 = arith.constant 192 : i32
    %708 = tpu.dynamic_rotate %495 by %c192_i32 dim 1 : vector<8x256xf32>, i32 -> vector<8x256xf32>
    %c4_i32_264 = arith.constant 4 : i32
    %709 = vector.broadcast %c4_i32_264 : i32 to vector<1x256xi32>
    %710 = arith.addi %14, %709 : vector<1x256xi32>
    %c0_i32_265 = arith.constant 0 : i32
    %711 = vector.broadcast %c0_i32_265 : i32 to vector<1x256xi32>
    %712 = arith.cmpi sge, %710, %711 : vector<1x256xi32>
    %c4_i32_266 = arith.constant 4 : i32
    %713 = vector.broadcast %c4_i32_266 : i32 to vector<1x256xi32>
    %714 = arith.addi %14, %713 : vector<1x256xi32>
    %c16_i32_267 = arith.constant 16 : i32
    %715 = vector.broadcast %c16_i32_267 : i32 to vector<1x256xi32>
    %716 = arith.cmpi slt, %714, %715 : vector<1x256xi32>
    %717 = arith.andi %712, %716 : vector<1x256xi1>
    %cst_268 = arith.constant 0.000000e+00 : f32
    %718 = vector.shape_cast %717 : vector<1x256xi1> to vector<1x256xi1>
    %719 = vector.broadcast %718 : vector<1x256xi1> to vector<8x256xi1>
    %720 = vector.broadcast %cst_268 : f32 to vector<8x256xf32>
    %721 = arith.select %719, %708, %720 : vector<8x256xi1>, vector<8x256xf32>
    %722 = arith.addf %707, %721 : vector<8x256xf32>
    %c64_i32 = arith.constant 64 : i32
    %723 = tpu.dynamic_rotate %495 by %c64_i32 dim 1 : vector<8x256xf32>, i32 -> vector<8x256xf32>
    %c-4_i32_269 = arith.constant -4 : i32
    %724 = vector.broadcast %c-4_i32_269 : i32 to vector<1x256xi32>
    %725 = arith.addi %14, %724 : vector<1x256xi32>
    %c0_i32_270 = arith.constant 0 : i32
    %726 = vector.broadcast %c0_i32_270 : i32 to vector<1x256xi32>
    %727 = arith.cmpi sge, %725, %726 : vector<1x256xi32>
    %c-4_i32_271 = arith.constant -4 : i32
    %728 = vector.broadcast %c-4_i32_271 : i32 to vector<1x256xi32>
    %729 = arith.addi %14, %728 : vector<1x256xi32>
    %c16_i32_272 = arith.constant 16 : i32
    %730 = vector.broadcast %c16_i32_272 : i32 to vector<1x256xi32>
    %731 = arith.cmpi slt, %729, %730 : vector<1x256xi32>
    %732 = arith.andi %727, %731 : vector<1x256xi1>
    %cst_273 = arith.constant 0.000000e+00 : f32
    %733 = vector.shape_cast %732 : vector<1x256xi1> to vector<1x256xi1>
    %734 = vector.broadcast %733 : vector<1x256xi1> to vector<8x256xi1>
    %735 = vector.broadcast %cst_273 : f32 to vector<8x256xf32>
    %736 = arith.select %734, %723, %735 : vector<8x256xi1>, vector<8x256xf32>
    %737 = arith.addf %722, %736 : vector<8x256xf32>
    %cst_274 = arith.constant 0.0123456791 : f32
    %738 = vector.broadcast %cst_274 : f32 to vector<8x256xf32>
    %739 = arith.mulf %737, %738 : vector<8x256xf32>
    %c240_i32_275 = arith.constant 240 : i32
    %740 = tpu.dynamic_rotate %555 by %c240_i32_275 dim 1 : vector<8x256xf32>, i32 -> vector<8x256xf32>
    %c1_i32_276 = arith.constant 1 : i32
    %741 = vector.broadcast %c1_i32_276 : i32 to vector<1x256xi32>
    %742 = arith.addi %14, %741 : vector<1x256xi32>
    %c0_i32_277 = arith.constant 0 : i32
    %743 = vector.broadcast %c0_i32_277 : i32 to vector<1x256xi32>
    %744 = arith.cmpi sge, %742, %743 : vector<1x256xi32>
    %c1_i32_278 = arith.constant 1 : i32
    %745 = vector.broadcast %c1_i32_278 : i32 to vector<1x256xi32>
    %746 = arith.addi %14, %745 : vector<1x256xi32>
    %c16_i32_279 = arith.constant 16 : i32
    %747 = vector.broadcast %c16_i32_279 : i32 to vector<1x256xi32>
    %748 = arith.cmpi slt, %746, %747 : vector<1x256xi32>
    %749 = arith.andi %744, %748 : vector<1x256xi1>
    %cst_280 = arith.constant 0.000000e+00 : f32
    %750 = vector.shape_cast %749 : vector<1x256xi1> to vector<1x256xi1>
    %751 = vector.broadcast %750 : vector<1x256xi1> to vector<8x256xi1>
    %752 = vector.broadcast %cst_280 : f32 to vector<8x256xf32>
    %753 = arith.select %751, %740, %752 : vector<8x256xi1>, vector<8x256xf32>
    %754 = arith.addf %555, %753 : vector<8x256xf32>
    %c16_i32_281 = arith.constant 16 : i32
    %755 = tpu.dynamic_rotate %555 by %c16_i32_281 dim 1 : vector<8x256xf32>, i32 -> vector<8x256xf32>
    %c-1_i32_282 = arith.constant -1 : i32
    %756 = vector.broadcast %c-1_i32_282 : i32 to vector<1x256xi32>
    %757 = arith.addi %14, %756 : vector<1x256xi32>
    %c0_i32_283 = arith.constant 0 : i32
    %758 = vector.broadcast %c0_i32_283 : i32 to vector<1x256xi32>
    %759 = arith.cmpi sge, %757, %758 : vector<1x256xi32>
    %c-1_i32_284 = arith.constant -1 : i32
    %760 = vector.broadcast %c-1_i32_284 : i32 to vector<1x256xi32>
    %761 = arith.addi %14, %760 : vector<1x256xi32>
    %c16_i32_285 = arith.constant 16 : i32
    %762 = vector.broadcast %c16_i32_285 : i32 to vector<1x256xi32>
    %763 = arith.cmpi slt, %761, %762 : vector<1x256xi32>
    %764 = arith.andi %759, %763 : vector<1x256xi1>
    %cst_286 = arith.constant 0.000000e+00 : f32
    %765 = vector.shape_cast %764 : vector<1x256xi1> to vector<1x256xi1>
    %766 = vector.broadcast %765 : vector<1x256xi1> to vector<8x256xi1>
    %767 = vector.broadcast %cst_286 : f32 to vector<8x256xf32>
    %768 = arith.select %766, %755, %767 : vector<8x256xi1>, vector<8x256xf32>
    %769 = arith.addf %754, %768 : vector<8x256xf32>
    %c224_i32_287 = arith.constant 224 : i32
    %770 = tpu.dynamic_rotate %555 by %c224_i32_287 dim 1 : vector<8x256xf32>, i32 -> vector<8x256xf32>
    %c2_i32_288 = arith.constant 2 : i32
    %771 = vector.broadcast %c2_i32_288 : i32 to vector<1x256xi32>
    %772 = arith.addi %14, %771 : vector<1x256xi32>
    %c0_i32_289 = arith.constant 0 : i32
    %773 = vector.broadcast %c0_i32_289 : i32 to vector<1x256xi32>
    %774 = arith.cmpi sge, %772, %773 : vector<1x256xi32>
    %c2_i32_290 = arith.constant 2 : i32
    %775 = vector.broadcast %c2_i32_290 : i32 to vector<1x256xi32>
    %776 = arith.addi %14, %775 : vector<1x256xi32>
    %c16_i32_291 = arith.constant 16 : i32
    %777 = vector.broadcast %c16_i32_291 : i32 to vector<1x256xi32>
    %778 = arith.cmpi slt, %776, %777 : vector<1x256xi32>
    %779 = arith.andi %774, %778 : vector<1x256xi1>
    %cst_292 = arith.constant 0.000000e+00 : f32
    %780 = vector.shape_cast %779 : vector<1x256xi1> to vector<1x256xi1>
    %781 = vector.broadcast %780 : vector<1x256xi1> to vector<8x256xi1>
    %782 = vector.broadcast %cst_292 : f32 to vector<8x256xf32>
    %783 = arith.select %781, %770, %782 : vector<8x256xi1>, vector<8x256xf32>
    %784 = arith.addf %769, %783 : vector<8x256xf32>
    %c32_i32_293 = arith.constant 32 : i32
    %785 = tpu.dynamic_rotate %555 by %c32_i32_293 dim 1 : vector<8x256xf32>, i32 -> vector<8x256xf32>
    %c-2_i32_294 = arith.constant -2 : i32
    %786 = vector.broadcast %c-2_i32_294 : i32 to vector<1x256xi32>
    %787 = arith.addi %14, %786 : vector<1x256xi32>
    %c0_i32_295 = arith.constant 0 : i32
    %788 = vector.broadcast %c0_i32_295 : i32 to vector<1x256xi32>
    %789 = arith.cmpi sge, %787, %788 : vector<1x256xi32>
    %c-2_i32_296 = arith.constant -2 : i32
    %790 = vector.broadcast %c-2_i32_296 : i32 to vector<1x256xi32>
    %791 = arith.addi %14, %790 : vector<1x256xi32>
    %c16_i32_297 = arith.constant 16 : i32
    %792 = vector.broadcast %c16_i32_297 : i32 to vector<1x256xi32>
    %793 = arith.cmpi slt, %791, %792 : vector<1x256xi32>
    %794 = arith.andi %789, %793 : vector<1x256xi1>
    %cst_298 = arith.constant 0.000000e+00 : f32
    %795 = vector.shape_cast %794 : vector<1x256xi1> to vector<1x256xi1>
    %796 = vector.broadcast %795 : vector<1x256xi1> to vector<8x256xi1>
    %797 = vector.broadcast %cst_298 : f32 to vector<8x256xf32>
    %798 = arith.select %796, %785, %797 : vector<8x256xi1>, vector<8x256xf32>
    %799 = arith.addf %784, %798 : vector<8x256xf32>
    %c208_i32_299 = arith.constant 208 : i32
    %800 = tpu.dynamic_rotate %555 by %c208_i32_299 dim 1 : vector<8x256xf32>, i32 -> vector<8x256xf32>
    %c3_i32_300 = arith.constant 3 : i32
    %801 = vector.broadcast %c3_i32_300 : i32 to vector<1x256xi32>
    %802 = arith.addi %14, %801 : vector<1x256xi32>
    %c0_i32_301 = arith.constant 0 : i32
    %803 = vector.broadcast %c0_i32_301 : i32 to vector<1x256xi32>
    %804 = arith.cmpi sge, %802, %803 : vector<1x256xi32>
    %c3_i32_302 = arith.constant 3 : i32
    %805 = vector.broadcast %c3_i32_302 : i32 to vector<1x256xi32>
    %806 = arith.addi %14, %805 : vector<1x256xi32>
    %c16_i32_303 = arith.constant 16 : i32
    %807 = vector.broadcast %c16_i32_303 : i32 to vector<1x256xi32>
    %808 = arith.cmpi slt, %806, %807 : vector<1x256xi32>
    %809 = arith.andi %804, %808 : vector<1x256xi1>
    %cst_304 = arith.constant 0.000000e+00 : f32
    %810 = vector.shape_cast %809 : vector<1x256xi1> to vector<1x256xi1>
    %811 = vector.broadcast %810 : vector<1x256xi1> to vector<8x256xi1>
    %812 = vector.broadcast %cst_304 : f32 to vector<8x256xf32>
    %813 = arith.select %811, %800, %812 : vector<8x256xi1>, vector<8x256xf32>
    %814 = arith.addf %799, %813 : vector<8x256xf32>
    %c48_i32_305 = arith.constant 48 : i32
    %815 = tpu.dynamic_rotate %555 by %c48_i32_305 dim 1 : vector<8x256xf32>, i32 -> vector<8x256xf32>
    %c-3_i32_306 = arith.constant -3 : i32
    %816 = vector.broadcast %c-3_i32_306 : i32 to vector<1x256xi32>
    %817 = arith.addi %14, %816 : vector<1x256xi32>
    %c0_i32_307 = arith.constant 0 : i32
    %818 = vector.broadcast %c0_i32_307 : i32 to vector<1x256xi32>
    %819 = arith.cmpi sge, %817, %818 : vector<1x256xi32>
    %c-3_i32_308 = arith.constant -3 : i32
    %820 = vector.broadcast %c-3_i32_308 : i32 to vector<1x256xi32>
    %821 = arith.addi %14, %820 : vector<1x256xi32>
    %c16_i32_309 = arith.constant 16 : i32
    %822 = vector.broadcast %c16_i32_309 : i32 to vector<1x256xi32>
    %823 = arith.cmpi slt, %821, %822 : vector<1x256xi32>
    %824 = arith.andi %819, %823 : vector<1x256xi1>
    %cst_310 = arith.constant 0.000000e+00 : f32
    %825 = vector.shape_cast %824 : vector<1x256xi1> to vector<1x256xi1>
    %826 = vector.broadcast %825 : vector<1x256xi1> to vector<8x256xi1>
    %827 = vector.broadcast %cst_310 : f32 to vector<8x256xf32>
    %828 = arith.select %826, %815, %827 : vector<8x256xi1>, vector<8x256xf32>
    %829 = arith.addf %814, %828 : vector<8x256xf32>
    %c192_i32_311 = arith.constant 192 : i32
    %830 = tpu.dynamic_rotate %555 by %c192_i32_311 dim 1 : vector<8x256xf32>, i32 -> vector<8x256xf32>
    %c4_i32_312 = arith.constant 4 : i32
    %831 = vector.broadcast %c4_i32_312 : i32 to vector<1x256xi32>
    %832 = arith.addi %14, %831 : vector<1x256xi32>
    %c0_i32_313 = arith.constant 0 : i32
    %833 = vector.broadcast %c0_i32_313 : i32 to vector<1x256xi32>
    %834 = arith.cmpi sge, %832, %833 : vector<1x256xi32>
    %c4_i32_314 = arith.constant 4 : i32
    %835 = vector.broadcast %c4_i32_314 : i32 to vector<1x256xi32>
    %836 = arith.addi %14, %835 : vector<1x256xi32>
    %c16_i32_315 = arith.constant 16 : i32
    %837 = vector.broadcast %c16_i32_315 : i32 to vector<1x256xi32>
    %838 = arith.cmpi slt, %836, %837 : vector<1x256xi32>
    %839 = arith.andi %834, %838 : vector<1x256xi1>
    %cst_316 = arith.constant 0.000000e+00 : f32
    %840 = vector.shape_cast %839 : vector<1x256xi1> to vector<1x256xi1>
    %841 = vector.broadcast %840 : vector<1x256xi1> to vector<8x256xi1>
    %842 = vector.broadcast %cst_316 : f32 to vector<8x256xf32>
    %843 = arith.select %841, %830, %842 : vector<8x256xi1>, vector<8x256xf32>
    %844 = arith.addf %829, %843 : vector<8x256xf32>
    %c64_i32_317 = arith.constant 64 : i32
    %845 = tpu.dynamic_rotate %555 by %c64_i32_317 dim 1 : vector<8x256xf32>, i32 -> vector<8x256xf32>
    %c-4_i32_318 = arith.constant -4 : i32
    %846 = vector.broadcast %c-4_i32_318 : i32 to vector<1x256xi32>
    %847 = arith.addi %14, %846 : vector<1x256xi32>
    %c0_i32_319 = arith.constant 0 : i32
    %848 = vector.broadcast %c0_i32_319 : i32 to vector<1x256xi32>
    %849 = arith.cmpi sge, %847, %848 : vector<1x256xi32>
    %c-4_i32_320 = arith.constant -4 : i32
    %850 = vector.broadcast %c-4_i32_320 : i32 to vector<1x256xi32>
    %851 = arith.addi %14, %850 : vector<1x256xi32>
    %c16_i32_321 = arith.constant 16 : i32
    %852 = vector.broadcast %c16_i32_321 : i32 to vector<1x256xi32>
    %853 = arith.cmpi slt, %851, %852 : vector<1x256xi32>
    %854 = arith.andi %849, %853 : vector<1x256xi1>
    %cst_322 = arith.constant 0.000000e+00 : f32
    %855 = vector.shape_cast %854 : vector<1x256xi1> to vector<1x256xi1>
    %856 = vector.broadcast %855 : vector<1x256xi1> to vector<8x256xi1>
    %857 = vector.broadcast %cst_322 : f32 to vector<8x256xf32>
    %858 = arith.select %856, %845, %857 : vector<8x256xi1>, vector<8x256xf32>
    %859 = arith.addf %844, %858 : vector<8x256xf32>
    %c176_i32 = arith.constant 176 : i32
    %860 = tpu.dynamic_rotate %555 by %c176_i32 dim 1 : vector<8x256xf32>, i32 -> vector<8x256xf32>
    %c5_i32_323 = arith.constant 5 : i32
    %861 = vector.broadcast %c5_i32_323 : i32 to vector<1x256xi32>
    %862 = arith.addi %14, %861 : vector<1x256xi32>
    %c0_i32_324 = arith.constant 0 : i32
    %863 = vector.broadcast %c0_i32_324 : i32 to vector<1x256xi32>
    %864 = arith.cmpi sge, %862, %863 : vector<1x256xi32>
    %c5_i32_325 = arith.constant 5 : i32
    %865 = vector.broadcast %c5_i32_325 : i32 to vector<1x256xi32>
    %866 = arith.addi %14, %865 : vector<1x256xi32>
    %c16_i32_326 = arith.constant 16 : i32
    %867 = vector.broadcast %c16_i32_326 : i32 to vector<1x256xi32>
    %868 = arith.cmpi slt, %866, %867 : vector<1x256xi32>
    %869 = arith.andi %864, %868 : vector<1x256xi1>
    %cst_327 = arith.constant 0.000000e+00 : f32
    %870 = vector.shape_cast %869 : vector<1x256xi1> to vector<1x256xi1>
    %871 = vector.broadcast %870 : vector<1x256xi1> to vector<8x256xi1>
    %872 = vector.broadcast %cst_327 : f32 to vector<8x256xf32>
    %873 = arith.select %871, %860, %872 : vector<8x256xi1>, vector<8x256xf32>
    %874 = arith.addf %859, %873 : vector<8x256xf32>
    %c80_i32 = arith.constant 80 : i32
    %875 = tpu.dynamic_rotate %555 by %c80_i32 dim 1 : vector<8x256xf32>, i32 -> vector<8x256xf32>
    %c-5_i32_328 = arith.constant -5 : i32
    %876 = vector.broadcast %c-5_i32_328 : i32 to vector<1x256xi32>
    %877 = arith.addi %14, %876 : vector<1x256xi32>
    %c0_i32_329 = arith.constant 0 : i32
    %878 = vector.broadcast %c0_i32_329 : i32 to vector<1x256xi32>
    %879 = arith.cmpi sge, %877, %878 : vector<1x256xi32>
    %c-5_i32_330 = arith.constant -5 : i32
    %880 = vector.broadcast %c-5_i32_330 : i32 to vector<1x256xi32>
    %881 = arith.addi %14, %880 : vector<1x256xi32>
    %c16_i32_331 = arith.constant 16 : i32
    %882 = vector.broadcast %c16_i32_331 : i32 to vector<1x256xi32>
    %883 = arith.cmpi slt, %881, %882 : vector<1x256xi32>
    %884 = arith.andi %879, %883 : vector<1x256xi1>
    %cst_332 = arith.constant 0.000000e+00 : f32
    %885 = vector.shape_cast %884 : vector<1x256xi1> to vector<1x256xi1>
    %886 = vector.broadcast %885 : vector<1x256xi1> to vector<8x256xi1>
    %887 = vector.broadcast %cst_332 : f32 to vector<8x256xf32>
    %888 = arith.select %886, %875, %887 : vector<8x256xi1>, vector<8x256xf32>
    %889 = arith.addf %874, %888 : vector<8x256xf32>
    %c160_i32 = arith.constant 160 : i32
    %890 = tpu.dynamic_rotate %555 by %c160_i32 dim 1 : vector<8x256xf32>, i32 -> vector<8x256xf32>
    %c6_i32_333 = arith.constant 6 : i32
    %891 = vector.broadcast %c6_i32_333 : i32 to vector<1x256xi32>
    %892 = arith.addi %14, %891 : vector<1x256xi32>
    %c0_i32_334 = arith.constant 0 : i32
    %893 = vector.broadcast %c0_i32_334 : i32 to vector<1x256xi32>
    %894 = arith.cmpi sge, %892, %893 : vector<1x256xi32>
    %c6_i32_335 = arith.constant 6 : i32
    %895 = vector.broadcast %c6_i32_335 : i32 to vector<1x256xi32>
    %896 = arith.addi %14, %895 : vector<1x256xi32>
    %c16_i32_336 = arith.constant 16 : i32
    %897 = vector.broadcast %c16_i32_336 : i32 to vector<1x256xi32>
    %898 = arith.cmpi slt, %896, %897 : vector<1x256xi32>
    %899 = arith.andi %894, %898 : vector<1x256xi1>
    %cst_337 = arith.constant 0.000000e+00 : f32
    %900 = vector.shape_cast %899 : vector<1x256xi1> to vector<1x256xi1>
    %901 = vector.broadcast %900 : vector<1x256xi1> to vector<8x256xi1>
    %902 = vector.broadcast %cst_337 : f32 to vector<8x256xf32>
    %903 = arith.select %901, %890, %902 : vector<8x256xi1>, vector<8x256xf32>
    %904 = arith.addf %889, %903 : vector<8x256xf32>
    %c96_i32 = arith.constant 96 : i32
    %905 = tpu.dynamic_rotate %555 by %c96_i32 dim 1 : vector<8x256xf32>, i32 -> vector<8x256xf32>
    %c-6_i32_338 = arith.constant -6 : i32
    %906 = vector.broadcast %c-6_i32_338 : i32 to vector<1x256xi32>
    %907 = arith.addi %14, %906 : vector<1x256xi32>
    %c0_i32_339 = arith.constant 0 : i32
    %908 = vector.broadcast %c0_i32_339 : i32 to vector<1x256xi32>
    %909 = arith.cmpi sge, %907, %908 : vector<1x256xi32>
    %c-6_i32_340 = arith.constant -6 : i32
    %910 = vector.broadcast %c-6_i32_340 : i32 to vector<1x256xi32>
    %911 = arith.addi %14, %910 : vector<1x256xi32>
    %c16_i32_341 = arith.constant 16 : i32
    %912 = vector.broadcast %c16_i32_341 : i32 to vector<1x256xi32>
    %913 = arith.cmpi slt, %911, %912 : vector<1x256xi32>
    %914 = arith.andi %909, %913 : vector<1x256xi1>
    %cst_342 = arith.constant 0.000000e+00 : f32
    %915 = vector.shape_cast %914 : vector<1x256xi1> to vector<1x256xi1>
    %916 = vector.broadcast %915 : vector<1x256xi1> to vector<8x256xi1>
    %917 = vector.broadcast %cst_342 : f32 to vector<8x256xf32>
    %918 = arith.select %916, %905, %917 : vector<8x256xi1>, vector<8x256xf32>
    %919 = arith.addf %904, %918 : vector<8x256xf32>
    %cst_343 = arith.constant 5.917160e-03 : f32
    %920 = vector.broadcast %cst_343 : f32 to vector<8x256xf32>
    %921 = arith.mulf %919, %920 : vector<8x256xf32>
    %922 = tpu.concatenate %13, %135, %255, %375, %921, %739, %617 in 0 : vector<8x256xf32>, vector<8x256xf32>, vector<8x256xf32>, vector<8x256xf32>, vector<8x256xf32>, vector<8x256xf32>, vector<8x256xf32> -> vector<56x256xf32>
    %c0_344 = arith.constant 0 : index
    %c0_345 = arith.constant 0 : index
    %923 = vector.load %arg4[%c0_344, %c0_345] : memref<8x56xf32, #tpu.memory_space<vmem>>, vector<8x56xf32>
    %cst_346 = arith.constant dense<0.000000e+00> : vector<8x256xf32>
    %924 = tpu.matmul %923, %922, %cst_346 {dimension_numbers = #tpu.dot_dimension_numbers<[1], [0], [0], [1], [0, 0, 1, 1], [], []>} : vector<8x56xf32>, vector<56x256xf32>, vector<8x256xf32> -> vector<8x256xf32>
    %c0_347 = arith.constant 0 : index
    %c0_348 = arith.constant 0 : index
    %925 = vector.load %arg5[%c0_347, %c0_348] : memref<8x1xf32, #tpu.memory_space<vmem>>, vector<8x1xf32>
    %926 = vector.broadcast %925 : vector<8x1xf32> to vector<8x256xf32>
    %927 = arith.addf %924, %926 : vector<8x256xf32>
    %c0_349 = arith.constant 0 : index
    %c0_350 = arith.constant 0 : index
    %928 = vector.load %arg6[%c0_349, %c0_350] : memref<8x56xf32, #tpu.memory_space<vmem>>, vector<8x56xf32>
    %cst_351 = arith.constant dense<0.000000e+00> : vector<8x256xf32>
    %929 = tpu.matmul %928, %922, %cst_351 {dimension_numbers = #tpu.dot_dimension_numbers<[1], [0], [0], [1], [0, 0, 1, 1], [], []>} : vector<8x56xf32>, vector<56x256xf32>, vector<8x256xf32> -> vector<8x256xf32>
    %c0_352 = arith.constant 0 : index
    %c0_353 = arith.constant 0 : index
    %930 = vector.load %arg7[%c0_352, %c0_353] : memref<8x1xf32, #tpu.memory_space<vmem>>, vector<8x1xf32>
    %931 = vector.broadcast %930 : vector<8x1xf32> to vector<8x256xf32>
    %932 = arith.addf %929, %931 : vector<8x256xf32>
    %c0_354 = arith.constant 0 : index
    %c0_355 = arith.constant 0 : index
    %933 = vector.load %arg8[%c0_354, %c0_355] : memref<56x56xf32, #tpu.memory_space<vmem>>, vector<56x56xf32>
    %cst_356 = arith.constant dense<0.000000e+00> : vector<56x256xf32>
    %934 = tpu.matmul %933, %922, %cst_356 {dimension_numbers = #tpu.dot_dimension_numbers<[1], [0], [0], [1], [0, 0, 1, 1], [], []>} : vector<56x56xf32>, vector<56x256xf32>, vector<56x256xf32> -> vector<56x256xf32>
    %c0_357 = arith.constant 0 : index
    %c0_358 = arith.constant 0 : index
    %935 = vector.load %arg9[%c0_357, %c0_358] : memref<56x1xf32, #tpu.memory_space<vmem>>, vector<56x1xf32>
    %936 = vector.broadcast %935 : vector<56x1xf32> to vector<56x256xf32>
    %937 = arith.addf %934, %936 : vector<56x256xf32>
    %938 = tpu.transpose %927, [1, 0] : vector<8x256xf32> -> vector<256x8xf32>
    %cst_359 = arith.constant dense<0.000000e+00> : vector<256x256xf32>
    %939 = tpu.matmul %938, %932, %cst_359 {dimension_numbers = #tpu.dot_dimension_numbers<[1], [0], [0], [1], [0, 0, 1, 1], [], []>} : vector<256x8xf32>, vector<8x256xf32>, vector<256x256xf32> -> vector<256x256xf32>
    %c0_360 = arith.constant 0 : index
    %c0_361 = arith.constant 0 : index
    %940 = vector.load %arg15[%c0_360, %c0_361] : memref<256x1xi32, #tpu.memory_space<vmem>>, vector<256x1xi32>
    %c0_362 = arith.constant 0 : index
    %c0_363 = arith.constant 0 : index
    %941 = vector.load %arg13[%c0_362, %c0_363] : memref<1x256xi32, #tpu.memory_space<vmem>>, vector<1x256xi32>
    %942 = vector.broadcast %940 : vector<256x1xi32> to vector<256x256xi32>
    %943 = vector.broadcast %941 : vector<1x256xi32> to vector<256x256xi32>
    %944 = arith.cmpi eq, %942, %943 : vector<256x256xi32>
    %c0_364 = arith.constant 0 : index
    %c0_365 = arith.constant 0 : index
    %945 = vector.load %arg16[%c0_364, %c0_365] : memref<256x1xi32, #tpu.memory_space<vmem>>, vector<256x1xi32>
    %c0_366 = arith.constant 0 : index
    %c0_367 = arith.constant 0 : index
    %946 = vector.load %arg14[%c0_366, %c0_367] : memref<1x256xi32, #tpu.memory_space<vmem>>, vector<1x256xi32>
    %947 = vector.broadcast %945 : vector<256x1xi32> to vector<256x256xi32>
    %948 = vector.broadcast %946 : vector<1x256xi32> to vector<256x256xi32>
    %949 = arith.cmpi eq, %947, %948 : vector<256x256xi32>
    %950 = arith.ori %944, %949 : vector<256x256xi1>
    %cst_368 = arith.constant 0xFF800000 : f32
    %951 = vector.broadcast %cst_368 : f32 to vector<256x256xf32>
    %952 = arith.select %950, %939, %951 : vector<256x256xi1>, vector<256x256xf32>
    %cst_369 = arith.constant dense<0xFF800000> : vector<256xf32>
    %953 = vector.multi_reduction <maximumf>, %952, %cst_369 [1] : vector<256x256xf32> to vector<256xf32>
    %954 = vector.shape_cast %953 : vector<256xf32> to vector<256x1xf32>
    %955 = vector.broadcast %954 : vector<256x1xf32> to vector<256x256xf32>
    %956 = arith.subf %952, %955 : vector<256x256xf32>
    %957 = math.exp %956 : vector<256x256xf32>
    %cst_370 = arith.constant dense<0.000000e+00> : vector<256xf32>
    %958 = vector.multi_reduction <add>, %957, %cst_370 [1] : vector<256x256xf32> to vector<256xf32>
    %959 = vector.shape_cast %958 : vector<256xf32> to vector<256x1xf32>
    %960 = tpu.reciprocal %959 {approx = true} : vector<256x1xf32> -> vector<256x1xf32>
    %961 = vector.broadcast %960 : vector<256x1xf32> to vector<256x256xf32>
    %962 = arith.mulf %957, %961 : vector<256x256xf32>
    %cst_371 = arith.constant dense<0.000000e+00> : vector<56x256xf32>
    %963 = tpu.matmul %937, %962, %cst_371 {dimension_numbers = #tpu.dot_dimension_numbers<[1], [1], [0], [0], [0, 0, 1, 0], [], []>} : vector<56x256xf32>, vector<256x256xf32>, vector<56x256xf32> -> vector<56x256xf32>
    %c0_372 = arith.constant 0 : index
    %c0_373 = arith.constant 0 : index
    %964 = vector.load %arg10[%c0_372, %c0_373] : memref<1x1xf32, #tpu.memory_space<vmem>>, vector<1x1xf32>
    %965 = vector.broadcast %964 : vector<1x1xf32> to vector<56x256xf32>
    %966 = arith.mulf %965, %963 : vector<56x256xf32>
    %967 = arith.addf %966, %922 : vector<56x256xf32>
    %c0_374 = arith.constant 0 : index
    %c0_375 = arith.constant 0 : index
    %968 = vector.load %arg11[%c0_374, %c0_375] : memref<16x56xf32, #tpu.memory_space<vmem>>, vector<16x56xf32>
    %cst_376 = arith.constant dense<0.000000e+00> : vector<16x256xf32>
    %969 = tpu.matmul %968, %967, %cst_376 {dimension_numbers = #tpu.dot_dimension_numbers<[1], [0], [0], [1], [0, 0, 1, 1], [], []>} : vector<16x56xf32>, vector<56x256xf32>, vector<16x256xf32> -> vector<16x256xf32>
    %c0_377 = arith.constant 0 : index
    %c0_378 = arith.constant 0 : index
    %970 = vector.load %arg12[%c0_377, %c0_378] : memref<16x1xf32, #tpu.memory_space<vmem>>, vector<16x1xf32>
    %971 = vector.broadcast %970 : vector<16x1xf32> to vector<16x256xf32>
    %972 = arith.addf %969, %971 : vector<16x256xf32>
    %cst_379 = arith.constant 0.000000e+00 : f32
    %973 = vector.broadcast %cst_379 : f32 to vector<16x256xf32>
    %974 = arith.subf %973, %972 : vector<16x256xf32>
    %975 = math.exp %974 : vector<16x256xf32>
    %cst_380 = arith.constant 1.000000e+00 : f32
    %976 = vector.broadcast %cst_380 : f32 to vector<16x256xf32>
    %977 = arith.addf %976, %975 : vector<16x256xf32>
    %978 = tpu.reciprocal %977 {approx = true} : vector<16x256xf32> -> vector<16x256xf32>
    %979 = arith.mulf %972, %978 : vector<16x256xf32>
    %c0_381 = arith.constant 0 : index
    %c0_382 = arith.constant 0 : index
    %c0_383 = arith.constant 0 : index
    %980 = vector.load %arg17[%c0_381, %c0_382, %c0_383] : memref<1x16x256xf32, #tpu.memory_space<vmem>>, vector<1x16x256xf32>
    %981 = vector.shape_cast %980 : vector<1x16x256xf32> to vector<16x256xf32>
    %982 = vector.shape_cast %979 : vector<16x256xf32> to vector<1x16x256xf32>
    tpu.vector_store %arg17[%c0_381, %c0_382, %c0_383], %982 {strides = array<i32>} : memref<1x16x256xf32, #tpu.memory_space<vmem>>, vector<1x16x256xf32>,
    return
  }
  func.func @transform_0(%arg0: i32) -> (i32, i32, i32) {
    %c0_i32 = arith.constant 0 : i32
    %c0_i32_0 = arith.constant 0 : i32
    %c0_i32_1 = arith.constant 0 : i32
    return %arg0, %c0_i32, %c0_i32_0 : i32, i32, i32
  }
  func.func @transform_1(%arg0: i32) -> (i32, i32) {
    %c0_i32 = arith.constant 0 : i32
    %c0_i32_0 = arith.constant 0 : i32
    %c0_i32_1 = arith.constant 0 : i32
    return %c0_i32, %c0_i32_0 : i32, i32
  }
  func.func @transform_2(%arg0: i32) -> (i32, i32) {
    %c0_i32 = arith.constant 0 : i32
    %c0_i32_0 = arith.constant 0 : i32
    %c0_i32_1 = arith.constant 0 : i32
    return %c0_i32, %c0_i32_0 : i32, i32
  }
  func.func @transform_3(%arg0: i32) -> (i32, i32) {
    %c0_i32 = arith.constant 0 : i32
    %c0_i32_0 = arith.constant 0 : i32
    %c0_i32_1 = arith.constant 0 : i32
    return %c0_i32, %c0_i32_0 : i32, i32
  }
  func.func @transform_4(%arg0: i32) -> (i32, i32) {
    %c0_i32 = arith.constant 0 : i32
    %c0_i32_0 = arith.constant 0 : i32
    %c0_i32_1 = arith.constant 0 : i32
    return %c0_i32, %c0_i32_0 : i32, i32
  }
  func.func @transform_5(%arg0: i32) -> (i32, i32) {
    %c0_i32 = arith.constant 0 : i32
    %c0_i32_0 = arith.constant 0 : i32
    %c0_i32_1 = arith.constant 0 : i32
    return %c0_i32, %c0_i32_0 : i32, i32
  }
  func.func @transform_6(%arg0: i32) -> (i32, i32) {
    %c0_i32 = arith.constant 0 : i32
    %c0_i32_0 = arith.constant 0 : i32
    %c0_i32_1 = arith.constant 0 : i32
    return %c0_i32, %c0_i32_0 : i32, i32
  }
  func.func @transform_7(%arg0: i32) -> (i32, i32) {
    %c0_i32 = arith.constant 0 : i32
    %c0_i32_0 = arith.constant 0 : i32
    %c0_i32_1 = arith.constant 0 : i32
    return %c0_i32, %c0_i32_0 : i32, i32
  }
  func.func @transform_8(%arg0: i32) -> (i32, i32) {
    %c0_i32 = arith.constant 0 : i32
    %c0_i32_0 = arith.constant 0 : i32
    %c0_i32_1 = arith.constant 0 : i32
    return %c0_i32, %c0_i32_0 : i32, i32
  }
  func.func @transform_9(%arg0: i32) -> (i32, i32) {
    %c0_i32 = arith.constant 0 : i32
    %c0_i32_0 = arith.constant 0 : i32
    %c0_i32_1 = arith.constant 0 : i32
    return %c0_i32, %c0_i32_0 : i32, i32
  }
  func.func @transform_10(%arg0: i32) -> (i32, i32) {
    %c0_i32 = arith.constant 0 : i32
    %c0_i32_0 = arith.constant 0 : i32
    %c0_i32_1 = arith.constant 0 : i32
    return %c0_i32, %c0_i32_0 : i32, i32
  }
  func.func @transform_11(%arg0: i32) -> (i32, i32) {
    %c0_i32 = arith.constant 0 : i32
    %c0_i32_0 = arith.constant 0 : i32
    %c0_i32_1 = arith.constant 0 : i32
    return %c0_i32, %c0_i32_0 : i32, i32
  }
  func.func @transform_12(%arg0: i32) -> (i32, i32) {
    %c0_i32 = arith.constant 0 : i32
    %c0_i32_0 = arith.constant 0 : i32
    %c0_i32_1 = arith.constant 0 : i32
    return %c0_i32, %c0_i32_0 : i32, i32
  }
  func.func @transform_13(%arg0: i32) -> (i32, i32) {
    %c0_i32 = arith.constant 0 : i32
    %c0_i32_0 = arith.constant 0 : i32
    %c0_i32_1 = arith.constant 0 : i32
    return %c0_i32, %c0_i32_0 : i32, i32
  }
  func.func @transform_14(%arg0: i32) -> (i32, i32) {
    %c0_i32 = arith.constant 0 : i32
    %c0_i32_0 = arith.constant 0 : i32
    %c0_i32_1 = arith.constant 0 : i32
    return %c0_i32, %c0_i32_0 : i32, i32
  }
  func.func @transform_15(%arg0: i32) -> (i32, i32) {
    %c0_i32 = arith.constant 0 : i32
    %c0_i32_0 = arith.constant 0 : i32
    %c0_i32_1 = arith.constant 0 : i32
    return %c0_i32, %c0_i32_0 : i32, i32
  }
  func.func @transform_16(%arg0: i32) -> (i32, i32, i32) {
    %c0_i32 = arith.constant 0 : i32
    %c0_i32_0 = arith.constant 0 : i32
    %c0_i32_1 = arith.constant 0 : i32
    return %arg0, %c0_i32, %c0_i32_0 : i32, i32, i32
  }
}

</mosaic_0001>

<bundles_post_ra>
// kernel: sppf_forward.1
= control target key start
LH: loop header
LB: loop body
LE: loop exit
PB: predicated region body
PF: predicated region fallthrough
CT: control target
= control target key end

     0   :  { %s3810_s23 = smov 0   ;;  %s6591_s0 = inlined_call_operand.vmem [shape: f32[2,16,256], index: 0, kind: input, shape index: {}]   ;;  %s6592_s1 = inlined_call_operand.vmem [shape: f32[8,16], index: 1, kind: input, shape index: {}]   ;;  %s6593_s2 = inlined_call_operand.vmem [shape: f32[8,1], index: 2, kind: input, shape index: {}]   ;;  %s6594_s3 = inlined_call_operand.vmem [shape: f32[8,56], index: 3, kind: input, shape index: {}]   ;;  %s6595_s4 = inlined_call_operand.vmem [shape: f32[8,1], index: 4, kind: input, shape index: {}]   ;;  %s6596_s5 = inlined_call_operand.vmem [shape: f32[8,56], index: 5, kind: input, shape index: {}]   ;;  %s6597_s6 = inlined_call_operand.vmem [shape: f32[8,1], index: 6, kind: input, shape index: {}]   ;;  %s6598_s7 = inlined_call_operand.vmem [shape: f32[56,56], index: 7, kind: input, shape index: {}]   ;;  %s6599_s8 = inlined_call_operand.vmem [shape: f32[56,1], index: 8, kind: input, shape index: {}]   ;;  %s6600_s9 = inlined_call_operand.<no memory space> [shape: f32[1,1], index: 9, kind: input, shape index: {}]   ;;  %s6601_s10 = inlined_call_operand.vmem [shape: f32[16,56], index: 10, kind: input, shape index: {}]   ;;  %s6602_s11 = inlined_call_operand.vmem [shape: f32[16,1], index: 11, kind: input, shape index: {}]   ;;  %s6603_s12 = inlined_call_operand.vmem [shape: s32[1,256], index: 12, kind: input, shape index: {}]   ;;  %s6604_s13 = inlined_call_operand.vmem [shape: s32[1,256], index: 13, kind: input, shape index: {}]   ;;  %s6605_s14 = inlined_call_operand.vmem [shape: s32[256,1], index: 14, kind: input, shape index: {}]   ;;  %s6606_s15 = inlined_call_operand.vmem [shape: s32[256,1], index: 15, kind: input, shape index: {}]   ;;  %s6607_s16 = inlined_call_operand.vmem [shape: f32[2,16,256], index: 16, kind: output, shape index: {}]  }
   0x1   :  { %6729 = sst [smem:[#allocation49_spill]] %s6591_s0  ;;  %v21_v0 = vstv %s6600_s9 }
   0x2   :  { %22 = vst [vmem:[#allocation2] sm:$0x1] %v21_v0 }
   0x3 LB: > { %s3342_s24 = sadd.s32 4294967295, %s3700_s23   ;;  %p3346_p0 = scmp.ge.s32.totalorder %s3700_s23, 1  ;;  %s3700_s23 = sphi %s3810_s23, %s28_s23  }
   0x4   : > { %p464_p1 = scmp.lt.s32.totalorder %s3700_s23, 3 }
   0x6   : > { %p465_p2 = pnand %p3346_p0, %p464_p1 }
   0x8   : > { %468 = sbr.rel (%p465_p2) target bundleno = 2386 (0x952), region = 84 }
   0xd   : > { %p514_p3 = scmp.lt.s32.totalorder %s3342_s24, 1  ;;  %v529_v1 = vld [vmem:[%s6593_s2] sm:$0xff]  ;;  %v6646_v2 = vmov 0   ;;  %s6730_s29 = sld [smem:[#allocation49_spill]]  ;;  %vm535_vm0 = vcmask 130048   ;;  %v597_v29 = vlaneseq  ;;  %v6733_v44 = vmov 0 }
   0xe   : > { %3472 = vset.pattern.permute.xlu0 %v6646_v2  ;;  %3474 = vset.pattern.permute.xlu1 %v6646_v2  ;;  %v528_v7 = vld [vmem:[%s6592_s1] sm:$0xff]  ;;  %s3703_s18 = smov 2   ;;  %s3704_s19 = smov 1   ;;  %v6735_v45 = vmov 0  ;;  %v6737_v49 = vmov 0  ;;  %v6739_v50 = vmov 0 }
   0xf   : > { %s7180_s24 = smov (!%p514_p3, %s3342_s24), 1  ;;  %532 = vperm.xlu0 %3472, %v529_v1   ;;  %3473 = vset.pattern.permute.xlu2 %v6646_v2  ;;  %s3705_s20 = smov 127   ;;  %v3868_v25 = vld [vmem:[%s6604_s13] sm:$0x3]  ;;  %v3875_v33 = vand.u32 127, %v597_v29  ;;  %v6741_v51 = vmov 0 }
  0x10   : > { %s3441_s9 = sshll.u32 %s7180_s24, 5  ;;  %s3706_s21 = smov 125   ;;  %v602_v26 = vadd.s32 4294967294, %v3868_v25  ;;  %v622_v27 = vadd.s32 4294967295, %v3868_v25  ;;  %v642_v28 = vadd.s32 1, %v3868_v25  ;;  %v662_v32 = vadd.s32 2, %v3868_v25 }
  0x11   : > { %s3707_s22 = smov 126   ;;  %s3708_s25 = smov 3   ;;  %vm6611_vm12 = vcmp.lt.s32.totalorder %v3875_v33, 2  ;;  %v6743_v52 = vmov 0 }
  0x12   : > { %s3709_s26 = smov 4   ;;  %s3710_s27 = smov 124   ;;  %vm603_vm1 = vcmp.ge.s32.totalorder %v602_v26, 0  ;;  %vm604_vm2 = vcmp.lt.s32.totalorder %v602_v26, 16  ;;  %vm623_vm3 = vcmp.ge.s32.totalorder %v622_v27, 0  ;;  %vm624_vm4 = vcmp.lt.s32.totalorder %v622_v27, 16 }
  0x13   : > { %s518_s30 = scalar_lea.vmem %s6730_s29, %s3441_s9  ;;  %s3711_s28 = smov 123   ;;  %vm605_vm5 = vmand %vm603_vm1, %vm604_vm2  ;;  %vm643_vm6 = vcmp.ge.s32.totalorder %v642_v28, 0  ;;  %vm644_vm7 = vcmp.lt.s32.totalorder %v642_v28, 16  ;;  %vm663_vm10 = vcmp.ge.s32.totalorder %v662_v32, 0  ;;  %vm664_vm11 = vcmp.lt.s32.totalorder %v662_v32, 16 }
  0x14   : > { %v526_v3 = vld [vmem:[%s518_s30 + $0x10] sm:$0xff]  ;;  %v527_v4 = vld [vmem:[%s518_s30 + $0x18] sm:$0xff]  ;;  %v524_v5 = vld [vmem:[%s518_s30] sm:$0xff]  ;;  %v606_v31 = vsel %vm605_vm5, 1, %v6646_v2  ;;  %vm6610_vm1 = vcmp.lt.s32.totalorder %v3875_v33, 1  ;;  %s3712_s0 = smov 32  }
  0x15   : > { %553 = vmatpush.msra.mxu2 %v526_v3  ;;  %573 = vmatpush.msra.mxu3 %v527_v4  ;;  %v525_v6 = vld [vmem:[%s518_s30 + $0x8] sm:$0xff]  ;;  %vm625_vm8 = vmand %vm623_vm3, %vm624_vm4  ;;  %v607_v37 = vperm.slane %v606_v31, 0  ;;  %v608_v39 = vperm.slane %v606_v31, 1  ;;  %s3713_s17 = smov 16   ;;  %s3718_s29 = smov 122  }
  0x16   : > { %vm645_vm9 = vmand %vm643_vm6, %vm644_vm7  ;;  %v626_v35 = vsel %vm625_vm8, 1, %v6646_v2  ;;  %vm6608_vm6 = vcmp.lt.s32.totalorder %v3875_v33, 126  ;;  %s523_s30 = scalar_lea.vmem %s6607_s16, %s3441_s9 }
  0x17   : > { %554 = vmatpush.msra.mxu2 %v524_v5  ;;  %574 = vmatpush.msra.mxu3 %v525_v6  ;;  %v646_v38 = vsel %vm645_vm9, 1, %v6646_v2  ;;  %v627_v40 = vperm.slane %v626_v35, 0  ;;  %v628_v41 = vperm.slane %v626_v35, 1  ;;  %vm3880_vm13 = vcmp.eq.s32.totalorder %v607_v37, 1  ;;  %vm665_vm14 = vmand %vm663_vm10, %vm664_vm11 }
  0x18   : > { %3351 = vmatmul.msk.f32.vlgmr.msra.gmra.mxu2 %vm535_vm0, %v528_v7  ;;  %3352 = vmatmul.msk.f32.vlgmr.msra.gmra.mxu3 %vm535_vm0, %v528_v7  ;;  %v647_v42 = vperm.slane %v646_v38, 0  ;;  %v648_v43 = vperm.slane %v646_v38, 1  ;;  %v6734_v44 = vsel %vm3880_vm13, 4294967295, %v6733_v44  ;;  %vm3884_vm15 = vcmp.eq.s32.totalorder %v608_v39, 1 }
  0x19   : > { %v6736_v45 = vsel %vm3884_vm15, 4294967295, %v6735_v45  ;;  %vm6609_vm0 = vcmp.lt.s32.totalorder %v3875_v33, 127  ;;  %vm3894_vm2 = vcmp.eq.s32.totalorder %v627_v40, 1  ;;  %vm3898_vm3 = vcmp.eq.s32.totalorder %v628_v41, 1 }
  0x1a   : > { %v6738_v49 = vsel %vm3894_vm2, 4294967295, %v6737_v49  ;;  %v6740_v50 = vsel %vm3898_vm3, 4294967295, %v6739_v50  ;;  %vm3902_vm4 = vcmp.eq.s32.totalorder %v647_v42, 1  ;;  %vm3906_vm5 = vcmp.eq.s32.totalorder %v648_v43, 1 }
  0x1b   : > { %v6742_v51 = vsel %vm3902_vm4, 4294967295, %v6741_v51  ;;  %v6744_v52 = vsel %vm3906_vm5, 4294967295, %v6743_v52  ;;  %v666_v54 = vsel %vm665_vm14, 1, %v6646_v2 }
  0x1c   : > { %v667_v0 = vperm.slane %v666_v54, 0  ;;  %v668_v1 = vperm.slane %v666_v54, 1 }
  0x1e   : > { %vm3940_vm7 = vcmp.eq.s32.totalorder %v667_v0, 1  ;;  %vm3944_vm8 = vcmp.eq.s32.totalorder %v668_v1, 1 }
  0x81   : > { %v533_v8 = vpop.permute.xlu0 %532 }
  0x9b   : > { %v556_v9 = vpop.f32.mrf.mxu2  ;;  %v576_v10 = vpop.f32.mrf.mxu3 }
  0x9c   : > { %v557_v11 = vadd.f32 %v556_v9, %v533_v8  ;;  %v577_v12 = vadd.f32 %v576_v10, %v533_v8 }
  0x9e   : > { %v579_v13 = vsub.f32 0.0, %v557_v11  ;;  %v580_v14 = vsub.f32 0.0, %v577_v12 }
  0xa0   : > { %v581_v15 = vmul.f32 1.442695, %v579_v13  ;;  %v583_v16 = vmul.f32 1.442695, %v580_v14 }
  0xa2   : > { %3476 = vpow2.f32 %v581_v15  ;;  %v6745_v15 = vmov 0 }
  0xa3   : > { %3478 = vpow2.f32 %v583_v16  ;;  %v6746_v15 = vsel %vm3940_vm7, 4294967295, %v6745_v15  ;;  %v6747_v16 = vmov 0 }
  0xa4   : > { %v6748_v16 = vsel %vm3944_vm8, 4294967295, %v6747_v16 }
  0xa8   : > { %v3477_v17 = vpop.eup %3476 }
  0xa9   : > { %v3479_v18 = vpop.eup %3478  ;;  %v585_v19 = vadd.f32 1.0, %v3477_v17 }
  0xaa   : > { %v586_v20 = vadd.f32 1.0, %v3479_v18 }
  0xab   : > { %3480 = vrcp.f32 %v585_v19 }
  0xac   : > { %3482 = vrcp.f32 %v586_v20 }
  0xb1   : > { %v3481_v21 = vpop.eup %3480 }
  0xb2   : > { %v3483_v22 = vpop.eup %3482  ;;  %v3835_v23 = vmul.f32 %v3481_v21, %v557_v11 }
  0xb3   : > { %v3837_v24 = vmul.f32 %v3483_v22, %v577_v12 }
  0xb4   : > { %6731 = vst [vmem:[#allocation3_spill] sm:$0xff] %v3835_v23  ;;  %593 = vrot.lane.b32.xlu0 %v3835_v23, %s3703_s18 }
  0xb5   : > { %6732 = vst [vmem:[#allocation4_spill] sm:$0xff] %v3837_v24  ;;  %617 = vrot.lane.b32.xlu2 %v3837_v24, %s3704_s19  ;;  %595 = vrot.lane.b32.xlu1 %v3837_v24, %s3703_s18 }
  0xbc   : > { %637 = vrot.lane.b32.xlu0 %v3837_v24, %s3705_s20 }
  0xbd   : > { %635 = vrot.lane.b32.xlu2 %v3835_v23, %s3705_s20  ;;  %615 = vrot.lane.b32.xlu1 %v3835_v23, %s3704_s19 }
  0xc4   : > { %931 = vrot.lane.b32.xlu0 %v3835_v23, %s3706_s21 }
  0xc5   : > { %657 = vrot.lane.b32.xlu2 %v3837_v24, %s3707_s22  ;;  %655 = vrot.lane.b32.xlu1 %v3835_v23, %s3707_s22 }
  0xcc   : > { %953 = vrot.lane.b32.xlu0 %v3837_v24, %s3708_s25 }
  0xcd   : > { %951 = vrot.lane.b32.xlu2 %v3835_v23, %s3708_s25  ;;  %933 = vrot.lane.b32.xlu1 %v3837_v24, %s3706_s21  ;;  %s3714_s21 = smov 112   ;;  %s3715_s25 = smov 96  }
  0xd4   : > { %991 = vrot.lane.b32.xlu0 %v3835_v23, %s3709_s26 }
  0xd5   : > { %973 = vrot.lane.b32.xlu2 %v3837_v24, %s3710_s27  ;;  %971 = vrot.lane.b32.xlu1 %v3835_v23, %s3710_s27  ;;  %s3717_s27 = smov 6  }
  0xdd   : > { %1011 = vrot.lane.b32.xlu2 %v3835_v23, %s3711_s28  ;;  %993 = vrot.lane.b32.xlu1 %v3837_v24, %s3709_s26  ;;  %s3716_s26 = smov 5  }
 0x10f   : > { %v618_v30 = vpop.permute.xlu2 %617 }
 0x117   : > { %v636_v48 = vpop.permute.xlu2 %635 }
 0x11f   : > { %v658_v17 = vpop.permute.xlu2 %657 }
 0x126   : > { %v594_v34 = vpop.permute.xlu0 %593 }
 0x127   : > { %v596_v36 = vpop.permute.xlu1 %595  ;;  %v4004_v43 = vpop.permute.xlu2 %951 }
 0x128   : > { %v600_v46 = vsel %vm6611_vm12, %v594_v34, %v596_v36  ;;  %v601_v47 = vsel %vm6611_vm12, %v596_v36, %v594_v34 }
 0x129   : > { %v611_v55 = vsel %vm3880_vm13, %v601_v47, -inf  ;;  %v612_v56 = vsel %vm3884_vm15, %v600_v46, -inf  ;;  %v927_v37 = vsel %vm3880_vm13, %v601_v47, 0.0  ;;  %v928_v38 = vsel %vm3884_vm15, %v600_v46, 0.0 }
 0x12a   : > { %v613_v3 = vmax.f32 %v3835_v23, %v611_v55  ;;  %v614_v4 = vmax.f32 %v3837_v24, %v612_v56  ;;  %v938_v55 = vadd.s32 3, %v3868_v25 }
 0x12c   : > { %vm939_vm11 = vcmp.ge.s32.totalorder %v938_v55, 0  ;;  %vm940_vm14 = vcmp.lt.s32.totalorder %v938_v55, 16 }
 0x12d   : > { %vm941_vm12 = vmand %vm939_vm11, %vm940_vm14  ;;  %vm935_vm14 = vcmp.lt.s32.totalorder %v3875_v33, 125 }
 0x12e   : > { %v638_v53 = vpop.permute.xlu0 %637  ;;  %v942_v1 = vsel %vm941_vm12, 1, %v6646_v2  ;;  %vm6625_vm12 = vcmp.lt.s32.totalorder %v3875_v33, 32 }
 0x12f   : > { %v616_v57 = vpop.permute.xlu1 %615  ;;  %v640_v58 = vsel %vm6609_vm0, %v636_v48, %v638_v53  ;;  %v641_v59 = vsel %vm6609_vm0, %v638_v53, %v636_v48  ;;  %v4010_v48 = vpop.permute.xlu2 %973  ;;  %v4015_v53 = vld [vmem:[%s6603_s12] sm:$0x3] }
 0x130   : > { %v620_v60 = vsel %vm6610_vm1, %v616_v57, %v618_v30  ;;  %v621_v61 = vsel %vm6610_vm1, %v618_v30, %v616_v57  ;;  %v915_v5 = vsel %vm3902_vm4, %v640_v58, 0.0  ;;  %v916_v6 = vsel %vm3906_vm5, %v641_v59, 0.0 }
 0x131   : > { %v631_v62 = vsel %vm3894_vm2, %v621_v61, -inf  ;;  %v632_v63 = vsel %vm3898_vm3, %v620_v60, -inf  ;;  %v917_v7 = vadd.f32 %v915_v5, %v3835_v23  ;;  %v918_v8 = vadd.f32 %v916_v6, %v3837_v24 }
 0x132   : > { %v633_v9 = vmax.f32 %v613_v3, %v631_v62  ;;  %v634_v10 = vmax.f32 %v614_v4, %v632_v63  ;;  %v919_v11 = vsel %vm3894_vm2, %v621_v61, 0.0  ;;  %v920_v12 = vsel %vm3898_vm3, %v620_v60, 0.0 }
 0x133   : > { %v921_v13 = vadd.f32 %v919_v11, %v917_v7  ;;  %v922_v14 = vadd.f32 %v920_v12, %v918_v8  ;;  %v651_v18 = vsel %vm3902_vm4, %v640_v58, -inf  ;;  %v652_v19 = vsel %vm3906_vm5, %v641_v59, -inf }
 0x134   : > { %v653_v21 = vmax.f32 %v633_v9, %v651_v18  ;;  %v654_v22 = vmax.f32 %v634_v10, %v652_v19  ;;  %v682_v54 = vadd.s32 4294967294, %v4015_v53  ;;  %v702_v56 = vadd.s32 4294967295, %v4015_v53 }
 0x135   : > { %v958_v58 = vadd.s32 4294967293, %v3868_v25  ;;  %v978_v61 = vadd.s32 4, %v3868_v25  ;;  %v722_v62 = vadd.s32 1, %v4015_v53  ;;  %v742_v0 = vadd.s32 2, %v4015_v53 }
 0x136   : > { %v4002_v42 = vpop.permute.xlu0 %931  ;;  %vm683_vm9 = vcmp.ge.s32.totalorder %v682_v54, 0  ;;  %vm684_vm10 = vcmp.lt.s32.totalorder %v682_v54, 16  ;;  %vm703_vm0 = vcmp.ge.s32.totalorder %v702_v56, 0  ;;  %vm704_vm1 = vcmp.lt.s32.totalorder %v702_v56, 16 }
 0x137   : > { %v656_v20 = vpop.permute.xlu1 %655  ;;  %v4025_v60 = vpop.permute.xlu2 %1011  ;;  %vm705_vm5 = vmand %vm703_vm0, %vm704_vm1  ;;  %vm979_vm4 = vcmp.ge.s32.totalorder %v978_v61, 0  ;;  %vm980_vm3 = vcmp.lt.s32.totalorder %v978_v61, 16  ;;  %v998_v3 = vadd.s32 4294967292, %v3868_v25  ;;  %vm744_vm0 = vcmp.lt.s32.totalorder %v742_v0, 16 }
 0x138   : > { %v660_v26 = vsel %vm6608_vm6, %v656_v20, %v658_v17  ;;  %v661_v27 = vsel %vm6608_vm6, %v658_v17, %v656_v20  ;;  %vm685_vm6 = vmand %vm683_vm9, %vm684_vm10  ;;  %vm723_vm9 = vcmp.ge.s32.totalorder %v722_v62, 0  ;;  %vm724_vm10 = vcmp.lt.s32.totalorder %v722_v62, 16 }
 0x139   : > { %v671_v28 = vsel %vm3940_vm7, %v660_v26, -inf  ;;  %v672_v29 = vsel %vm3944_vm8, %v661_v27, -inf  ;;  %v923_v30 = vsel %vm3940_vm7, %v660_v26, 0.0  ;;  %v924_v31 = vsel %vm3944_vm8, %v661_v27, 0.0  ;;  %vm981_vm11 = vmand %vm979_vm4, %vm980_vm3 }
 0x13a   : > { %v3964_v32 = vmax.f32 %v653_v21, %v671_v28  ;;  %v3966_v34 = vmax.f32 %v654_v22, %v672_v29  ;;  %v925_v35 = vadd.f32 %v923_v30, %v921_v13  ;;  %v926_v36 = vadd.f32 %v924_v31, %v922_v14  ;;  %vm725_vm1 = vmand %vm723_vm9, %vm724_vm10 }
 0x13b   : > { %vm959_vm8 = vcmp.ge.s32.totalorder %v958_v58, 0  ;;  %vm960_vm7 = vcmp.lt.s32.totalorder %v958_v58, 16  ;;  %v686_v63 = vsel %vm685_vm6, 1, %v6646_v2  ;;  %v706_v7 = vsel %vm705_vm5, 1, %v6646_v2 }
 0x13c   : > { %v3972_v39 = vadd.f32 %v927_v37, %v925_v35  ;;  %v3974_v40 = vadd.f32 %v928_v38, %v926_v36  ;;  %677 = vrot.lane.b32.xlu1 %v3966_v34, %s3712_s0  ;;  %695 = vrot.lane.b32.xlu2 %v3964_v32, %s3713_s17  ;;  %vm961_vm2 = vmand %vm959_vm8, %vm960_vm7  ;;  %v687_v5 = vperm.slane %v686_v63, 0  ;;  %v688_v8 = vperm.slane %v686_v63, 1 }
 0x13d   : > { %675 = vrot.lane.b32.xlu0 %v3964_v32, %s3712_s0  ;;  %vm743_vm6 = vcmp.ge.s32.totalorder %v742_v0, 0  ;;  %v943_v9 = vperm.slane %v942_v1, 0  ;;  %v944_v10 = vperm.slane %v942_v1, 1  ;;  %v962_v11 = vsel %vm961_vm2, 1, %v6646_v2 }
 0x13e   : > { %v4008_v47 = vpop.permute.xlu0 %953  ;;  %vm999_vm7 = vcmp.ge.s32.totalorder %v998_v3, 0  ;;  %vm1000_vm8 = vcmp.lt.s32.totalorder %v998_v3, 16  ;;  %v707_v13 = vperm.slane %v706_v7, 0  ;;  %v708_v14 = vperm.slane %v706_v7, 1  ;;  %vm4045_vm4 = vmand %vm743_vm6, %vm744_vm0 }
 0x13f   : > { %v4000_v41 = vpop.permute.xlu1 %933  ;;  %v4038_v17 = vsel %vm981_vm11, 1, %v6646_v2  ;;  %vm4040_vm3 = vcmp.eq.s32.totalorder %v687_v5, 1  ;;  %v6749_v18 = vmov 0  ;;  %vm4049_vm2 = vcmp.eq.s32.totalorder %v688_v8, 1  ;;  %vm4060_vm9 = vmand %vm999_vm7, %vm1000_vm8 }
 0x140   : > { %v6750_v18 = vsel %vm4040_vm3, 4294967295, %v6749_v18  ;;  %v6753_v20 = vmov 0  ;;  %v726_v26 = vsel %vm725_vm1, 1, %v6646_v2  ;;  %v963_v27 = vperm.slane %v962_v11, 0 }
 0x141   : > { %v6754_v20 = vsel %vm4049_vm2, 4294967295, %v6753_v20  ;;  %v964_v28 = vperm.slane %v962_v11, 1  ;;  %vm6624_vm10 = vcmp.lt.s32.totalorder %v3875_v33, 16  ;;  %vm4065_vm11 = vcmp.eq.s32.totalorder %v943_v9, 1 }
 0x142   : > { %vm4069_vm6 = vcmp.eq.s32.totalorder %v944_v10, 1  ;;  %v983_v35 = vperm.slane %v4038_v17, 0  ;;  %vm4074_vm0 = vcmp.eq.s32.totalorder %v707_v13, 1  ;;  %v6761_v37 = vmov 0 }
 0x143   : > { %v6762_v37 = vsel %vm4074_vm0, 4294967295, %v6761_v37  ;;  %vm4078_vm1 = vcmp.eq.s32.totalorder %v708_v14, 1  ;;  %v6763_v38 = vmov 0  ;;  %v746_v54 = vsel %vm4045_vm4, 1, %v6646_v2 }
 0x144   : > { %715 = vrot.lane.b32.xlu1 %v3964_v32, %s3714_s21  ;;  %717 = vrot.lane.b32.xlu2 %v3966_v34, %s3714_s21  ;;  %v6764_v38 = vsel %vm4078_vm1, 4294967295, %v6763_v38  ;;  %v727_v58 = vperm.slane %v726_v26, 0  ;;  %v728_v61 = vperm.slane %v726_v26, 1  ;;  %v984_v63 = vperm.slane %v4038_v17, 1 }
 0x145   : > { %697 = vrot.lane.b32.xlu0 %v3966_v34, %s3713_s17  ;;  %v4094_v0 = vsel %vm4060_vm9, 1, %v6646_v2  ;;  %vm6628_vm8 = vcmp.lt.s32.totalorder %v3875_v33, 112  ;;  %v748_v9 = vperm.slane %v746_v54, 1  ;;  %v1018_v10 = vadd.s32 5, %v3868_v25 }
 0x146   : > { %v4023_v59 = vpop.permute.xlu0 %991  ;;  %vm4108_vm4 = vcmp.eq.s32.totalorder %v963_v27, 1  ;;  %vm4112_vm9 = vcmp.eq.s32.totalorder %v964_v28, 1  ;;  %v1003_v14 = vperm.slane %v4094_v0, 0  ;;  %vm4126_vm7 = vcmp.eq.s32.totalorder %v728_v61, 1 }
 0x147   : > { %v4006_v46 = vpop.permute.xlu1 %971  ;;  %v6773_v19 = vmov 0  ;;  %v936_v28 = vsel %vm935_vm14, %v4002_v42, %v4000_v41  ;;  %v937_v29 = vsel %vm935_vm14, %v4000_v41, %v4002_v42  ;;  %vm6635_vm5 = vcmp.lt.s32.totalorder %v3875_v33, 96 }
 0x148   : > { %v6774_v19 = vsel %vm4126_vm7, 4294967295, %v6773_v19  ;;  %v1058_v61 = vadd.s32 6, %v3868_v25 }
 0x14c   : > { %737 = vrot.lane.b32.xlu1 %v3966_v34, %s3715_s25  ;;  %1033 = vrot.lane.b32.xlu2 %v3837_v24, %s3716_s26 }
 0x14d   : > { %735 = vrot.lane.b32.xlu0 %v3964_v32, %s3715_s25 }
 0x14f   : > { %v4020_v57 = vpop.permute.xlu1 %993 }
 0x154   : > { %1031 = vrot.lane.b32.xlu1 %v3835_v23, %s3716_s26  ;;  %1071 = vrot.lane.b32.xlu2 %v3835_v23, %s3717_s27  ;;  %s3719_s26 = smov 80  }
 0x155   : > { %1013 = vrot.lane.b32.xlu0 %v3837_v24, %s3711_s28 }
 0x15c   : > { %1053 = vrot.lane.b32.xlu1 %v3837_v24, %s3718_s29 }
 0x15d   : > { %1051 = vrot.lane.b32.xlu0 %v3835_v23, %s3718_s29  ;;  %s3721_s29 = smov 64  }
 0x165   : > { %1073 = vrot.lane.b32.xlu0 %v3837_v24, %s3717_s27  ;;  %s3720_s27 = smov 48  }
 0x196   : > { %v696_v12 = vpop.permute.xlu2 %695 }
 0x1ae   : > { %v678_v4 = vpop.permute.xlu1 %677 }
 0x1af   : > { %v676_v6 = vpop.permute.xlu0 %675 }
 0x1b0   : > { %v680_v21 = vsel %vm6625_vm12, %v676_v6, %v678_v4  ;;  %v681_v22 = vsel %vm6625_vm12, %v678_v4, %v676_v6  ;;  %v747_v6 = vperm.slane %v746_v54, 0  ;;  %vm4122_vm12 = vcmp.eq.s32.totalorder %v727_v58, 1 }
 0x1b1   : > { %v691_v55 = vsel %vm4040_vm3, %v681_v22, -inf  ;;  %v692_v56 = vsel %vm4049_vm2, %v680_v21, -inf  ;;  %vm1020_vm2 = vcmp.lt.s32.totalorder %v1018_v10, 16  ;;  %vm6779_vm3 = vcmp.lt.s32.totalorder %v3875_v33, 3 }
 0x1b2   : > { %v693_v7 = vmax.f32 %v3964_v32, %v691_v55  ;;  %v694_v8 = vmax.f32 %v3966_v34, %v692_v56  ;;  %v1004_v32 = vperm.slane %v4094_v0, 1  ;;  %v718_v34 = vpop.permute.xlu2 %717  ;;  %v1038_v55 = vadd.s32 4294967291, %v3868_v25 }
 0x1b3   : > { %v956_v41 = vsel %vm6779_vm3, %v4004_v43, %v4008_v47 }
 0x1b4   : > { %vm1039_vm3 = vcmp.ge.s32.totalorder %v1038_v55, 0 }
 0x1b6   : > { %v716_v36 = vpop.permute.xlu1 %715 }
 0x1b7   : > { %v698_v62 = vpop.permute.xlu0 %697  ;;  %v720_v21 = vsel %vm6628_vm8, %v716_v36, %v718_v34  ;;  %v721_v22 = vsel %vm6628_vm8, %v718_v34, %v716_v36  ;;  %vm4147_vm8 = vcmp.eq.s32.totalorder %v748_v9, 1  ;;  %v6777_v36 = vmov 0 }
 0x1b8   : > { %v700_v1 = vsel %vm6624_vm10, %v696_v12, %v698_v62  ;;  %v701_v3 = vsel %vm6624_vm10, %v698_v62, %v696_v12  ;;  %vm4116_vm10 = vcmp.eq.s32.totalorder %v983_v35, 1  ;;  %v6775_v35 = vmov 0 }
 0x1b9   : > { %v711_v4 = vsel %vm4074_vm0, %v701_v3, -inf  ;;  %v712_v5 = vsel %vm4078_vm1, %v700_v1, -inf  ;;  %vm4143_vm1 = vcmp.eq.s32.totalorder %v747_v6, 1  ;;  %v6778_v36 = vsel %vm4147_vm8, 4294967295, %v6777_v36 }
 0x1ba   : > { %v713_v26 = vmax.f32 %v693_v7, %v711_v4  ;;  %v714_v27 = vmax.f32 %v694_v8, %v712_v5  ;;  %v6776_v35 = vsel %vm4143_vm1, 4294967295, %v6775_v35  ;;  %vm1019_vm0 = vcmp.ge.s32.totalorder %v1018_v10, 0 }
 0x1bb   : > { %v731_v42 = vsel %vm4122_vm12, %v720_v21, -inf  ;;  %v732_v56 = vsel %vm4126_vm7, %v721_v22, -inf  ;;  %v947_v4 = vsel %vm4065_vm11, %v936_v28, 0.0  ;;  %v948_v5 = vsel %vm4069_vm6, %v937_v29, 0.0  ;;  %vm1021_vm14 = vmand %vm1019_vm0, %vm1020_vm2 }
 0x1bc   : > { %v733_v62 = vmax.f32 %v713_v26, %v731_v42  ;;  %v734_v0 = vmax.f32 %v714_v27, %v732_v56  ;;  %vm6782_vm11 = vcmp.lt.s32.totalorder %v3875_v33, 3  ;;  %vm6783_vm6 = vcmp.lt.s32.totalorder %v3875_v33, 124 }
 0x1bd   : > { %v957_v30 = vsel %vm6782_vm11, %v4008_v47, %v4004_v43  ;;  %v976_v31 = vsel %vm6783_vm6, %v4006_v46, %v4010_v48  ;;  %v949_v10 = vadd.f32 %v947_v4, %v3972_v39  ;;  %v1022_v34 = vsel %vm1021_vm14, 1, %v6646_v2 }
 0x1be   : > { %v738_v54 = vpop.permute.xlu1 %737  ;;  %v1078_v43 = vadd.s32 4294967290, %v3868_v25  ;;  %v950_v47 = vadd.f32 %v948_v5, %v3974_v40  ;;  %vm4195_vm0 = vcmp.eq.s32.totalorder %v984_v63, 1  ;;  %vm4199_vm11 = vcmp.eq.s32.totalorder %v1003_v14, 1 }
 0x1bf   : > { %v736_v58 = vpop.permute.xlu0 %735  ;;  %vm4203_vm6 = vcmp.eq.s32.totalorder %v1004_v32, 1  ;;  %v967_v25 = vsel %vm4108_vm4, %v957_v30, 0.0  ;;  %v968_v63 = vsel %vm4112_vm9, %v956_v41, 0.0  ;;  %vm6790_vm2 = vcmp.lt.s32.totalorder %v3875_v33, 124 }
 0x1c0   : > { %v740_v1 = vsel %vm6635_vm5, %v736_v58, %v738_v54  ;;  %v741_v3 = vsel %vm6635_vm5, %v738_v54, %v736_v58  ;;  %vm1040_vm5 = vcmp.lt.s32.totalorder %v1038_v55, 16  ;;  %v977_v14 = vsel %vm6790_vm2, %v4010_v48, %v4006_v46 }
 0x1c1   : > { %v751_v6 = vsel %vm4143_vm1, %v740_v1, -inf  ;;  %v752_v7 = vsel %vm4147_vm8, %v741_v3, -inf  ;;  %vm1059_vm1 = vcmp.ge.s32.totalorder %v1058_v61, 0  ;;  %vm1060_vm8 = vcmp.lt.s32.totalorder %v1058_v61, 16  ;;  %vm1041_vm14 = vmand %vm1039_vm3, %vm1040_vm5 }
 0x1c2   : > { %v4174_v8 = vmax.f32 %v733_v62, %v751_v6  ;;  %v4176_v9 = vmax.f32 %v734_v0, %v752_v7  ;;  %v987_v32 = vsel %vm4116_vm10, %v976_v31, 0.0  ;;  %vm1061_vm7 = vmand %vm1059_vm1, %vm1060_vm8  ;;  %vm6791_vm5 = vcmp.lt.s32.totalorder %v3875_v33, 4  ;;  %v1034_v6 = vpop.permute.xlu2 %1033 }
 0x1c3   : > { %v996_v11 = vsel %vm6791_vm5, %v4023_v59, %v4020_v57  ;;  %vm6792_vm4 = vmmov %vm6791_vm5  ;;  %v1023_v28 = vperm.slane %v1022_v34, 0  ;;  %v1024_v29 = vperm.slane %v1022_v34, 1  ;;  %v969_v48 = vadd.f32 %v967_v25, %v949_v10 }
 0x1c4   : > { %6780 = vst [vmem:[#allocation5_spill] sm:$0xff] %v4174_v8  ;;  %757 = vrot.lane.b32.xlu0 %v4176_v9, %s3703_s18  ;;  %765 = vrot.lane.b32.xlu1 %v4174_v8, %s3704_s19  ;;  %v997_v12 = vsel %vm6792_vm4, %v4020_v57, %v4023_v59  ;;  %v1042_v13 = vsel %vm1041_vm14, 1, %v6646_v2  ;;  %vm1079_vm10 = vcmp.ge.s32.totalorder %v1078_v43, 0  ;;  %vm1080_vm9 = vcmp.lt.s32.totalorder %v1078_v43, 16 }
 0x1c5   : > { %6781 = vst [vmem:[#allocation6_spill] sm:$0xff] %v4176_v9  ;;  %755 = vrot.lane.b32.xlu2 %v4174_v8, %s3703_s18  ;;  %v970_v54 = vadd.f32 %v968_v63, %v950_v47  ;;  %vm1015_vm1 = vcmp.lt.s32.totalorder %v3875_v33, 123  ;;  %v1062_v55 = vsel %vm1061_vm7, 1, %v6646_v2  ;;  %v988_v41 = vsel %vm4195_vm0, %v977_v14, 0.0  ;;  %vm1081_vm7 = vmand %vm1079_vm10, %vm1080_vm9 }
 0x1c6   : > { %v1032_v27 = vpop.permute.xlu1 %1031  ;;  %v989_v42 = vadd.f32 %v987_v32, %v969_v48  ;;  %v1007_v57 = vsel %vm4199_vm11, %v997_v12, 0.0  ;;  %v1008_v59 = vsel %vm4203_vm6, %v996_v11, 0.0  ;;  %v1043_v56 = vperm.slane %v1042_v13, 0 }
 0x1c7   : > { %v1014_v46 = vpop.permute.xlu0 %1013  ;;  %v1044_v58 = vperm.slane %v1042_v13, 1  ;;  %vm4240_vm8 = vcmp.eq.s32.totalorder %v1023_v28, 1  ;;  %vm4244_vm3 = vcmp.eq.s32.totalorder %v1024_v29, 1  ;;  %v1063_v3 = vperm.slane %v1062_v55, 0 }
 0x1c8   : > { %v1016_v0 = vsel %vm1015_vm1, %v4025_v60, %v1014_v46  ;;  %v1017_v1 = vsel %vm1015_vm1, %v1014_v46, %v4025_v60  ;;  %v1064_v4 = vperm.slane %v1062_v55, 1  ;;  %v990_v5 = vadd.f32 %v988_v41, %v970_v54 }
 0x1c9   : > { %v4256_v7 = vadd.f32 %v1007_v57, %v989_v42  ;;  %vm1035_vm2 = vcmp.lt.s32.totalorder %v3875_v33, 5  ;;  %v1082_v30 = vsel %vm1081_vm7, 1, %v6646_v2  ;;  %v1027_v31 = vsel %vm4240_vm8, %v1016_v0, 0.0 }
 0x1ca   : > { %v4260_v60 = vadd.f32 %v1008_v59, %v990_v5  ;;  %v1028_v10 = vsel %vm4244_vm3, %v1017_v1, 0.0  ;;  %vm1055_vm0 = vcmp.lt.s32.totalorder %v3875_v33, 122  ;;  %vm4267_vm11 = vcmp.eq.s32.totalorder %v1043_v56, 1  ;;  %v1072_v41 = vpop.permute.xlu2 %1071 }
 0x1cb   : > { %vm4271_vm6 = vcmp.eq.s32.totalorder %v1044_v58, 1  ;;  %vm4275_vm14 = vcmp.eq.s32.totalorder %v1063_v3, 1  ;;  %vm4279_vm5 = vcmp.eq.s32.totalorder %v1064_v4, 1  ;;  %v1036_v25 = vsel %vm1035_vm2, %v1032_v27, %v1034_v6 }
 0x1cc   : > { %775 = vrot.lane.b32.xlu0 %v4174_v8, %s3705_s20  ;;  %777 = vrot.lane.b32.xlu1 %v4176_v9, %s3705_s20  ;;  %v1037_v63 = vsel %vm1035_vm2, %v1034_v6, %v1032_v27  ;;  %v1083_v14 = vperm.slane %v1082_v30, 0  ;;  %v1084_v32 = vperm.slane %v1082_v30, 1  ;;  %v1029_v11 = vadd.f32 %v1027_v31, %v4256_v7 }
 0x1cd   : > { %767 = vrot.lane.b32.xlu2 %v4176_v9, %s3704_s19  ;;  %v1030_v12 = vadd.f32 %v1028_v10, %v4260_v60  ;;  %vm1075_vm4 = vcmp.lt.s32.totalorder %v3875_v33, 6  ;;  %v1047_v46 = vsel %vm4267_vm11, %v1037_v63, 0.0  ;;  %v1048_v48 = vsel %vm4271_vm6, %v1036_v25, 0.0 }
 0x1ce   : > { %v1054_v34 = vpop.permute.xlu1 %1053  ;;  %v1049_v54 = vadd.f32 %v1047_v46, %v1029_v11  ;;  %vm1085_vm10 = vcmp.eq.s32.totalorder %v1083_v14, 1  ;;  %vm1086_vm9 = vcmp.eq.s32.totalorder %v1084_v32, 1  ;;  %vm6805_vm1 = vcmp.lt.s32.totalorder %v3875_v33, 2 }
 0x1cf   : > { %v1052_v43 = vpop.permute.xlu0 %1051  ;;  %v1050_v55 = vadd.f32 %v1048_v48, %v1030_v12  ;;  %vm6806_vm8 = vmmov %vm6805_vm1  ;;  %vm6807_vm3 = vcmp.lt.s32.totalorder %v3875_v33, 1  ;;  %vm6809_vm2 = vcmp.lt.s32.totalorder %v3875_v33, 127  ;;  %vm6811_vm11 = vnez %v6738_v49 }
 0x1d0   : > { %v1056_v28 = vsel %vm1055_vm0, %v1052_v43, %v1054_v34  ;;  %v1057_v29 = vsel %vm1055_vm0, %v1054_v34, %v1052_v43  ;;  %vm6808_vm7 = vmmov %vm6807_vm3  ;;  %vm6812_vm6 = vnez %v6740_v50 }
 0x1d1   : > { %v1067_v27 = vsel %vm4275_vm14, %v1056_v28, 0.0  ;;  %v1068_v13 = vsel %vm4279_vm5, %v1057_v29, 0.0  ;;  %vm6810_vm0 = vmmov %vm6809_vm2  ;;  %vm6813_vm14 = vnez %v6742_v51  ;;  %vm6814_vm5 = vnez %v6744_v52 }
 0x1d2   : > { %v1069_v57 = vadd.f32 %v1067_v27, %v1049_v54  ;;  %v1070_v59 = vadd.f32 %v1068_v13, %v1050_v55 }
 0x1d4   : > { %787 = vrot.lane.b32.xlu0 %v4176_v9, %s3707_s22 }
 0x1d5   : > { %785 = vrot.lane.b32.xlu2 %v4174_v8, %s3707_s22 }
 0x1d7   : > { %v1074_v42 = vpop.permute.xlu0 %1073 }
 0x1d8   : > { %v1076_v56 = vsel %vm1075_vm4, %v1072_v41, %v1074_v42  ;;  %v1077_v58 = vsel %vm1075_vm4, %v1074_v42, %v1072_v41  ;;  %vm6815_vm4 = vcmp.lt.s32.totalorder %v3875_v33, 126 }
 0x1d9   : > { %v1087_v61 = vsel %vm1085_vm10, %v1077_v58, 0.0  ;;  %v1088_v62 = vsel %vm1086_vm9, %v1076_v56, 0.0  ;;  %vm6816_vm10 = vmmov %vm6815_vm4  ;;  %vm6817_vm9 = vnez %v6746_v15 }
 0x1da   : > { %v4298_v0 = vadd.f32 %v1087_v61, %v1069_v57  ;;  %v4300_v1 = vadd.f32 %v1088_v62, %v1070_v59 }
 0x1dc   : > { %1248 = vrot.lane.b32.xlu0 %v4298_v0, %s3714_s21  ;;  %1250 = vrot.lane.b32.xlu1 %v4300_v1, %s3714_s21 }
 0x1dd   : > { %1258 = vrot.lane.b32.xlu2 %v4298_v0, %s3713_s17 }
 0x1e4   : > { %1260 = vrot.lane.b32.xlu0 %v4300_v1, %s3713_s17  ;;  %1268 = vrot.lane.b32.xlu1 %v4298_v0, %s3715_s25 }
 0x1e5   : > { %1270 = vrot.lane.b32.xlu2 %v4300_v1, %s3715_s25 }
 0x1ec   : > { %1133 = vrot.lane.b32.xlu0 %v4256_v7, %s3714_s21  ;;  %1135 = vrot.lane.b32.xlu1 %v4260_v60, %s3714_s21 }
 0x1ed   : > { %1278 = vrot.lane.b32.xlu2 %v4298_v0, %s3712_s0 }
 0x1f4   : > { %1280 = vrot.lane.b32.xlu0 %v4300_v1, %s3712_s0  ;;  %1143 = vrot.lane.b32.xlu1 %v4256_v7, %s3713_s17 }
 0x1f5   : > { %1145 = vrot.lane.b32.xlu2 %v4260_v60, %s3713_s17 }
 0x21f   : > { %v756_v3 = vpop.permute.xlu2 %755 }
 0x227   : > { %v768_v31 = vpop.permute.xlu2 %767 }
 0x22f   : > { %v786_v48 = vpop.permute.xlu2 %785 }
 0x236   : > { %v766_v4 = vpop.permute.xlu1 %765  ;;  %v758_v5 = vpop.permute.xlu0 %757 }
 0x237   : > { %v759_v6 = vsel %vm6805_vm1, %v756_v3, %v758_v5  ;;  %v760_v30 = vsel %vm6806_vm8, %v758_v5, %v756_v3  ;;  %v769_v21 = vsel %vm6807_vm3, %v766_v4, %v768_v31  ;;  %v770_v22 = vsel %vm6808_vm7, %v768_v31, %v766_v4  ;;  %v4392_v58 = vpop.permute.xlu2 %1258 }
 0x238   : > { %v761_v10 = vsel %vm3880_vm13, %v760_v30, -inf  ;;  %v762_v34 = vsel %vm3884_vm15, %v759_v6, -inf  ;;  %v771_v32 = vsel %vm6811_vm11, %v770_v22, -inf  ;;  %v772_v11 = vsel %vm6812_vm6, %v769_v21, -inf }
 0x239   : > { %v763_v26 = vmax.f32 %v4174_v8, %v761_v10  ;;  %v764_v25 = vmax.f32 %v4176_v9, %v762_v34  ;;  %vm6818_vm1 = vnez %v6748_v16  ;;  %vm6819_vm8 = vcmp.lt.s32.totalorder %v3875_v33, 32 }
 0x23a   : > { %vm6820_vm3 = vmmov %vm6819_vm8  ;;  %vm6821_vm7 = vcmp.lt.s32.totalorder %v3875_v33, 16  ;;  %vm6839_vm11 = vcmp.lt.s32.totalorder %v3875_v33, 16 }
 0x23b   : > { %v773_v29 = vmax.f32 %v763_v26, %v771_v32  ;;  %v774_v46 = vmax.f32 %v764_v25, %v772_v11  ;;  %vm6840_vm15 = vmmov %vm6839_vm11 }
 0x23e   : > { %v778_v43 = vpop.permute.xlu1 %777  ;;  %v776_v47 = vpop.permute.xlu0 %775 }
 0x23f   : > { %v779_v63 = vsel %vm6809_vm2, %v776_v47, %v778_v43  ;;  %v780_v14 = vsel %vm6810_vm0, %v778_v43, %v776_v47  ;;  %v4396_v62 = vpop.permute.xlu2 %1270  ;;  %vm6822_vm2 = vmmov %vm6821_vm7  ;;  %vm6823_vm0 = vnez %v6750_v18 }
 0x240   : > { %v781_v12 = vsel %vm6813_vm14, %v779_v63, -inf  ;;  %v782_v28 = vsel %vm6814_vm5, %v780_v14, -inf }
 0x241   : > { %v783_v13 = vmax.f32 %v773_v29, %v781_v12  ;;  %v784_v54 = vmax.f32 %v774_v46, %v782_v28 }
 0x246   : > { %v788_v27 = vpop.permute.xlu0 %787 }
 0x247   : > { %v789_v55 = vsel %vm6815_vm4, %v786_v48, %v788_v27  ;;  %v790_v41 = vsel %vm6816_vm10, %v788_v27, %v786_v48  ;;  %v4402_v5 = vpop.permute.xlu2 %1278  ;;  %vm6824_vm4 = vnez %v6754_v20  ;;  %vm6825_vm10 = vnez %v6762_v37 }
 0x248   : > { %v791_v42 = vsel %vm6817_vm9, %v789_v55, -inf  ;;  %v792_v57 = vsel %vm6818_vm1, %v790_v41, -inf  ;;  %vm6830_vm1 = vcmp.lt.s32.totalorder %v3875_v33, 96 }
 0x249   : > { %v793_v59 = vmax.f32 %v783_v13, %v791_v42  ;;  %v794_v56 = vmax.f32 %v784_v54, %v792_v57  ;;  %vm6831_vm9 = vmmov %vm6830_vm1 }
 0x24b   : > { %797 = vrot.lane.b32.xlu2 %v794_v56, %s3712_s0  ;;  %805 = vrot.lane.b32.xlu0 %v793_v59, %s3713_s17 }
 0x24c   : > { %795 = vrot.lane.b32.xlu1 %v793_v59, %s3712_s0 }
 0x24e   : > { %v4394_v61 = vpop.permute.xlu1 %1250  ;;  %v4398_v3 = vpop.permute.xlu0 %1248 }
 0x24f   : > { %v4408_v31 = vpop.permute.xlu2 %1145 }
 0x253   : > { %815 = vrot.lane.b32.xlu2 %v793_v59, %s3714_s21  ;;  %817 = vrot.lane.b32.xlu0 %v794_v56, %s3714_s21 }
 0x254   : > { %807 = vrot.lane.b32.xlu1 %v794_v56, %s3713_s17 }
 0x256   : > { %v4400_v4 = vpop.permute.xlu1 %1268  ;;  %v4404_v6 = vpop.permute.xlu0 %1260 }
 0x25b   : > { %1153 = vrot.lane.b32.xlu2 %v4256_v7, %s3715_s25  ;;  %1288 = vrot.lane.b32.xlu0 %v4298_v0, %s3719_s26 }
 0x25c   : > { %1290 = vrot.lane.b32.xlu1 %v4300_v1, %s3719_s26 }
 0x25e   : > { %v4406_v30 = vpop.permute.xlu1 %1135  ;;  %v4410_v10 = vpop.permute.xlu0 %1133 }
 0x263   : > { %827 = vrot.lane.b32.xlu2 %v794_v56, %s3715_s25  ;;  %1155 = vrot.lane.b32.xlu0 %v4260_v60, %s3715_s25 }
 0x264   : > { %825 = vrot.lane.b32.xlu1 %v793_v59, %s3715_s25 }
 0x266   : > { %v4412_v34 = vpop.permute.xlu1 %1143  ;;  %v4414_v47 = vpop.permute.xlu0 %1280 }
 0x26b   : > { %1300 = vrot.lane.b32.xlu2 %v4300_v1, %s3720_s27  ;;  %1091 = vrot.lane.b32.xlu0 %v3972_v39, %s3714_s21 }
 0x26c   : > { %1298 = vrot.lane.b32.xlu1 %v4298_v0, %s3720_s27 }
 0x273   : > { %1163 = vrot.lane.b32.xlu2 %v4256_v7, %s3712_s0  ;;  %1165 = vrot.lane.b32.xlu0 %v4260_v60, %s3712_s0 }
 0x274   : > { %1093 = vrot.lane.b32.xlu1 %v3974_v40, %s3714_s21 }
 0x27b   : > { %1310 = vrot.lane.b32.xlu2 %v4300_v1, %s3721_s29 }
 0x27c   : > { %1308 = vrot.lane.b32.xlu1 %v4298_v0, %s3721_s29 }
 0x2a5   : > { %v798_v43 = vpop.permute.xlu2 %797 }
 0x2ad   : > { %v816_v22 = vpop.permute.xlu2 %815 }
 0x2b5   : > { %v4420_v32 = vpop.permute.xlu2 %1153 }
 0x2bd   : > { %v806_v26 = vpop.permute.xlu0 %805 }
 0x2be   : > { %v796_v21 = vpop.permute.xlu1 %795 }
 0x2bf   : > { %v799_v63 = vsel %vm6819_vm8, %v796_v21, %v798_v43  ;;  %v800_v14 = vsel %vm6820_vm3, %v798_v43, %v796_v21  ;;  %vm6826_vm8 = vnez %v6764_v38  ;;  %vm6827_vm3 = vcmp.lt.s32.totalorder %v3875_v33, 112  ;;  %v828_v21 = vpop.permute.xlu2 %827  ;;  %v2235_v38 = vld [vmem:[%s6606_s15 + $0xf8] sm:$0xff] }
 0x2c0   : > { %v801_v28 = vsel %vm6823_vm0, %v800_v14, -inf  ;;  %v802_v29 = vsel %vm6824_vm4, %v799_v63, -inf  ;;  %vm6837_vm4 = vcmp.lt.s32.totalorder %v3875_v33, 112 }
 0x2c1   : > { %v803_v54 = vmax.f32 %v793_v59, %v801_v28  ;;  %v804_v55 = vmax.f32 %v794_v56, %v802_v29  ;;  %vm6838_vm0 = vmmov %vm6837_vm4 }
 0x2c5   : > { %v818_v13 = vpop.permute.xlu0 %817 }
 0x2c6   : > { %v808_v25 = vpop.permute.xlu1 %807  ;;  %v819_v57 = vsel %vm6827_vm3, %v816_v22, %v818_v13 }
 0x2c7   : > { %v809_v11 = vsel %vm6821_vm7, %v806_v26, %v808_v25  ;;  %v810_v12 = vsel %vm6822_vm2, %v808_v25, %v806_v26  ;;  %vm6828_vm7 = vmmov %vm6827_vm3  ;;  %v821_v26 = vsel %vm4122_vm12, %v819_v57, -inf  ;;  %vm6829_vm2 = vnez %v6774_v19 }
 0x2c8   : > { %v811_v48 = vsel %vm6825_vm10, %v810_v12, -inf  ;;  %v812_v27 = vsel %vm6826_vm8, %v809_v11, -inf  ;;  %v820_v43 = vsel %vm6828_vm7, %v818_v13, %v816_v22  ;;  %vm6832_vm3 = vnez %v6776_v35 }
 0x2c9   : > { %v813_v41 = vmax.f32 %v803_v54, %v811_v48  ;;  %v814_v42 = vmax.f32 %v804_v55, %v812_v27  ;;  %v822_v25 = vsel %vm6829_vm2, %v820_v43, -inf  ;;  %vm6833_vm7 = vnez %v6778_v36  ;;  %v4496_v48 = vpop.permute.xlu2 %1300 }
 0x2ca   : > { %v1361_v43 = vadd.s32 4294967290, %v4015_v53 }
 0x2cb   : > { %v823_v14 = vmax.f32 %v813_v41, %v821_v26  ;;  %v824_v11 = vmax.f32 %v814_v42, %v822_v25  ;;  %v1348_v26 = vadd.s32 6, %v4015_v53 }
 0x2cd   : > { %v4498_v27 = vpop.permute.xlu0 %1288  ;;  %vm1349_vm5 = vcmp.ge.s32.totalorder %v1348_v26, 0  ;;  %vm1350_vm14 = vcmp.lt.s32.totalorder %v1348_v26, 16 }
 0x2ce   : > { %v4430_v46 = vpop.permute.xlu1 %1290  ;;  %vm1351_vm13 = vmand %vm1349_vm5, %vm1350_vm14  ;;  %vm6845_vm14 = vcmp.lt.s32.totalorder %v3875_v33, 16 }
 0x2d1   : > { %v4500_v13 = vpop.permute.xlu2 %1163 }
 0x2d2   : > { %6836 = vst [vmem:[#allocation9_spill] sm:$0xff] %v4500_v13 }
 0x2d5   : > { %v4502_v54 = vpop.permute.xlu0 %1155 }
 0x2d6   : > { %v826_v63 = vpop.permute.xlu1 %825 }
 0x2d7   : > { %v829_v59 = vsel %vm6830_vm1, %v826_v63, %v828_v21  ;;  %v830_v56 = vsel %vm6831_vm9, %v828_v21, %v826_v63  ;;  %vm1362_vm9 = vcmp.ge.s32.totalorder %v1361_v43, 0  ;;  %vm1363_vm1 = vcmp.lt.s32.totalorder %v1361_v43, 16 }
 0x2d8   : > { %v831_v12 = vsel %vm6832_vm3, %v829_v59, -inf  ;;  %v832_v22 = vsel %vm6833_vm7, %v830_v56, -inf  ;;  %vm1364_vm6 = vmand %vm1362_vm9, %vm1363_vm1  ;;  %v1262_v59 = vsel %vm6839_vm11, %v4392_v58, %v4404_v6  ;;  %v1263_v56 = vsel %vm6840_vm15, %v4404_v6, %v4392_v58 }
 0x2d9   : > { %v4452_v28 = vmax.f32 %v823_v14, %v831_v12  ;;  %v4454_v29 = vmax.f32 %v824_v11, %v832_v22  ;;  %v4506_v41 = vpop.permute.xlu2 %1310  ;;  %v1252_v14 = vsel %vm6837_vm4, %v4398_v3, %v4394_v61  ;;  %v1253_v11 = vsel %vm6838_vm0, %v4394_v61, %v4398_v3  ;;  %vm6842_vm11 = vmmov %vm6838_vm0 }
 0x2da   : > { %v1254_v12 = vsel %vm4122_vm12, %v1252_v14, 0.0  ;;  %v1255_v22 = vsel %vm6829_vm2, %v1253_v11, 0.0  ;;  %v4541_v61 = vsel %vm1364_vm6, 1, %v6646_v2  ;;  %v1264_v3 = vsel %vm6825_vm10, %v1263_v56, 0.0  ;;  %vm6844_vm6 = vmmov %vm6838_vm0 }
 0x2db   : > { %6834 = vst [vmem:[#allocation7_spill] sm:$0xff] %v4452_v28  ;;  %837 = vrot.lane.b32.xlu2 %v4454_v29, %s3703_s18  ;;  %845 = vrot.lane.b32.xlu0 %v4452_v28, %s3704_s19  ;;  %v1265_v26 = vsel %vm6826_vm8, %v1262_v59, 0.0  ;;  %v4548_v58 = vsel %vm1351_vm13, 1, %v6646_v2  ;;  %v1256_v14 = vadd.f32 %v1254_v12, %v4298_v0  ;;  %v1257_v24 = vadd.f32 %v1255_v22, %v4300_v1  ;;  %vm6848_vm1 = vmmov %vm6845_vm14 }
 0x2dc   : > { %6835 = vst [vmem:[#allocation8_spill] sm:$0xff] %v4454_v29  ;;  %835 = vrot.lane.b32.xlu1 %v4452_v28, %s3703_s18  ;;  %vm6841_vm15 = vcmp.lt.s32.totalorder %v3875_v33, 96  ;;  %v1137_v56 = vsel %vm6842_vm11, %v4410_v10, %v4406_v30  ;;  %v1138_v0 = vsel %vm6844_vm6, %v4406_v30, %v4410_v10  ;;  %v1180_v1 = vadd.s32 3, %v4015_v53 }
 0x2dd   : > { %v4508_v42 = vpop.permute.xlu0 %1091  ;;  %v4556_v11 = vsel %vm6841_vm15, %v4400_v4, %v4396_v62  ;;  %vm6843_vm13 = vmmov %vm6841_vm15  ;;  %v1266_v23 = vadd.f32 %v1264_v3, %v1256_v14  ;;  %v1267_v9 = vadd.f32 %v1265_v26, %v1257_v24  ;;  %v1140_v10 = vsel %vm6829_vm2, %v1138_v0, 0.0 }
 0x2de   : > { %v4504_v55 = vpop.permute.xlu1 %1298  ;;  %v4566_v2 = vsel %vm6843_vm13, %v4396_v62, %v4400_v4  ;;  %v1274_v8 = vsel %vm6832_vm3, %v4556_v11, 0.0  ;;  %v1139_v62 = vsel %vm4122_vm12, %v1137_v56, 0.0  ;;  %v4591_v24 = vsel %vm6845_vm14, %v4408_v31, %v4412_v34 }
 0x2df   : > { %v1275_v30 = vsel %vm6833_vm7, %v4566_v2, 0.0  ;;  %v1335_v3 = vadd.s32 4294967291, %v4015_v53  ;;  %vm1181_vm5 = vcmp.ge.s32.totalorder %v1180_v1, 0  ;;  %vm1182_vm0 = vcmp.lt.s32.totalorder %v1180_v1, 16 }
 0x2e0   : > { %vm6846_vm4 = vcmp.lt.s32.totalorder %v3875_v33, 2  ;;  %v4599_v56 = vadd.f32 %v1139_v62, %v4256_v7  ;;  %v4601_v0 = vadd.f32 %v1274_v8, %v1266_v23  ;;  %v4603_v22 = vadd.f32 %v1275_v30, %v1267_v9  ;;  %vm1183_vm13 = vmand %vm1181_vm5, %vm1182_vm0 }
 0x2e1   : > { %vm6847_vm9 = vmmov %vm6846_vm4  ;;  %v1200_v12 = vadd.s32 4294967293, %v4015_v53  ;;  %v4607_v13 = vadd.f32 %v1140_v10, %v4260_v60  ;;  %v4613_v1 = vsel %vm6848_vm1, %v4412_v34, %v4408_v31  ;;  %vm6849_vm15 = vcmp.lt.s32.totalorder %v3875_v33, 32 }
 0x2e2   : > { %vm6850_vm11 = vmmov %vm6849_vm15  ;;  %vm6851_vm6 = vnez %v6734_v44  ;;  %vm6852_vm14 = vnez %v6736_v45  ;;  %vm6853_vm1 = vcmp.lt.s32.totalorder %v3875_v33, 1  ;;  %vm6855_vm0 = vnez %v6738_v49 }
 0x2e3   : > { %855 = vrot.lane.b32.xlu2 %v4452_v28, %s3705_s20  ;;  %857 = vrot.lane.b32.xlu0 %v4454_v29, %s3705_s20  ;;  %v4625_v23 = vsel %vm6850_vm11, %v4414_v47, %v4402_v5  ;;  %vm1201_vm11 = vcmp.ge.s32.totalorder %v1200_v12, 0  ;;  %vm1202_vm5 = vcmp.lt.s32.totalorder %v1200_v12, 16  ;;  %vm6856_vm2 = vnez %v6740_v50  ;;  %v6956_v35 = vld [vmem:[#allocation8_spill] sm:$0xff] }
 0x2e4   : > { %847 = vrot.lane.b32.xlu1 %v4454_v29, %s3704_s19  ;;  %v6857_v30 = vmov 0   ;;  %v1322_v10 = vadd.s32 5, %v4015_v53  ;;  %v1233_v49 = vadd.s32 4294967292, %v4015_v53 }
 0x2e5   : > { %v4514_v25 = vpop.permute.xlu0 %1165  ;;  %v1184_v45 = vsel %vm1183_vm13, 1, %v6857_v30 }
 0x2e6   : > { %v4510_v57 = vpop.permute.xlu1 %1093 }
 0x2eb   : > { %867 = vrot.lane.b32.xlu2 %v4454_v29, %s3707_s22  ;;  %1101 = vrot.lane.b32.xlu0 %v3972_v39, %s3713_s17 }
 0x2ec   : > { %865 = vrot.lane.b32.xlu1 %v4452_v28, %s3707_s22 }
 0x2ee   : > { %v4516_v63 = vpop.permute.xlu1 %1308 }
 0x2f3   : > { %1173 = vrot.lane.b32.xlu2 %v4256_v7, %s3719_s26  ;;  %1175 = vrot.lane.b32.xlu0 %v4260_v60, %s3719_s26 }
 0x2f4   : > { %1103 = vrot.lane.b32.xlu1 %v3974_v40, %s3713_s17 }
 0x2fb   : > { %1113 = vrot.lane.b32.xlu2 %v3974_v40, %s3715_s25  ;;  %1193 = vrot.lane.b32.xlu0 %v4256_v7, %s3720_s27 }
 0x2fc   : > { %1111 = vrot.lane.b32.xlu1 %v3972_v39, %s3715_s25 }
 0x303   : > { %1121 = vrot.lane.b32.xlu2 %v3972_v39, %s3712_s0  ;;  %1123 = vrot.lane.b32.xlu0 %v3974_v40, %s3712_s0 }
 0x304   : > { %1195 = vrot.lane.b32.xlu1 %v4260_v60, %s3720_s27 }
 0x30b   : > { %1215 = vrot.lane.b32.xlu2 %v4260_v60, %s3721_s29  ;;  %v1220_v60 = vadd.s32 4, %v4015_v53  ;;  %v1185_v53 = vperm.slane %v1184_v45, 0 }
 0x30c   : > { %1213 = vrot.lane.b32.xlu1 %v4256_v7, %s3721_s29  ;;  %v4619_v7 = vsel %vm6849_vm15, %v4402_v5, %v4414_v47  ;;  %vm6854_vm15 = vmmov %vm6853_vm1 }
 0x335   : > { %v838_v21 = vpop.permute.xlu2 %837 }
 0x33d   : > { %v4538_v43 = vpop.permute.xlu2 %855 }
 0x345   : > { %v868_v31 = vpop.permute.xlu2 %867 }
 0x34d   : > { %v846_v6 = vpop.permute.xlu0 %845  ;;  %v4681_v9 = vpop.permute.xlu2 %1173 }
 0x34e   : > { %v836_v59 = vpop.permute.xlu1 %835 }
 0x34f   : > { %v839_v26 = vsel %vm6846_vm4, %v836_v59, %v838_v21  ;;  %v840_v14 = vsel %vm6847_vm9, %v838_v21, %v836_v59  ;;  %vm1336_vm4 = vcmp.ge.s32.totalorder %v1335_v3, 0  ;;  %vm1337_vm9 = vcmp.lt.s32.totalorder %v1335_v3, 16 }
 0x350   : > { %v841_v34 = vsel %vm6851_vm6, %v840_v14, -inf  ;;  %v842_v21 = vsel %vm6852_vm14, %v839_v26, -inf  ;;  %vm1338_vm6 = vmand %vm1336_vm4, %vm1337_vm9  ;;  %vm1221_vm14 = vcmp.ge.s32.totalorder %v1220_v60, 0  ;;  %vm6861_vm4 = vnez %v6754_v20  ;;  %v2215_v20 = vld [vmem:[%s6606_s15 + $0x58] sm:$0xff] }
 0x351   : > { %v843_v3 = vmax.f32 %v4452_v28, %v841_v34  ;;  %v844_v26 = vmax.f32 %v4454_v29, %v842_v21  ;;  %vm6863_vm9 = vnez %v6744_v52 }
 0x355   : > { %v858_v8 = vpop.permute.xlu0 %857 }
 0x356   : > { %v848_v59 = vpop.permute.xlu1 %847 }
 0x357   : > { %v849_v5 = vsel %vm6853_vm1, %v846_v6, %v848_v59  ;;  %v850_v47 = vsel %vm6854_vm15, %v848_v59, %v846_v6  ;;  %vm1222_vm1 = vcmp.lt.s32.totalorder %v1220_v60, 16  ;;  %vm1203_vm15 = vmand %vm1201_vm11, %vm1202_vm5  ;;  %v1285_v59 = vsel %vm6861_vm4, %v4619_v7, 0.0 }
 0x358   : > { %v851_v62 = vsel %vm6855_vm0, %v850_v47, -inf  ;;  %v852_v44 = vsel %vm6856_vm2, %v849_v5, -inf  ;;  %vm6858_vm2 = vcmp.lt.s32.totalorder %v3875_v33, 127  ;;  %vm6860_vm0 = vnez %v6750_v18 }
 0x359   : > { %v853_v50 = vmax.f32 %v843_v3, %v851_v62  ;;  %v854_v12 = vmax.f32 %v844_v26, %v852_v44  ;;  %v859_v14 = vsel %vm6858_vm2, %v4538_v43, %v858_v8  ;;  %vm6859_vm13 = vmmov %vm6858_vm2  ;;  %v1284_v21 = vsel %vm6860_vm0, %v4625_v23, 0.0 }
 0x35a   : > { %v860_v34 = vsel %vm6859_vm13, %v858_v8, %v4538_v43  ;;  %v1186_v5 = vperm.slane %v1184_v45, 1  ;;  %v4665_v47 = vsel %vm1338_vm6, 1, %v6857_v30  ;;  %vm1324_vm5 = vcmp.lt.s32.totalorder %v1322_v10, 16  ;;  %vm1223_vm2 = vmand %vm1221_vm14, %vm1222_vm1 }
 0x35b   : > { %v1204_v8 = vsel %vm1203_vm15, 1, %v6857_v30  ;;  %vm1234_vm13 = vcmp.ge.s32.totalorder %v1233_v49, 0  ;;  %vm6862_vm0 = vnez %v6742_v51  ;;  %v862_v44 = vsel %vm6863_vm9, %v860_v34, -inf }
 0x35c   : > { %v861_v62 = vsel %vm6862_vm0, %v859_v14, -inf  ;;  %v864_v26 = vmax.f32 %v854_v12, %v862_v44  ;;  %vm6864_vm6 = vcmp.lt.s32.totalorder %v3875_v33, 126  ;;  %v1224_v6 = vsel %vm1223_vm2, 1, %v6857_v30 }
 0x35d   : > { %v4669_v43 = vpop.permute.xlu0 %1101  ;;  %v863_v3 = vmax.f32 %v853_v50, %v861_v62  ;;  %vm6865_vm11 = vmmov %vm6864_vm6  ;;  %vm1235_vm14 = vcmp.lt.s32.totalorder %v1233_v49, 16  ;;  %vm6866_vm1 = vnez %v6746_v15  ;;  %vm6867_vm15 = vnez %v6748_v16 }
 0x35e   : > { %v866_v45 = vpop.permute.xlu1 %865  ;;  %v1205_v14 = vperm.slane %v1204_v8, 0  ;;  %v1206_v50 = vperm.slane %v1204_v8, 1  ;;  %v1286_v62 = vadd.f32 %v1284_v21, %v4601_v0  ;;  %vm4692_vm0 = vcmp.eq.s32.totalorder %v1185_v53, 1 }
 0x35f   : > { %v869_v4 = vsel %vm6864_vm6, %v866_v45, %v868_v31  ;;  %v870_v60 = vsel %vm6865_vm11, %v868_v31, %v866_v45  ;;  %vm4696_vm9 = vcmp.eq.s32.totalorder %v1186_v5, 1  ;;  %v6870_v44 = vmov 0 }
 0x360   : > { %v871_v51 = vsel %vm6866_vm1, %v869_v4, -inf  ;;  %v872_v52 = vsel %vm6867_vm15, %v870_v60, -inf  ;;  %v6871_v44 = vsel %vm4696_vm9, 4294967295, %v6870_v44  ;;  %vm6659_vm11 = vcmp.lt.s32.totalorder %v3875_v33, 48 }
 0x361   : > { %v4687_v12 = vmax.f32 %v863_v3, %v871_v51  ;;  %v4689_v34 = vmax.f32 %v864_v26, %v872_v52  ;;  %vm6872_vm2 = vcmp.ge.s32.totalorder %v1322_v10, 0  ;;  %vm6875_vm1 = vcmp.lt.s32.totalorder %v3875_v33, 80 }
 0x362   : > { %vm4703_vm6 = vmand %vm6872_vm2, %vm1324_vm5  ;;  %v4711_v16 = vsel %vm6875_vm1, %v4498_v27, %v4430_v46  ;;  %v1225_v0 = vperm.slane %v1224_v6, 0  ;;  %v1226_v21 = vperm.slane %v1224_v6, 1  ;;  %v1287_v53 = vadd.f32 %v1285_v59, %v4603_v22 }
 0x363   : > { %vm6876_vm15 = vmmov %vm6875_vm1  ;;  %877 = vrot.lane.b32.xlu1 %v4689_v34, %s3712_s0  ;;  %885 = vrot.lane.b32.xlu2 %v4687_v12, %s3713_s17  ;;  %v1340_v5 = vperm.slane %v4665_v47, 0  ;;  %vm6658_vm2 = vcmp.lt.s32.totalorder %v3875_v33, 64  ;;  %v6881_v6 = vmov 0  ;;  %v4747_v22 = vsel %vm6659_vm11, %v4504_v55, %v4496_v48 }
 0x364   : > { %v4717_v4 = vsel %vm6876_vm15, %v4430_v46, %v4498_v27  ;;  %vm4721_vm5 = vmand %vm1234_vm13, %vm1235_vm14  ;;  %v1341_v46 = vperm.slane %v4665_v47, 1  ;;  %875 = vrot.lane.b32.xlu0 %v4687_v12, %s3712_s0  ;;  %vm4735_vm13 = vcmp.eq.s32.totalorder %v1205_v14, 1  ;;  %v6879_v27 = vmov 0 }
 0x365   : > { %v6880_v27 = vsel %vm4735_vm13, 4294967295, %v6879_v27  ;;  %vm4739_vm14 = vcmp.eq.s32.totalorder %v1206_v50, 1  ;;  %v4753_v49 = vsel %vm6659_vm11, %v4496_v48, %v4504_v55  ;;  %v4755_v59 = vpop.permute.xlu0 %1175  ;;  %v1294_v47 = vsel %vm4692_vm0, %v4711_v16, 0.0 }
 0x366   : > { %v6882_v6 = vsel %vm4739_vm14, 4294967295, %v6881_v6  ;;  %v1295_v8 = vsel %vm4696_vm9, %v4717_v4, 0.0  ;;  %v1326_v45 = vsel %vm4703_vm6, 1, %v6857_v30  ;;  %v1237_v3 = vsel %vm4721_vm5, 1, %v6857_v30  ;;  %v1104_v48 = vpop.permute.xlu1 %1103 }
 0x367   : > { %vm4769_vm1 = vcmp.eq.s32.totalorder %v1225_v0, 1  ;;  %v6883_v55 = vmov 0  ;;  %vm4773_vm15 = vcmp.eq.s32.totalorder %v1226_v21, 1  ;;  %v6885_v26 = vmov 0 }
 0x368   : > { %v6884_v55 = vsel %vm4769_vm1, 4294967295, %v6883_v55  ;;  %v6886_v26 = vsel %vm4773_vm15, 4294967295, %v6885_v26  ;;  %v1312_v60 = vsel %vm6658_vm2, %v4516_v63, %v4506_v41  ;;  %v1313_v51 = vsel %vm6658_vm2, %v4506_v41, %v4516_v63 }
 0x369   : > { %v6887_v30 = vsel %vm6825_vm10, %v4591_v24, 0.0  ;;  %v6888_v14 = vsel %vm6826_vm8, %v4613_v1, 0.0  ;;  %v1304_v15 = vsel %vm4735_vm13, %v4753_v49, 0.0  ;;  %v1305_v41 = vsel %vm4739_vm14, %v4747_v22, 0.0  ;;  %v1114_v1 = vpop.permute.xlu2 %1113 }
 0x36a   : > { %v1151_v52 = vadd.f32 %v6887_v30, %v4599_v56  ;;  %v1152_v50 = vadd.f32 %v6888_v14, %v4607_v13  ;;  %v1296_v63 = vadd.f32 %v1294_v47, %v1286_v62  ;;  %v1297_v0 = vadd.f32 %v1295_v8, %v1287_v53 }
 0x36b   : > { %v1238_v21 = vperm.slane %v1237_v3, 0  ;;  %v1239_v10 = vperm.slane %v1237_v3, 1  ;;  %v1327_v24 = vperm.slane %v1326_v45, 0  ;;  %v1328_v56 = vperm.slane %v1326_v45, 1  ;;  %895 = vrot.lane.b32.xlu1 %v4687_v12, %s3714_s21  ;;  %897 = vrot.lane.b32.xlu2 %v4689_v34, %s3714_s21  ;;  %v1485_v45 = vld [vmem:[%s6599_s8 + $0x8] sm:$0xff]  ;;  %v2024_v3 = vld [vmem:[%s6605_s14 + $0x70] sm:$0xff] }
 0x36c   : > { %v1314_v30 = vsel %vm4769_vm1, %v1312_v60, 0.0  ;;  %v1315_v13 = vsel %vm4773_vm15, %v1313_v51, 0.0  ;;  %vm4805_vm6 = vcmp.eq.s32.totalorder %v1340_v5, 1  ;;  %vm4809_vm5 = vcmp.eq.s32.totalorder %v1341_v46, 1  ;;  %887 = vrot.lane.b32.xlu0 %v4689_v34, %s3713_s17 }
 0x36d   : > { %v1306_v62 = vadd.f32 %v1304_v15, %v1296_v63  ;;  %v1307_v53 = vadd.f32 %v1305_v41, %v1297_v0  ;;  %vm6893_vm2 = vcmp.lt.s32.totalorder %v3875_v33, 96  ;;  %vm6895_vm15 = vcmp.lt.s32.totalorder %v3875_v33, 112  ;;  %v1194_v15 = vpop.permute.xlu0 %1193 }
 0x36e   : > { %v1157_v5 = vsel %vm6893_vm2, %v4420_v32, %v4502_v54  ;;  %vm6894_vm11 = vmmov %vm6893_vm2  ;;  %v1095_v47 = vsel %vm6895_vm15, %v4508_v42, %v4510_v57  ;;  %vm4835_vm14 = vcmp.eq.s32.totalorder %v1238_v21, 1  ;;  %vm4839_vm2 = vcmp.eq.s32.totalorder %v1239_v10, 1  ;;  %v1112_v0 = vpop.permute.xlu1 %1111 }
 0x36f   : > { %v1158_v46 = vsel %vm6894_vm11, %v4502_v54, %v4420_v32  ;;  %vm6896_vm1 = vmmov %vm6895_vm15  ;;  %v1316_v32 = vadd.f32 %v1314_v30, %v1306_v62  ;;  %v1317_v54 = vadd.f32 %v1315_v13, %v1307_v53  ;;  %vm4843_vm11 = vcmp.eq.s32.totalorder %v1327_v24, 1 }
 0x370   : > { %v1096_v8 = vsel %vm6896_vm1, %v4510_v57, %v4508_v42  ;;  %vm4847_vm15 = vcmp.eq.s32.totalorder %v1328_v56, 1  ;;  %vm6905_vm1 = vcmp.lt.s32.totalorder %v3875_v33, 16  ;;  %v1159_v21 = vsel %vm6832_vm3, %v1157_v5, 0.0 }
 0x371   : > { %v1105_v57 = vsel %vm6905_vm1, %v4669_v43, %v1104_v48  ;;  %vm6906_vm13 = vmmov %vm6905_vm1  ;;  %v1160_v10 = vsel %vm6833_vm7, %v1158_v46, 0.0  ;;  %v1097_v24 = vsel %vm4122_vm12, %v1095_v47, 0.0  ;;  %vm6907_vm9 = vnez %v6774_v19 }
 0x372   : > { %v1106_v63 = vsel %vm6906_vm13, %v1104_v48, %v4669_v43  ;;  %v1098_v56 = vsel %vm6907_vm9, %v1096_v8, 0.0  ;;  %v1318_v30 = vsel %vm4835_vm14, %v1313_v51, 0.0  ;;  %v1319_v13 = vsel %vm4839_vm2, %v1312_v60, 0.0 }
 0x373   : > { %vm6908_vm13 = vcmp.lt.s32.totalorder %v3875_v33, 96  ;;  %v1320_v62 = vadd.f32 %v1318_v30, %v1316_v32  ;;  %v1321_v53 = vadd.f32 %v1319_v13, %v1317_v54  ;;  %v1107_v5 = vsel %vm6825_vm10, %v1106_v63, 0.0  ;;  %907 = vrot.lane.b32.xlu1 %v4689_v34, %s3715_s25 }
 0x374   : > { %v1115_v43 = vsel %vm6908_vm13, %v1112_v0, %v1114_v1  ;;  %vm6909_vm1 = vmmov %vm6908_vm13  ;;  %v1108_v46 = vsel %vm6826_vm8, %v1105_v57, 0.0  ;;  %v6910_v47 = vperm.slane %v4548_v58, 0  ;;  %v6913_v60 = vperm.slane %v4548_v58, 1  ;;  %905 = vrot.lane.b32.xlu0 %v4687_v12, %s3715_s25 }
 0x375   : > { %v1116_v48 = vsel %vm6909_vm1, %v1114_v1, %v1112_v0  ;;  %v1344_v1 = vsel %vm4805_vm6, %v4717_v4, 0.0  ;;  %v1345_v32 = vsel %vm4809_vm5, %v4711_v16, 0.0  ;;  %v1099_v54 = vadd.f32 %v1097_v24, %v3972_v39  ;;  %v1124_v42 = vpop.permute.xlu0 %1123 }
 0x376   : > { %vm4879_vm9 = vcmp.eq.s32.totalorder %v6910_v47, 1  ;;  %vm4885_vm13 = vcmp.eq.s32.totalorder %v6913_v60, 1  ;;  %v1100_v57 = vadd.f32 %v1098_v56, %v3974_v40  ;;  %v1161_v63 = vadd.f32 %v1159_v21, %v1151_v52  ;;  %v1122_v40 = vpop.permute.xlu2 %1121  ;;  %v6916_v52 = vld [vmem:[#allocation9_spill] sm:$0xff] }
 0x377   : > { %v1162_v0 = vadd.f32 %v1160_v10, %v1152_v50  ;;  %v1117_v58 = vsel %vm6832_vm3, %v1115_v43, 0.0  ;;  %v1118_v30 = vsel %vm6833_vm7, %v1116_v48, 0.0  ;;  %v1331_v29 = vsel %vm4843_vm11, %v4747_v22, 0.0  ;;  %v1196_v10 = vpop.permute.xlu1 %1195 }
 0x378   : > { %v1332_v39 = vsel %vm4847_vm15, %v4753_v49, 0.0  ;;  %v1109_v16 = vadd.f32 %v1107_v5, %v1099_v54  ;;  %v1110_v4 = vadd.f32 %v1108_v46, %v1100_v57  ;;  %vm6917_vm6 = vcmp.lt.s32.totalorder %v3875_v33, 32 }
 0x379   : > { %v1167_v50 = vsel %vm6917_vm6, %v6916_v52, %v4514_v25  ;;  %vm6918_vm5 = vmmov %vm6917_vm6  ;;  %v1333_v14 = vadd.f32 %v1331_v29, %v1320_v62  ;;  %v1334_v41 = vadd.f32 %v1332_v39, %v1321_v53  ;;  %vm6921_vm1 = vcmp.lt.s32.totalorder %v3875_v33, 80 }
 0x37a   : > { %v1168_v22 = vsel %vm6918_vm5, %v4514_v25, %v6916_v52  ;;  %v1119_v49 = vadd.f32 %v1117_v58, %v1109_v16  ;;  %v1120_v21 = vadd.f32 %v1118_v30, %v1110_v4  ;;  %vm6919_vm11 = vmmov %vm6918_vm5  ;;  %v1178_v13 = vsel %vm6921_vm1, %v4681_v9, %v4755_v59  ;;  %v2021_v16 = vld [vmem:[%s6605_s14 + $0x58] sm:$0xff] }
 0x37b   : > { %v1125_v24 = vsel %vm6919_vm11, %v1122_v40, %v1124_v42  ;;  %vm6920_vm15 = vmmov %vm6918_vm5  ;;  %vm6923_vm5 = vnez %v6750_v18  ;;  %v1170_v53 = vsel %vm6861_vm4, %v1167_v50, 0.0  ;;  %v1346_v47 = vadd.f32 %v1344_v1, %v1333_v14  ;;  %2085 = vperm.xlu1 %3474, %v2024_v3  }
 0x37c   : > { %v1126_v56 = vsel %vm6920_vm15, %v1124_v42, %v1122_v40  ;;  %vm6922_vm6 = vmmov %vm6921_vm1  ;;  %v1128_v48 = vsel %vm6861_vm4, %v1125_v24, 0.0  ;;  %v1169_v62 = vsel %vm6923_vm5, %v1168_v22, 0.0  ;;  %v1347_v60 = vadd.f32 %v1345_v32, %v1334_v41 }
 0x37d   : > { %v1179_v25 = vsel %vm6922_vm6, %v4755_v59, %v4681_v9  ;;  %v1127_v43 = vsel %vm6923_vm5, %v1126_v56, 0.0  ;;  %v1130_v46 = vadd.f32 %v1128_v48, %v1120_v21  ;;  %vm6924_vm11 = vcmp.lt.s32.totalorder %v3875_v33, 48  ;;  %v1428_v59 = vld [vmem:[%s6597_s6] sm:$0xff] }
 0x37e   : > { %v1129_v5 = vadd.f32 %v1127_v43, %v1119_v49  ;;  %v1198_v54 = vsel %vm6924_vm11, %v1194_v15, %v1196_v10  ;;  %vm6925_vm15 = vmmov %vm6924_vm11  ;;  %v1189_v57 = vsel %vm4692_vm0, %v1178_v13, 0.0  ;;  %vm6926_vm1 = vnez %v6871_v44  ;;  %1431 = vperm.xlu0 %3472, %v1428_v59   ;;  %v1484_v49 = vld [vmem:[%s6599_s8] sm:$0xff]  ;;  %v2218_v59 = vld [vmem:[%s6606_s15 + $0x70] sm:$0xff] }
 0x37f   : > { %v1199_v9 = vsel %vm6925_vm15, %v1196_v10, %v1194_v15  ;;  %v1190_v58 = vsel %vm6926_vm1, %v1179_v25, 0.0  ;;  %v4952_v1 = vmul.f32 0.04, %v1130_v46  ;;  %v1171_v32 = vadd.f32 %v1169_v62, %v1161_v63  ;;  %v1214_v51 = vpop.permute.xlu1 %1213  ;;  %v1486_v62 = vld [vmem:[%s6599_s8 + $0x10] sm:$0xff]  ;;  %v1488_v46 = vld [vmem:[%s6599_s8 + $0x20] sm:$0xff] }
 0x380   : > { %v4950_v30 = vmul.f32 0.04, %v1129_v5  ;;  %v1172_v29 = vadd.f32 %v1170_v53, %v1162_v0  ;;  %vm6929_vm6 = vnez %v6880_v27  ;;  %vm6930_vm11 = vnez %v6882_v6  ;;  %v1377_v53 = vld [vmem:[%s6595_s4] sm:$0xff]  ;;  %v1487_v5 = vld [vmem:[%s6599_s8 + $0x18] sm:$0xff] }
 0x381   : > { %6928 = vst [vmem:[#allocation10_spill] sm:$0xff] %v4952_v1  ;;  %v1209_v39 = vsel %vm6929_vm6, %v1199_v9, 0.0  ;;  %v1210_v15 = vsel %vm6930_vm11, %v1198_v54, 0.0  ;;  %v1357_v31 = vsel %vm4879_vm9, %v4619_v7, 0.0  ;;  %v1358_v44 = vsel %vm4885_vm13, %v4625_v23, 0.0  ;;  %1416 = vmatpush.msrb.mxu3 %v4952_v1  ;;  %v1216_v7 = vpop.permute.xlu2 %1215  ;;  %1380 = vperm.xlu2 %3473, %v1377_v53   ;;  %v2219_v54 = vld [vmem:[%s6606_s15 + $0x78] sm:$0xff] }
 0x382   : > { %6927 = vst [vmem:[#allocation9_spill] sm:$0xff] %v4950_v30  ;;  %1396 = vmatpush.msrb.mxu2 %v4950_v30  ;;  %v1191_v40 = vadd.f32 %v1189_v57, %v1171_v32  ;;  %v1192_v63 = vadd.f32 %v1190_v58, %v1172_v29  ;;  %v6931_v27 = vperm.slane %v4541_v61, 0  ;;  %v6934_v0 = vperm.slane %v4541_v61, 1  ;;  %v2206_v9 = vld [vmem:[%s6606_s15 + $0x10] sm:$0xff]  ;;  %v2023_v57 = vld [vmem:[%s6605_s14 + $0x68] sm:$0xff]  ;;  %v2041_v58 = vld [vmem:[%s6605_s14 + $0xf8] sm:$0xff] }
 0x383   : > { %v1359_v8 = vadd.f32 %v1357_v31, %v1346_v47  ;;  %v1360_v23 = vadd.f32 %v1358_v44, %v1347_v60  ;;  %vm6937_vm9 = vcmp.lt.s32.totalorder %v3875_v33, 64  ;;  %vm6939_vm1 = vnez %v6884_v55  ;;  %v2025_v47 = vld [vmem:[%s6605_s14 + $0x78] sm:$0xff]  ;;  %v2217_v32 = vld [vmem:[%s6606_s15 + $0x68] sm:$0xff]  ;;  %v2232_v29 = vld [vmem:[%s6606_s15 + $0xe0] sm:$0xff] }
 0x384   : > { %vm4968_vm0 = vcmp.eq.s32.totalorder %v6931_v27, 1  ;;  %vm4974_vm15 = vcmp.eq.s32.totalorder %v6934_v0, 1  ;;  %v1211_v4 = vadd.f32 %v1209_v39, %v1191_v40  ;;  %v1212_v52 = vadd.f32 %v1210_v15, %v1192_v63  ;;  %vm6938_vm13 = vmmov %vm6937_vm9  ;;  %v2207_v60 = vld [vmem:[%s6606_s15 + $0x18] sm:$0xff]  ;;  %v2022_v39 = vld [vmem:[%s6605_s14 + $0x60] sm:$0xff] }
 0x385   : > { %v1218_v50 = vsel %vm6937_vm9, %v1214_v51, %v1216_v7  ;;  %v1219_v22 = vsel %vm6938_vm13, %v1216_v7, %v1214_v51  ;;  %vm6940_vm6 = vnez %v6886_v26  ;;  %v1370_v21 = vsel %vm4968_vm0, %v4566_v2, 0.0  ;;  %v2013_v15 = vld [vmem:[%s6605_s14 + $0x18] sm:$0xff]  ;;  %v2216_v44 = vld [vmem:[%s6606_s15 + $0x60] sm:$0xff]  ;;  %v2012_v40 = vld [vmem:[%s6605_s14 + $0x10] sm:$0xff] }
 0x386   : > { %v1229_v14 = vsel %vm6939_vm1, %v1218_v50, 0.0  ;;  %v1230_v61 = vsel %vm6940_vm6, %v1219_v22, 0.0  ;;  %v1371_v10 = vsel %vm4974_vm15, %v4556_v11, 0.0  ;;  %v1242_v55 = vsel %vm4835_vm14, %v1219_v22, 0.0  ;;  %1493 = vperm.xlu0 %3472, %v1484_v49   ;;  %v2231_v31 = vld [vmem:[%s6606_s15 + $0xd8] sm:$0xff]  ;;  %2052 = vperm.xlu1 %3474, %v2013_v15   ;;  %v2229_v63 = vld [vmem:[%s6606_s15 + $0xc8] sm:$0xff] }
 0x387   : > { %v1231_v41 = vadd.f32 %v1229_v14, %v1211_v4  ;;  %v1232_v42 = vadd.f32 %v1230_v61, %v1212_v52  ;;  %v1243_v26 = vsel %vm4839_vm2, %v1218_v50, 0.0  ;;  %v1372_v13 = vadd.f32 %v1370_v21, %v1359_v8  ;;  %v2011_v8 = vld [vmem:[%s6605_s14 + $0x8] sm:$0xff]  ;;  %v2028_v15 = vld [vmem:[%s6605_s14 + $0x90] sm:$0xff] }
 0x388   : > { %v1373_v25 = vadd.f32 %v1371_v10, %v1360_v23  ;;  %vm6945_vm14 = vcmp.lt.s32.totalorder %v3875_v33, 32  ;;  %v2228_v23 = vld [vmem:[%s6606_s15 + $0xc0] sm:$0xff]  ;;  %vm6947_vm11 = vcmp.lt.s32.totalorder %v3875_v33, 16 }
 0x389   : > { %v1244_v24 = vadd.f32 %v1242_v55, %v1231_v41  ;;  %v1245_v56 = vadd.f32 %v1243_v26, %v1232_v42  ;;  %v5005_v2 = vmul.f32 0.00591716, %v1372_v13  ;;  %1513 = vperm.xlu2 %3473, %v1488_v46   ;;  %vm6946_vm2 = vmmov %vm6945_vm14 }
 0x38a   : > { %v5007_v11 = vmul.f32 0.00591716, %v1373_v25  ;;  %vm6948_vm0 = vmmov %vm6947_vm11 }
 0x38b   : > { %v4999_v43 = vmul.f32 0.012345679, %v1244_v24  ;;  %v5001_v48 = vmul.f32 0.012345679, %v1245_v56  ;;  %6943 = vst [vmem:[#allocation13_spill] sm:$0xff] %v5005_v2 }
 0x38c   : > { %6944 = vst [vmem:[#allocation14_spill] sm:$0xff] %v5007_v11 }
 0x38d   : > { %6941 = vst [vmem:[#allocation11_spill] sm:$0xff] %v4999_v43  ;;  %1397 = vmatpush.msrb.mxu2 %v4999_v43  ;;  %1417 = vmatpush.msrb.mxu3 %v5001_v48 }
 0x38e   : > { %6942 = vst [vmem:[#allocation12_spill] sm:$0xff] %v5001_v48  ;;  %1498 = vperm.xlu0 %3472, %v1485_v45   ;;  %2049 = vperm.xlu1 %3474, %v2012_v40   ;;  %v2213_v40 = vld [vmem:[%s6606_s15 + $0x48] sm:$0xff] }
 0x38f   : > { %1398 = vmatpush.msrb.mxu2 %v5005_v2  ;;  %1418 = vmatpush.msrb.mxu3 %v5007_v11 }
 0x391   : > { %2246 = vperm.xlu2 %3473, %v2207_v60   ;;  %v6958_v60 = vld [vmem:[#allocation6_spill] sm:$0xff] }
 0x396   : > { %1503 = vperm.xlu0 %3472, %v1486_v62   ;;  %2046 = vperm.xlu1 %3474, %v2011_v8   ;;  %v2017_v8 = vld [vmem:[%s6605_s14 + $0x38] sm:$0xff] }
 0x399   : > { %2243 = vperm.xlu2 %3473, %v2206_v9   ;;  %v6959_v9 = vld [vmem:[#allocation3_spill] sm:$0xff] }
 0x39e   : > { %1508 = vperm.xlu0 %3472, %v1487_v5   ;;  %2330 = vperm.xlu1 %3474, %v2235_v38  }
 0x3a1   : > { %2136 = vperm.xlu2 %3473, %v2041_v58   ;;  %v2223_v58 = vld [vmem:[%s6606_s15 + $0x98] sm:$0xff] }
 0x3a6   : > { %2088 = vperm.xlu0 %3472, %v2025_v47   ;;  %v6957_v47 = vld [vmem:[#allocation5_spill] sm:$0xff] }
 0x3a9   : > { %2321 = vperm.xlu2 %3473, %v2232_v29   ;;  %v2010_v29 = vld [vmem:[%s6605_s14] sm:$0xff] }
 0x3aa   : > { %2043 = vperm.xlu1 %3474, %v2010_v29  }
 0x3ae   : > { %2282 = vperm.xlu0 %3472, %v2219_v54   ;;  %v1376_v54 = vld [vmem:[%s6594_s3] sm:$0xff] }
 0x3b1   : > { %2318 = vperm.xlu2 %3473, %v2231_v31   ;;  %v1427_v31 = vld [vmem:[%s6596_s5] sm:$0xff] }
 0x3b6   : > { %2279 = vperm.xlu0 %3472, %v2218_v59   ;;  %v6960_v59 = vld [vmem:[#allocation4_spill] sm:$0xff] }
 0x3b9   : > { %2312 = vperm.xlu2 %3473, %v2229_v63  }
 0x3bd   : > { %v886_v0 = vpop.permute.xlu2 %885 }
 0x3be   : > { %2082 = vperm.xlu0 %3472, %v2023_v57   ;;  %v2214_v57 = vld [vmem:[%s6606_s15 + $0x50] sm:$0xff] }
 0x3c1   : > { %2309 = vperm.xlu2 %3473, %v2228_v23   ;;  %v1479_v23 = vld [vmem:[%s6598_s7 + $0x10] sm:$0xff] }
 0x3c5   : > { %v898_v21 = vpop.permute.xlu2 %897 }
 0x3c6   : > { %2276 = vperm.xlu0 %3472, %v2217_v32  }
 0x3ce   : > { %2079 = vperm.xlu0 %3472, %v2022_v39   ;;  %v2019_v39 = vld [vmem:[%s6605_s14 + $0x48] sm:$0xff] }
 0x3d5   : > { %v878_v27 = vpop.permute.xlu1 %877 }
 0x3d6   : > { %2273 = vperm.xlu0 %3472, %v2216_v44   ;;  %v876_v6 = vpop.permute.xlu0 %875 }
 0x3d7   : > { %v879_v7 = vsel %vm6945_vm14, %v876_v6, %v878_v27  ;;  %v880_v51 = vsel %vm6946_vm2, %v878_v27, %v876_v6  ;;  %v2018_v27 = vld [vmem:[%s6605_s14 + $0x40] sm:$0xff] }
 0x3d8   : > { %v881_v52 = vsel %vm6923_vm5, %v880_v51, -inf  ;;  %v882_v50 = vsel %vm6861_vm4, %v879_v7, -inf  ;;  %vm6949_vm4 = vcmp.lt.s32.totalorder %v3875_v33, 112  ;;  %v1477_v6 = vld [vmem:[%s6598_s7] sm:$0xff]  ;;  %v1478_v7 = vld [vmem:[%s6598_s7 + $0x8] sm:$0xff] }
 0x3d9   : > { %v883_v49 = vmax.f32 %v4687_v12, %v881_v52  ;;  %v884_v18 = vmax.f32 %v4689_v34, %v882_v50  ;;  %vm6950_vm5 = vmmov %vm6949_vm4  ;;  %v2225_v12 = vld [vmem:[%s6606_s15 + $0xa8] sm:$0xff]  ;;  %v2211_v52 = vld [vmem:[%s6606_s15 + $0x38] sm:$0xff] }
 0x3da   : > { %2300 = vperm.xlu2 %3473, %v2225_v12   ;;  %v1480_v50 = vld [vmem:[%s6598_s7 + $0x18] sm:$0xff]  ;;  %v2205_v12 = vld [vmem:[%s6606_s15 + $0x8] sm:$0xff] }
 0x3dd   : > { %v896_v4 = vpop.permute.xlu1 %895 }
 0x3de   : > { %2076 = vperm.xlu0 %3472, %v2021_v16   ;;  %v888_v22 = vpop.permute.xlu0 %887  ;;  %v899_v10 = vsel %vm6949_vm4, %v896_v4, %v898_v21  ;;  %v900_v55 = vsel %vm6950_vm5, %v898_v21, %v896_v4  ;;  %v2212_v16 = vld [vmem:[%s6606_s15 + $0x40] sm:$0xff]  ;;  %v2209_v21 = vld [vmem:[%s6606_s15 + $0x28] sm:$0xff] }
 0x3df   : > { %v889_v14 = vsel %vm6947_vm11, %v886_v0, %v888_v22  ;;  %v890_v61 = vsel %vm6948_vm0, %v888_v22, %v886_v0  ;;  %v901_v24 = vsel %vm4122_vm12, %v899_v10, -inf  ;;  %vm6665_vm12 = vcmask 457728  }
 0x3e0   : > { %v891_v41 = vsel %vm6825_vm10, %v890_v61, -inf  ;;  %v892_v42 = vsel %vm6826_vm8, %v889_v14, -inf  ;;  %vm6951_vm10 = vnez %v6774_v19  ;;  %vm6952_vm8 = vcmp.lt.s32.totalorder %v3875_v33, 96  ;;  %v2020_v19 = vld [vmem:[%s6605_s14 + $0x50] sm:$0xff]  ;;  %v2224_v33 = vld [vmem:[%s6606_s15 + $0xa0] sm:$0xff] }
 0x3e1   : > { %v893_v37 = vmax.f32 %v883_v49, %v891_v41  ;;  %v894_v26 = vmax.f32 %v884_v18, %v892_v42  ;;  %v902_v56 = vsel %vm6951_vm10, %v900_v55, -inf  ;;  %vm6953_vm15 = vmmov %vm6952_vm8  ;;  %v2016_v14 = vld [vmem:[%s6605_s14 + $0x30] sm:$0xff]  ;;  %v1481_v61 = vld [vmem:[%s6598_s7 + $0x20] sm:$0xff] }
 0x3e2   : > { %2297 = vperm.xlu2 %3473, %v2224_v33   ;;  %v2210_v42 = vld [vmem:[%s6606_s15 + $0x30] sm:$0xff]  ;;  %v2015_v18 = vld [vmem:[%s6605_s14 + $0x28] sm:$0xff]  ;;  %v2014_v55 = vld [vmem:[%s6605_s14 + $0x20] sm:$0xff] }
 0x3e3   : > { %v903_v25 = vmax.f32 %v893_v37, %v901_v24  ;;  %v904_v45 = vmax.f32 %v894_v26, %v902_v56  ;;  %v2208_v26 = vld [vmem:[%s6606_s15 + $0x20] sm:$0xff]  ;;  %v2040_v24 = vld [vmem:[%s6605_s14 + $0xf0] sm:$0xff] }
 0x3e5   : > { %v908_v34 = vpop.permute.xlu1 %907 }
 0x3e6   : > { %2270 = vperm.xlu0 %3472, %v2215_v20   ;;  %v906_v13 = vpop.permute.xlu0 %905 }
 0x3e7   : > { %v909_v3 = vsel %vm6952_vm8, %v906_v13, %v908_v34  ;;  %v910_v62 = vsel %vm6953_vm15, %v908_v34, %v906_v13  ;;  %v2234_v13 = vld [vmem:[%s6606_s15 + $0xf0] sm:$0xff] }
 0x3e8   : > { %v911_v53 = vsel %vm6832_vm3, %v909_v3, -inf  ;;  %v912_v5 = vsel %vm6833_vm7, %v910_v62, -inf  ;;  %v1381_v3 = vpop.permute.xlu2 %1380 }
 0x3e9   : > { %v5126_v17 = vmax.f32 %v903_v25, %v911_v53  ;;  %v5128_v46 = vmax.f32 %v904_v45, %v912_v5  ;;  %v2039_v45 = vld [vmem:[%s6605_s14 + $0xe8] sm:$0xff] }
 0x3ea   : > { %2294 = vperm.xlu2 %3473, %v2223_v58   ;;  %v2038_v58 = vld [vmem:[%s6605_s14 + $0xe0] sm:$0xff] }
 0x3eb   : > { %6954 = vst [vmem:[#allocation15_spill] sm:$0xff] %v5126_v17  ;;  %1399 = vmatpush.msrb.mxu2 %v5126_v17  ;;  %1419 = vmatpush.msrb.mxu3 %v5128_v46 }
 0x3ec   : > { %6955 = vst [vmem:[#allocation16_spill] sm:$0xff] %v5128_v46 }
 0x3ed   : > { %1400 = vmatpush.msrb.mxu2 %v4452_v28  ;;  %1420 = vmatpush.msrb.mxu3 %v6956_v35 }
 0x3ee   : > { %2073 = vperm.xlu0 %3472, %v2020_v19  }
 0x3ef   : > { %1401 = vmatpush.msrb.mxu2 %v6957_v47  ;;  %1421 = vmatpush.msrb.mxu3 %v6958_v60 }
 0x3f0   : > { %v5140_v36 = vpop.permute.xlu0 %1431 }
 0x3f1   : > { %1402 = vmatpush.msrb.mxu2 %v6959_v9  ;;  %1422 = vmatpush.msrb.mxu3 %v6960_v59 }
 0x3f2   : > { %3353 = vmatmul.msk.f32.vlgmr.msrb.gmra.mxu2 %vm6665_vm12, %v1376_v54  ;;  %3354 = vmatmul.msk.f32.vlgmr.msrb.gmra.mxu3 %vm6665_vm12, %v1376_v54  ;;  %v2233_v54 = vld [vmem:[%s6606_s15 + $0xe8] sm:$0xff] }
 0x3f3   : > { %1446 = vmatpush.msra.mxu2 %v4950_v30  ;;  %1466 = vmatpush.msra.mxu3 %v4952_v1 }
 0x3f4   : > { %2097 = vperm.xlu2 %3473, %v2028_v15  }
 0x3f5   : > { %1447 = vmatpush.msra.mxu2 %v4999_v43  ;;  %1467 = vmatpush.msra.mxu3 %v5001_v48 }
 0x3f6   : > { %2267 = vperm.xlu0 %3472, %v2214_v57  }
 0x3f7   : > { %1448 = vmatpush.msra.mxu2 %v5005_v2  ;;  %1468 = vmatpush.msra.mxu3 %v5007_v11 }
 0x3f8   : > { %v5161_v32 = vpop.permute.xlu0 %1493 }
 0x3f9   : > { %6961 = vst [vmem:[#allocation17_spill] sm:$0xff] %v5161_v32  ;;  %1449 = vmatpush.msra.mxu2 %v5126_v17  ;;  %1469 = vmatpush.msra.mxu3 %v5128_v46 }
 0x3fb   : > { %1450 = vmatpush.msra.mxu2 %v4452_v28  ;;  %1470 = vmatpush.msra.mxu3 %v6956_v35 }
 0x3fd   : > { %1451 = vmatpush.msra.mxu2 %v6957_v47  ;;  %1471 = vmatpush.msra.mxu3 %v6958_v60 }
 0x3fe   : > { %2070 = vperm.xlu0 %3472, %v2019_v39  }
 0x3ff   : > { %1452 = vmatpush.msra.mxu2 %v6959_v9  ;;  %1472 = vmatpush.msra.mxu3 %v6960_v59 }
 0x400   : > { %v5183_v44 = vpop.permute.xlu0 %1498  ;;  %3355 = vmatmul.msk.f32.vlgmr.msra.gmra.mxu2 %vm6665_vm12, %v1427_v31  ;;  %3356 = vmatmul.msk.f32.vlgmr.msra.gmra.mxu3 %vm6665_vm12, %v1427_v31 }
 0x401   : > { %6962 = vst [vmem:[#allocation18_spill] sm:$0xff] %v5183_v44  ;;  %1556 = vmatpush.msrb.mxu2 %v4950_v30  ;;  %1594 = vmatpush.msrb.mxu3 %v4952_v1 }
 0x403   : > { %1557 = vmatpush.msrb.mxu2 %v4999_v43  ;;  %1595 = vmatpush.msrb.mxu3 %v5001_v48 }
 0x405   : > { %1558 = vmatpush.msrb.mxu2 %v5005_v2  ;;  %1596 = vmatpush.msrb.mxu3 %v5007_v11 }
 0x406   : > { %2264 = vperm.xlu0 %3472, %v2213_v40  }
 0x407   : > { %1559 = vmatpush.msrb.mxu2 %v5126_v17  ;;  %1597 = vmatpush.msrb.mxu3 %v5128_v46 }
 0x408   : > { %v5198_v63 = vpop.permute.xlu0 %1503 }
 0x409   : > { %6963 = vst [vmem:[#allocation19_spill] sm:$0xff] %v5198_v63  ;;  %1560 = vmatpush.msrb.mxu2 %v4452_v28  ;;  %1598 = vmatpush.msrb.mxu3 %v6956_v35  ;;  %v6996_v28 = vmov 0 }
 0x40b   : > { %1561 = vmatpush.msrb.mxu2 %v6957_v47  ;;  %1599 = vmatpush.msrb.mxu3 %v6958_v60  ;;  %v6991_v60 = vmov 0  ;;  %v6994_v47 = vmov 0 }
 0x40d   : > { %1562 = vmatpush.msrb.mxu2 %v6959_v9  ;;  %1600 = vmatpush.msrb.mxu3 %v6960_v59 }
 0x40e   : > { %2067 = vperm.xlu0 %3472, %v2018_v27   ;;  %3357 = vmatmul.msk.f32.vlgmr.msrb.gmra.mxu2 %vm6665_vm12, %v1477_v6  ;;  %v2230_v27 = vld [vmem:[%s6606_s15 + $0xd0] sm:$0xff] }
 0x40f   : > { %3364 = vmatmul.msk.f32.vlgmr.msrb.gmra.mxu3 %vm6665_vm12, %v1477_v6 }
 0x410   : > { %v5216_v0 = vpop.permute.xlu0 %1508 }
 0x411   : > { %6964 = vst [vmem:[#allocation20_spill] sm:$0xff] %v5216_v0 }
 0x416   : > { %2261 = vperm.xlu0 %3472, %v2212_v16   ;;  %3358 = vmatmul.msk.f32.gmra.mxu2 %vm6665_vm12, %v1478_v7  ;;  %v2035_v16 = vld [vmem:[%s6605_s14 + $0xc8] sm:$0xff] }
 0x417   : > { %3365 = vmatmul.msk.f32.gmra.mxu3 %vm6665_vm12, %v1478_v7  ;;  %v3692_v7 = vld [vmem:[%s6603_s12] sm:$0x3] }
 0x418   : > { %v5226_v51 = vpop.permute.xlu0 %2088 }
 0x41e   : > { %2064 = vperm.xlu0 %3472, %v2017_v8   ;;  %3359 = vmatmul.msk.f32.gmra.mxu2 %vm6665_vm12, %v1479_v23  ;;  %v3693_v8 = vld [vmem:[%s6604_s13] sm:$0x3] }
 0x41f   : > { %3366 = vmatmul.msk.f32.gmra.mxu3 %vm6665_vm12, %v1479_v23  ;;  %v5329_v23 = vperm.slane %v3693_v8, 0 }
 0x420   : > { %v5236_v4 = vpop.permute.xlu0 %2282 }
 0x426   : > { %2258 = vperm.xlu0 %3472, %v2211_v52   ;;  %3360 = vmatmul.msk.f32.gmra.mxu2 %vm6665_vm12, %v1480_v50  ;;  %v5331_v52 = vperm.slane %v3693_v8, 1 }
 0x427   : > { %3367 = vmatmul.msk.f32.gmra.mxu3 %vm6665_vm12, %v1480_v50  ;;  %v5333_v50 = vperm.slane %v3692_v7, 1 }
 0x428   : > { %v5246_v22 = vpop.permute.xlu0 %2279 }
 0x42e   : > { %2061 = vperm.xlu0 %3472, %v2016_v14   ;;  %3361 = vmatmul.msk.f32.gmra.mxu2 %vm6665_vm12, %v1481_v61 }
 0x42f   : > { %3368 = vmatmul.msk.f32.gmra.mxu3 %vm6665_vm12, %v1481_v61  ;;  %v7029_v61 = vmov 0 }
 0x430   : > { %v5256_v41 = vpop.permute.xlu0 %2082 }
 0x436   : > { %2255 = vperm.xlu0 %3472, %v2210_v42   ;;  %v2227_v42 = vld [vmem:[%s6606_s15 + $0xb8] sm:$0xff] }
 0x438   : > { %v5261_v49 = vpop.permute.xlu0 %2276 }
 0x43e   : > { %2058 = vperm.xlu0 %3472, %v2015_v18   ;;  %v6967_v18 = vmov 0 }
 0x440   : > { %v5266_v20 = vpop.permute.xlu0 %2079 }
 0x446   : > { %2252 = vperm.xlu0 %3472, %v2209_v21  }
 0x448   : > { %v5271_v10 = vpop.permute.xlu0 %2273 }
 0x44e   : > { %2055 = vperm.xlu0 %3472, %v2014_v55   ;;  %v2032_v55 = vld [vmem:[%s6605_s14 + $0xb0] sm:$0xff] }
 0x450   : > { %v5276_v37 = vpop.permute.xlu0 %2076 }
 0x456   : > { %2249 = vperm.xlu0 %3472, %v2208_v26  }
 0x458   : > { %v5281_v38 = vpop.permute.xlu0 %2270 }
 0x45e   : > { %2240 = vperm.xlu0 %3472, %v2205_v12  }
 0x460   : > { %v5286_v34 = vpop.permute.xlu0 %2073 }
 0x466   : > { %2133 = vperm.xlu0 %3472, %v2040_v24   ;;  %v2226_v24 = vld [vmem:[%s6606_s15 + $0xb0] sm:$0xff] }
 0x468   : > { %v5291_v56 = vpop.permute.xlu0 %2267 }
 0x46e   : > { %2327 = vperm.xlu0 %3472, %v2234_v13  }
 0x470   : > { %v5296_v25 = vpop.permute.xlu0 %2070 }
 0x475   : > { %v1404_v62 = vpop.f32.mrf.mxu2  ;;  %v1424_v53 = vpop.f32.mrf.mxu3 }
 0x476   : > { %2130 = vperm.xlu0 %3472, %v2039_v45   ;;  %v1405_v5 = vadd.f32 %v1404_v62, %v1381_v3  ;;  %v1425_v19 = vadd.f32 %v1424_v53, %v1381_v3  ;;  %v2031_v3 = vld [vmem:[%s6605_s14 + $0xa8] sm:$0xff]  ;;  %v2029_v53 = vld [vmem:[%s6605_s14 + $0x98] sm:$0xff] }
 0x478   : > { %v5301_v33 = vpop.permute.xlu0 %2264  ;;  %1655 = vxpose.xlu2.b32.start.end [1/1] (short) %v1425_v19, 128  ;;  %1623 = vxpose.xlu1.b32.start.end [1/1] (short) %v1405_v5, 128  ;;  %v2027_v19 = vld [vmem:[%s6605_s14 + $0x88] sm:$0xff] }
 0x47e   : > { %2324 = vperm.xlu0 %3472, %v2233_v54  }
 0x480   : > { %v5306_v57 = vpop.permute.xlu0 %2067 }
 0x483   : > { %v1454_v29 = vpop.f32.mrf.mxu2  ;;  %v1474_v39 = vpop.f32.mrf.mxu3 }
 0x484   : > { %v1455_v15 = vadd.f32 %v1454_v29, %v5140_v36  ;;  %v1475_v31 = vadd.f32 %v1474_v39, %v5140_v36  ;;  %v5324_v36 = vperm.slane %v3692_v7, 0  ;;  %v5405_v7 = vpop.permute.xlu1 %2085 }
 0x486   : > { %2127 = vperm.xlu0 %3472, %v2038_v58   ;;  %1799 = vmatpush.msra.mxu0 %v1455_v15  ;;  %v5385_v58 = vpop.permute.xlu2 %1513 }
 0x487   : > { %1912 = vmatpush.msra.mxu1 %v1475_v31  ;;  %6973 = vst [vmem:[#allocation21_spill] sm:$0xff] %v5385_v58 }
 0x488   : > { %v5313_v40 = vpop.permute.xlu0 %2261 }
 0x48e   : > { %2315 = vperm.xlu0 %3472, %v2230_v27   ;;  %v5389_v39 = vpop.permute.xlu2 %2246 }
 0x490   : > { %v2065_v6 = vpop.permute.xlu0 %2064 }
 0x491   : > { %vm2154_vm3 = vcmp.eq.s32.totalorder %v2065_v6, %v5324_v36  ;;  %vm2155_vm13 = vcmp.eq.s32.totalorder %v2065_v6, %v5333_v50  ;;  %v6974_v6 = vmov 0 }
 0x496   : > { %2118 = vperm.xlu0 %3472, %v2035_v16   ;;  %v5391_v31 = vpop.permute.xlu2 %2243  ;;  %v6977_v16 = vmov 0 }
 0x498   : > { %v2259_v14 = vpop.permute.xlu0 %2258 }
 0x499   : > { %vm2348_vm7 = vcmp.eq.s32.totalorder %v2259_v14, %v5329_v23  ;;  %vm2349_vm9 = vcmp.eq.s32.totalorder %v2259_v14, %v5331_v52 }
 0x49a   : > { %vm5339_vm1 = vmor %vm2154_vm3, %vm2348_vm7 }
 0x49b   : > { %vm5346_vm6 = vmor %vm2155_vm13, %vm2349_vm9 }
 0x49c   : > { %v6968_v18 = vsel %vm5346_vm6, 4294967295, %v6967_v18 }
 0x49e   : > { %2306 = vperm.xlu0 %3472, %v2227_v42   ;;  %v5407_v14 = vpop.permute.xlu2 %2136  ;;  %v5409_v42 = vpop.permute.xlu1 %2052 }
 0x49f   : > { %6980 = vst [vmem:[#allocation24_spill] sm:$0xff] %v5407_v14 }
 0x4a0   : > { %v2062_v21 = vpop.permute.xlu0 %2061 }
 0x4a1   : > { %vm2153_vm14 = vcmp.eq.s32.totalorder %v2062_v21, %v5333_v50  ;;  %vm2152_vm0 = vcmp.eq.s32.totalorder %v2062_v21, %v5324_v36 }
 0x4a6   : > { %2109 = vperm.xlu0 %3472, %v2032_v55   ;;  %v6981_v55 = vmov 0 }
 0x4a8   : > { %v2256_v26 = vpop.permute.xlu0 %2255 }
 0x4a9   : > { %vm2346_vm2 = vcmp.eq.s32.totalorder %v2256_v26, %v5329_v23  ;;  %vm2347_vm11 = vcmp.eq.s32.totalorder %v2256_v26, %v5331_v52  ;;  %v6983_v26 = vmov 0 }
 0x4aa   : > { %vm5357_vm4 = vmor %vm2153_vm14, %vm2347_vm11 }
 0x4ab   : > { %vm5364_vm5 = vmor %vm2152_vm0, %vm2346_vm2 }
 0x4ae   : > { %2303 = vperm.xlu0 %3472, %v2226_v24   ;;  %v2322_v24 = vpop.permute.xlu2 %2321 }
 0x4af   : > { %vm2391_vm12 = vcmp.eq.s32.totalorder %v2322_v24, %v5331_v52 }
 0x4b0   : > { %v5368_v45 = vpop.permute.xlu0 %2058 }
 0x4b6   : > { %2106 = vperm.xlu0 %3472, %v2031_v3  }
 0x4b8   : > { %v5373_v62 = vpop.permute.xlu0 %2252 }
 0x4be   : > { %2100 = vperm.xlu0 %3472, %v2029_v53   ;;  %v5427_v53 = vpop.permute.xlu1 %2049 }
 0x4c0   : > { %v5378_v5 = vpop.permute.xlu0 %2055 }
 0x4c6   : > { %2094 = vperm.xlu0 %3472, %v2027_v19   ;;  %v6985_v19 = vmov 0 }
 0x4c8   : > { %v5383_v54 = vpop.permute.xlu0 %2249 }
 0x4d0   : > { %v5387_v29 = vpop.permute.xlu0 %2240 }
 0x4d8   : > { %v2134_v15 = vpop.permute.xlu0 %2133 }
 0x4d9   : > { %vm2200_vm10 = vcmp.eq.s32.totalorder %v2134_v15, %v5324_v36  ;;  %vm2201_vm3 = vcmp.eq.s32.totalorder %v2134_v15, %v5333_v50  ;;  %v6987_v15 = vmov 0 }
 0x4e0   : > { %v2328_v27 = vpop.permute.xlu0 %2327 }
 0x4e1   : > { %vm2394_vm8 = vcmp.eq.s32.totalorder %v2328_v27, %v5329_v23  ;;  %vm2395_vm15 = vcmp.eq.s32.totalorder %v2328_v27, %v5331_v52  ;;  %v5437_v27 = vpop.permute.xlu2 %2318 }
 0x4e2   : > { %vm5397_vm7 = vmor %vm2200_vm10, %vm2394_vm8  ;;  %vm2390_vm8 = vcmp.eq.s32.totalorder %v2322_v24, %v5329_v23  ;;  %v6989_v24 = vmov 0 }
 0x4e3   : > { %v6975_v6 = vsel %vm5397_vm7, 4294967295, %v6974_v6  ;;  %vm5401_vm9 = vmor %vm2201_vm3, %vm2395_vm15 }
 0x4e4   : > { %6976 = vst [vmem:[#allocation22_spill] sm:$0xff] %v6975_v6  ;;  %v6978_v16 = vsel %vm5401_vm9, 4294967295, %v6977_v16  ;;  %vm6691_vm9 = vcmask 64512  }
 0x4e5   : > { %6979 = vst [vmem:[#allocation23_spill] sm:$0xff] %v6978_v16 }
 0x4e8   : > { %v2131_v8 = vpop.permute.xlu0 %2130 }
 0x4e9   : > { %vm2198_vm13 = vcmp.eq.s32.totalorder %v2131_v8, %v5324_v36  ;;  %vm2199_vm11 = vcmp.eq.s32.totalorder %v2131_v8, %v5333_v50  ;;  %v2313_v59 = vpop.permute.xlu2 %2312 }
 0x4f0   : > { %v2325_v21 = vpop.permute.xlu0 %2324 }
 0x4f1   : > { %vm2392_vm14 = vcmp.eq.s32.totalorder %v2325_v21, %v5329_v23  ;;  %vm2393_vm2 = vcmp.eq.s32.totalorder %v2325_v21, %v5331_v52  ;;  %v5441_v21 = vpop.permute.xlu1 %2046  ;;  %v5459_v11 = vpop.permute.xlu2 %2309 }
 0x4f2   : > { %vm5415_vm0 = vmor %vm2198_vm13, %vm2392_vm14 }
 0x4f3   : > { %v6982_v55 = vsel %vm5415_vm0, 4294967295, %v6981_v55  ;;  %vm5419_vm10 = vmor %vm2199_vm11, %vm2393_vm2  ;;  %vm2384_vm2 = vcmp.eq.s32.totalorder %v2313_v59, %v5329_v23 }
 0x4f4   : > { %v6984_v26 = vsel %vm5419_vm10, 4294967295, %v6983_v26 }
 0x4f8   : > { %v2128_v3 = vpop.permute.xlu0 %2127 }
 0x4f9   : > { %vm2196_vm15 = vcmp.eq.s32.totalorder %v2128_v3, %v5324_v36  ;;  %vm2197_vm3 = vcmp.eq.s32.totalorder %v2128_v3, %v5333_v50  ;;  %v5455_v35 = vpop.permute.xlu1 %2330 }
 0x4fa   : > { %vm5429_vm13 = vmor %vm2196_vm15, %vm2390_vm8  ;;  %vm2385_vm15 = vcmp.eq.s32.totalorder %v2313_v59, %v5331_v52  ;;  %6993 = vst [vmem:[#allocation25_spill] sm:$0xff] %v5455_v35 }
 0x4fb   : > { %v6986_v19 = vsel %vm5429_vm13, 4294967295, %v6985_v19  ;;  %vm5433_vm14 = vmor %vm2197_vm3, %vm2391_vm12 }
 0x4fc   : > { %v6988_v15 = vsel %vm5433_vm14, 4294967295, %v6987_v15 }
 0x500   : > { %v5439_v8 = vpop.permute.xlu0 %2315 }
 0x501   : > { %v5461_v48 = vpop.permute.xlu1 %2043 }
 0x508   : > { %v2119_v3 = vpop.permute.xlu0 %2118 }
 0x509   : > { %vm2190_vm11 = vcmp.eq.s32.totalorder %v2119_v3, %v5324_v36  ;;  %vm2191_vm8 = vcmp.eq.s32.totalorder %v2119_v3, %v5333_v50  ;;  %v2301_v3 = vpop.permute.xlu2 %2300 }
 0x50a   : > { %vm5447_vm12 = vmor %vm2190_vm11, %vm2384_vm2  ;;  %vm2376_vm0 = vcmp.eq.s32.totalorder %v2301_v3, %v5329_v23 }
 0x50b   : > { %v6990_v24 = vsel %vm5447_vm12, 4294967295, %v6989_v24  ;;  %vm5451_vm3 = vmor %vm2191_vm8, %vm2385_vm15 }
 0x50c   : > { %v6992_v60 = vsel %vm5451_vm3, 4294967295, %v6991_v60 }
 0x510   : > { %v5457_v46 = vpop.permute.xlu0 %2306 }
 0x511   : > { %v5477_v17 = vpop.permute.xlu2 %2297 }
 0x518   : > { %v2110_v1 = vpop.permute.xlu0 %2109 }
 0x519   : > { %vm2184_vm2 = vcmp.eq.s32.totalorder %v2110_v1, %v5324_v36  ;;  %vm2185_vm15 = vcmp.eq.s32.totalorder %v2110_v1, %v5333_v50  ;;  %v6998_v1 = vmov 0 }
 0x51c   : > { %v1639_v59 = vpop.trf.xlu1 }
 0x51d   : > { %3371 = vmatmul.msk.f32.vlgmr.msra.gmra.mxu0 %vm6691_vm9, %v1639_v59  ;;  %3403 = vmatmul.msk.f32.vlgmr.msra.gmra.mxu1 %vm6691_vm9, %v1639_v59 }
 0x520   : > { %v2304_v9 = vpop.permute.xlu0 %2303 }
 0x521   : > { %vm2378_vm11 = vcmp.eq.s32.totalorder %v2304_v9, %v5329_v23  ;;  %vm2379_vm8 = vcmp.eq.s32.totalorder %v2304_v9, %v5331_v52  ;;  %v7000_v9 = vmov 0 }
 0x522   : > { %vm5469_vm7 = vmor %vm2184_vm2, %vm2378_vm11  ;;  %vm2377_vm11 = vcmp.eq.s32.totalorder %v2301_v3, %v5331_v52  ;;  %v7004_v3 = vmov 0 }
 0x523   : > { %v6995_v47 = vsel %vm5469_vm7, 4294967295, %v6994_v47  ;;  %vm5473_vm10 = vmor %vm2185_vm15, %vm2379_vm8  ;;  %vm2342_vm7 = vcmp.eq.s32.totalorder %v5383_v54, %v5329_v23 }
 0x524   : > { %v6997_v28 = vsel %vm5473_vm10, 4294967295, %v6996_v28  ;;  %v1640_v59 = vpop.trf.xlu1 }
 0x525   : > { %3372 = vmatmul.msk.f32.gmra.mxu0 %vm6691_vm9, %v1640_v59  ;;  %3404 = vmatmul.msk.f32.gmra.mxu1 %vm6691_vm9, %v1640_v59  ;;  %v2295_v59 = vpop.permute.xlu2 %2294 }
 0x526   : > { %vm2372_vm13 = vcmp.eq.s32.totalorder %v2295_v59, %v5329_v23 }
 0x528   : > { %v2107_v2 = vpop.permute.xlu0 %2106 }
 0x529   : > { %vm2182_vm14 = vcmp.eq.s32.totalorder %v2107_v2, %v5324_v36  ;;  %vm2183_vm2 = vcmp.eq.s32.totalorder %v2107_v2, %v5333_v50  ;;  %v7002_v2 = vmov 0 }
 0x52a   : > { %vm5485_vm8 = vmor %vm2182_vm14, %vm2376_vm0  ;;  %vm2373_vm14 = vcmp.eq.s32.totalorder %v2295_v59, %v5331_v52  ;;  %v2204_v59 = vld [vmem:[%s6606_s15] sm:$0xff] }
 0x52b   : > { %v6999_v1 = vsel %vm5485_vm8, 4294967295, %v6998_v1  ;;  %vm5489_vm15 = vmor %vm2183_vm2, %vm2377_vm11  ;;  %vm2142_vm11 = vcmp.eq.s32.totalorder %v5441_v21, %v5324_v36 }
 0x52c   : > { %v7001_v9 = vsel %vm5489_vm15, 4294967295, %v7000_v9  ;;  %v1641_v43 = vpop.trf.xlu1 }
 0x52d   : > { %3373 = vmatmul.msk.f32.gmra.mxu0 %vm6691_vm9, %v1641_v43  ;;  %3405 = vmatmul.msk.f32.gmra.mxu1 %vm6691_vm9, %v1641_v43  ;;  %v5541_v63 = vpop.permute.xlu2 %2097 }
 0x530   : > { %v2101_v30 = vpop.permute.xlu0 %2100 }
 0x531   : > { %vm2178_vm3 = vcmp.eq.s32.totalorder %v2101_v30, %v5324_v36  ;;  %vm2179_vm0 = vcmp.eq.s32.totalorder %v2101_v30, %v5333_v50 }
 0x532   : > { %vm5499_vm12 = vmor %vm2178_vm3, %vm2372_vm13  ;;  %vm2336_vm13 = vcmp.eq.s32.totalorder %v5387_v29, %v5329_v23  ;;  %vm2337_vm3 = vcmp.eq.s32.totalorder %v5387_v29, %v5331_v52 }
 0x533   : > { %v7003_v2 = vsel %vm5499_vm12, 4294967295, %v7002_v2  ;;  %vm5503_vm2 = vmor %vm2179_vm0, %vm2373_vm14  ;;  %vm2143_vm0 = vcmp.eq.s32.totalorder %v5441_v21, %v5333_v50 }
 0x534   : > { %v7005_v3 = vsel %vm5503_vm2, 4294967295, %v7004_v3  ;;  %v1642_v58 = vpop.trf.xlu1  ;;  %vm2400_vm14 = vmor %vm2142_vm11, %vm2336_vm13  ;;  %vm2146_vm13 = vcmp.eq.s32.totalorder %v5409_v42, %v5324_v36  ;;  %vm2147_vm11 = vcmp.eq.s32.totalorder %v5409_v42, %v5333_v50 }
 0x535   : > { %3374 = vmatmul.msk.f32.gmra.mxu0 %vm6691_vm9, %v1642_v58  ;;  %3406 = vmatmul.msk.f32.gmra.mxu1 %vm6691_vm9, %v1642_v58  ;;  %v2037_v58 = vld [vmem:[%s6605_s14 + $0xd8] sm:$0xff]  ;;  %vm2401_vm10 = vmor %vm2143_vm0, %vm2337_vm3  ;;  %vm2341_vm3 = vcmp.eq.s32.totalorder %v5389_v39, %v5331_v52 }
 0x53c   : > { %v1643_v43 = vpop.trf.xlu1 }
 0x53d   : > { %3375 = vmatmul.msk.f32.gmra.mxu0 %vm6691_vm9, %v1643_v43  ;;  %3407 = vmatmul.msk.f32.gmra.mxu1 %vm6691_vm9, %v1643_v43 }
 0x544   : > { %v1644_v30 = vpop.trf.xlu1 }
 0x545   : > { %3376 = vmatmul.msk.f32.gmra.mxu0 %vm6691_vm9, %v1644_v30  ;;  %3408 = vmatmul.msk.f32.gmra.mxu1 %vm6691_vm9, %v1644_v30  ;;  %v2036_v30 = vld [vmem:[%s6605_s14 + $0xd0] sm:$0xff] }
 0x54a   : > { %2237 = vperm.xlu1 %3474, %v2204_v59  }
 0x54c   : > { %v1645_v0 = vpop.trf.xlu1 }
 0x54d   : > { %3377 = vmatmul.msk.f32.gmra.mxu0 %vm6691_vm9, %v1645_v0  ;;  %3409 = vmatmul.msk.f32.gmra.mxu1 %vm6691_vm9, %v1645_v0  ;;  %v2034_v0 = vld [vmem:[%s6605_s14 + $0xc0] sm:$0xff] }
 0x552   : > { %2124 = vperm.xlu1 %3474, %v2037_v58  }
 0x554   : > { %v1646_v43 = vpop.trf.xlu1 }
 0x555   : > { %3378 = vmatmul.msk.f32.gmra.mxu0 %vm6691_vm9, %v1646_v43  ;;  %3410 = vmatmul.msk.f32.gmra.mxu1 %vm6691_vm9, %v1646_v43  ;;  %v2033_v43 = vld [vmem:[%s6605_s14 + $0xb8] sm:$0xff] }
 0x55a   : > { %2121 = vperm.xlu1 %3474, %v2036_v30  }
 0x55c   : > { %v1647_v59 = vpop.trf.xlu1 }
 0x55d   : > { %3379 = vmatmul.msk.f32.gmra.mxu0 %vm6691_vm9, %v1647_v59  ;;  %3411 = vmatmul.msk.f32.gmra.mxu1 %vm6691_vm9, %v1647_v59  ;;  %v2030_v59 = vld [vmem:[%s6605_s14 + $0xa0] sm:$0xff] }
 0x562   : > { %2115 = vperm.xlu1 %3474, %v2034_v0  }
 0x564   : > { %v1648_v58 = vpop.trf.xlu1 }
 0x565   : > { %3380 = vmatmul.msk.f32.gmra.mxu0 %vm6691_vm9, %v1648_v58  ;;  %3412 = vmatmul.msk.f32.gmra.mxu1 %vm6691_vm9, %v1648_v58  ;;  %v2222_v58 = vld [vmem:[%s6606_s15 + $0x90] sm:$0xff] }
 0x56a   : > { %2112 = vperm.xlu1 %3474, %v2033_v43  }
 0x56c   : > { %v1649_v30 = vpop.trf.xlu1 }
 0x56d   : > { %3381 = vmatmul.msk.f32.gmra.mxu0 %vm6691_vm9, %v1649_v30  ;;  %3413 = vmatmul.msk.f32.gmra.mxu1 %vm6691_vm9, %v1649_v30  ;;  %v1671_v30 = vpop.trf.xlu2 }
 0x572   : > { %2103 = vperm.xlu1 %3474, %v2030_v59   ;;  %v2221_v59 = vld [vmem:[%s6606_s15 + $0x88] sm:$0xff] }
 0x574   : > { %v1650_v0 = vpop.trf.xlu1 }
 0x575   : > { %3382 = vmatmul.msk.f32.gmra.mxu0 %vm6691_vm9, %v1650_v0  ;;  %3414 = vmatmul.msk.f32.gmra.mxu1 %vm6691_vm9, %v1650_v0  ;;  %v1672_v0 = vpop.trf.xlu2 }
 0x57a   : > { %2291 = vperm.xlu1 %3474, %v2222_v58  }
 0x57c   : > { %v1651_v43 = vpop.trf.xlu1 }
 0x57d   : > { %3383 = vmatmul.msk.f32.gmra.mxu0 %vm6691_vm9, %v1651_v43  ;;  %3415 = vmatmul.msk.f32.gmra.mxu1 %vm6691_vm9, %v1651_v43  ;;  %v1673_v58 = vpop.trf.xlu2 }
 0x582   : > { %2288 = vperm.xlu1 %3474, %v2221_v59  }
 0x584   : > { %v1652_v44 = vpop.trf.xlu1 }
 0x585   : > { %3384 = vmatmul.msk.f32.gmra.mxu0 %vm6691_vm9, %v1652_v44  ;;  %3416 = vmatmul.msk.f32.gmra.mxu1 %vm6691_vm9, %v1652_v44  ;;  %v1674_v14 = vpop.trf.xlu2 }
 0x58c   : > { %v1653_v32 = vpop.trf.xlu1 }
 0x58d   : > { %3385 = vmatmul.msk.f32.gmra.mxu0 %vm6691_vm9, %v1653_v32  ;;  %3417 = vmatmul.msk.f32.gmra.mxu1 %vm6691_vm9, %v1653_v32  ;;  %v1675_v29 = vpop.trf.xlu2 }
 0x594   : > { %v1654_v35 = vpop.trf.xlu1 }
 0x595   : > { %3386 = vmatmul.msk.f32.gmra.mxu0 %vm6691_vm9, %v1654_v35  ;;  %3418 = vmatmul.msk.f32.gmra.mxu1 %vm6691_vm9, %v1654_v35 }
 0x59a   : > { %v5559_v43 = vpop.f32.mrf.mxu0  ;;  %v5561_v59 = vpop.f32.mrf.mxu1 }
 0x59d   : > { %3387 = vmatmul.msk.f32.gmra.mxu0 %vm6691_vm9, %v1671_v30  ;;  %3419 = vmatmul.msk.f32.gmra.mxu1 %vm6691_vm9, %v1671_v30 }
 0x5a2   : > { %v1804_v35 = vpop.f32.mrf.mxu0  ;;  %v1917_v32 = vpop.f32.mrf.mxu1 }
 0x5a3   : > { %v5573_v44 = vsel %vm2400_vm14, %v1804_v35, -inf  ;;  %v5575_v16 = vsel %vm2401_vm10, %v1917_v32, -inf  ;;  %vm2340_vm10 = vcmp.eq.s32.totalorder %v5389_v39, %v5329_v23  ;;  %vm2405_vm14 = vmor %vm2147_vm11, %vm2341_vm3  ;;  %vm2149_vm3 = vcmp.eq.s32.totalorder %v5378_v5, %v5333_v50 }
 0x5a4   : > { %7006 = vst [vmem:[#allocation26_spill] sm:$0xff] %v5573_v44  ;;  %v2529_v30 = vmax.f32 %v5573_v44, %v5575_v16  ;;  %vm2404_vm0 = vmor %vm2146_vm13, %vm2340_vm10  ;;  %vm2343_vm10 = vcmp.eq.s32.totalorder %v5383_v54, %v5331_v52  ;;  %vm2148_vm13 = vcmp.eq.s32.totalorder %v5378_v5, %v5324_v36 }
 0x5a5   : > { %7007 = vst [vmem:[#allocation27_spill] sm:$0xff] %v5575_v16  ;;  %3388 = vmatmul.msk.f32.gmra.mxu0 %vm6691_vm9, %v1672_v0  ;;  %3420 = vmatmul.msk.f32.gmra.mxu1 %vm6691_vm9, %v1672_v0  ;;  %v1676_v0 = vpop.trf.xlu2  ;;  %vm2406_vm11 = vmor %vm2148_vm13, %vm2342_vm7  ;;  %vm7010_vm7 = vcmask 64512  }
 0x5a6   : > { %2530 = vmax.xlane.f32.xlu2 %v2529_v30  ;;  %vm7011_vm13 = vmmov %vm7010_vm7 }
 0x5aa   : > { %v5581_v6 = vpop.f32.mrf.mxu0  ;;  %v5583_v21 = vpop.f32.mrf.mxu1 }
 0x5ad   : > { %3389 = vmatmul.msk.f32.gmra.mxu0 %vm6691_vm9, %v1673_v58  ;;  %3421 = vmatmul.msk.f32.gmra.mxu1 %vm6691_vm9, %v1673_v58  ;;  %v1677_v39 = vpop.trf.xlu2 }
 0x5b2   : > { %v1810_v35 = vpop.f32.mrf.mxu0  ;;  %v1923_v32 = vpop.f32.mrf.mxu1 }
 0x5b3   : > { %v5595_v30 = vsel %vm2404_vm0, %v1810_v35, -inf  ;;  %v5597_v58 = vsel %vm2405_vm14, %v1923_v32, -inf  ;;  %vm2407_vm0 = vmor %vm2149_vm3, %vm2343_vm10  ;;  %vm2140_vm14 = vcmp.eq.s32.totalorder %v5461_v48, %v5324_v36  ;;  %vm2141_vm10 = vcmp.eq.s32.totalorder %v5461_v48, %v5333_v50 }
 0x5b4   : > { %v2535_v16 = vmax.f32 %v5595_v30, %v5597_v58  ;;  %vm2345_vm3 = vcmp.eq.s32.totalorder %v5373_v62, %v5331_v52 }
 0x5b5   : > { %3390 = vmatmul.msk.f32.gmra.mxu0 %vm6691_vm9, %v1674_v14  ;;  %3422 = vmatmul.msk.f32.gmra.mxu1 %vm6691_vm9, %v1674_v14 }
 0x5b6   : > { %2536 = vmax.xlane.f32.xlu2 %v2535_v16 }
 0x5ba   : > { %v1813_v42 = vpop.f32.mrf.mxu0  ;;  %v1926_v35 = vpop.f32.mrf.mxu1 }
 0x5bb   : > { %v5611_v32 = vsel %vm2406_vm11, %v1813_v42, -inf  ;;  %v5613_v14 = vsel %vm2407_vm0, %v1926_v35, -inf  ;;  %vm2344_vm0 = vcmp.eq.s32.totalorder %v5373_v62, %v5329_v23 }
 0x5bc   : > { %7008 = vst [vmem:[#allocation28_spill] sm:$0xff] %v5611_v32  ;;  %v2538_v16 = vmax.f32 %v5611_v32, %v5613_v14  ;;  %v2238_v44 = vpop.permute.xlu1 %2237 }
 0x5bd   : > { %7009 = vst [vmem:[#allocation29_spill] sm:$0xff] %v5613_v14  ;;  %vm2334_vm9 = vcmp.eq.s32.totalorder %v2238_v44, %v5329_v23  ;;  %vm2335_vm15 = vcmp.eq.s32.totalorder %v2238_v44, %v5331_v52  ;;  %3391 = vmatmul.msk.f32.gmra.mxu0 %vm7010_vm7, %v1675_v29  ;;  %3423 = vmatmul.msk.f32.gmra.mxu1 %vm7011_vm13, %v1675_v29  ;;  %v1678_v29 = vpop.trf.xlu2 }
 0x5be   : > { %vm2398_vm11 = vmor %vm2140_vm14, %vm2334_vm9  ;;  %2539 = vmax.xlane.f32.xlu1 %v2538_v16  ;;  %vm2151_vm7 = vcmp.eq.s32.totalorder %v5368_v45, %v5333_v50  ;;  %vm2338_vm13 = vcmp.eq.s32.totalorder %v5391_v31, %v5329_v23  ;;  %vm2144_vm9 = vcmp.eq.s32.totalorder %v5427_v53, %v5324_v36  ;;  %vm2150_vm14 = vcmp.eq.s32.totalorder %v5368_v45, %v5324_v36 }
 0x5bf   : > { %vm2399_vm8 = vmor %vm2141_vm10, %vm2335_vm15  ;;  %v5630_v5 = vsel %vm2398_vm11, %v5559_v43, -inf  ;;  %vm2339_vm15 = vcmp.eq.s32.totalorder %v5391_v31, %v5331_v52  ;;  %v7018_v16 = vmov 0 }
 0x5c0   : > { %7012 = vst [vmem:[#allocation30_spill] sm:$0xff] %v5630_v5  ;;  %v5635_v54 = vsel %vm2399_vm8, %v5561_v59, -inf  ;;  %vm2409_vm2 = vmor %vm2151_vm7, %vm2345_vm3  ;;  %vm2145_vm8 = vcmp.eq.s32.totalorder %v5427_v53, %v5333_v50  ;;  %vm2388_vm3 = vcmp.eq.s32.totalorder %v5437_v27, %v5329_v23 }
 0x5c1   : > { %7013 = vst [vmem:[#allocation31_spill] sm:$0xff] %v5635_v54  ;;  %v2526_v48 = vmax.f32 %v5630_v5, %v5635_v54  ;;  %vm2408_vm10 = vmor %vm2150_vm14, %vm2344_vm0  ;;  %vm7014_vm0 = vcmask 64512   ;;  %vm2389_vm14 = vcmp.eq.s32.totalorder %v5437_v27, %v5331_v52  ;;  %v2095_v54 = vpop.permute.xlu0 %2094 }
 0x5c2   : > { %v1929_v62 = vpop.f32.mrf.mxu1  ;;  %v1816_v43 = vpop.f32.mrf.mxu0  ;;  %vm2402_vm11 = vmor %vm2144_vm9, %vm2338_vm13 }
 0x5c3   : > { %v5649_v59 = vsel %vm2409_vm2, %v1929_v62, -inf  ;;  %2527 = vmax.xlane.f32.xlu0 %v2526_v48  ;;  %v5651_v44 = vsel %vm2408_vm10, %v1816_v43, -inf  ;;  %vm2403_vm7 = vmor %vm2145_vm8, %vm2339_vm15  ;;  %v5664_v31 = vsel %vm2402_vm11, %v5581_v6, -inf  ;;  %vm2386_vm15 = vcmp.eq.s32.totalorder %v5439_v8, %v5329_v23 }
 0x5c4   : > { %v2541_v45 = vmax.f32 %v5651_v44, %v5649_v59  ;;  %v2125_v42 = vpop.permute.xlu1 %2124  ;;  %vm7015_vm2 = vmmov %vm7014_vm0  ;;  %v5667_v53 = vsel %vm2403_vm7, %v5583_v21, -inf  ;;  %vm2387_vm11 = vcmp.eq.s32.totalorder %v5439_v8, %v5331_v52 }
 0x5c5   : > { %vm2194_vm12 = vcmp.eq.s32.totalorder %v2125_v42, %v5324_v36  ;;  %vm2195_vm6 = vcmp.eq.s32.totalorder %v2125_v42, %v5333_v50  ;;  %3392 = vmatmul.msk.f32.gmra.mxu0 %vm7014_vm0, %v1676_v0  ;;  %3424 = vmatmul.msk.f32.gmra.mxu1 %vm7015_vm2, %v1676_v0  ;;  %v2532_v0 = vmax.f32 %v5664_v31, %v5667_v53  ;;  %vm7020_vm10 = vmmov %vm7014_vm0  ;;  %v1679_v21 = vpop.trf.xlu2 }
 0x5c6   : > { %2542 = vmax.xlane.f32.xlu2 %v2541_v45  ;;  %vm5669_vm13 = vmor %vm2194_vm12, %vm2388_vm3 }
 0x5c7   : > { %vm5673_vm9 = vmor %vm2195_vm6, %vm2389_vm14 }
 0x5c8   : > { %v7019_v16 = vsel %vm5673_vm9, 4294967295, %v7018_v16  ;;  %vm7021_vm6 = vmmov %vm7014_vm0  ;;  %vm2161_vm9 = vcmp.eq.s32.totalorder %v5286_v34, %v5333_v50 }
 0x5c9   : > { %vm7027_vm14 = vmmov %vm7021_vm6 }
 0x5ca   : > { %v1932_v48 = vpop.f32.mrf.mxu1  ;;  %v1819_v27 = vpop.f32.mrf.mxu0 }
 0x5cb   : > { %2533 = vmax.xlane.f32.xlu0 %v2532_v0  ;;  %v5689_v62 = vsel %vm5357_vm4, %v1932_v48, -inf  ;;  %v5693_v43 = vsel %vm5364_vm5, %v1819_v27, -inf  ;;  %vm7026_vm4 = vnez %v6968_v18  ;;  %vm2382_vm5 = vcmp.eq.s32.totalorder %v5459_v11, %v5329_v23 }
 0x5cc   : > { %v2122_v6 = vpop.permute.xlu1 %2121 }
 0x5cd   : > { %vm2192_vm8 = vcmp.eq.s32.totalorder %v2122_v6, %v5324_v36  ;;  %vm2193_vm12 = vcmp.eq.s32.totalorder %v2122_v6, %v5333_v50  ;;  %3393 = vmatmul.msk.f32.gmra.mxu0 %vm7020_vm10, %v1677_v39  ;;  %3425 = vmatmul.msk.f32.gmra.mxu1 %vm7021_vm6, %v1677_v39  ;;  %v2544_v39 = vmax.f32 %v5693_v43, %v5689_v62  ;;  %v1680_v18 = vpop.trf.xlu2  ;;  %v7031_v6 = vmov 0 }
 0x5ce   : > { %vm5695_vm3 = vmor %vm2192_vm8, %vm2386_vm15  ;;  %vm2383_vm15 = vcmp.eq.s32.totalorder %v5459_v11, %v5331_v52  ;;  %vm2350_vm8 = vcmp.eq.s32.totalorder %v5313_v40, %v5329_v23  ;;  %vm2351_vm10 = vcmp.eq.s32.totalorder %v5313_v40, %v5331_v52 }
 0x5cf   : > { %vm5699_vm7 = vmor %vm2193_vm12, %vm2387_vm11  ;;  %vm2156_vm11 = vcmp.eq.s32.totalorder %v5306_v57, %v5324_v36 }
 0x5d2   : > { %v1822_v8 = vpop.f32.mrf.mxu0  ;;  %v1935_v0 = vpop.f32.mrf.mxu1 }
 0x5d3   : > { %v5707_v12 = vsel %vm5339_vm1, %v1822_v8, -inf  ;;  %v5711_v13 = vsel %vm7026_vm4, %v1935_v0, -inf  ;;  %2545 = vmax.xlane.f32.xlu0 %v2544_v39  ;;  %vm7028_vm1 = vmmov %vm7021_vm6 }
 0x5d4   : > { %v2547_v48 = vmax.f32 %v5707_v12, %v5711_v13  ;;  %v2116_v27 = vpop.permute.xlu1 %2115  ;;  %vm2414_vm4 = vmor %vm2156_vm11, %vm2350_vm8  ;;  %vm2352_vm11 = vcmp.eq.s32.totalorder %v5301_v33, %v5329_v23 }
 0x5d5   : > { %vm2188_vm0 = vcmp.eq.s32.totalorder %v2116_v27, %v5324_v36  ;;  %vm2189_vm2 = vcmp.eq.s32.totalorder %v2116_v27, %v5333_v50  ;;  %3394 = vmatmul.msk.f32.gmra.mxu0 %vm7027_vm14, %v1678_v29  ;;  %3426 = vmatmul.msk.f32.gmra.mxu1 %vm7028_vm1, %v1678_v29  ;;  %vm2157_vm14 = vcmp.eq.s32.totalorder %v5306_v57, %v5333_v50 }
 0x5d6   : > { %2548 = vmax.xlane.f32.xlu1 %v2547_v48  ;;  %vm5725_vm12 = vmor %vm2188_vm0, %vm2382_vm5  ;;  %vm2380_vm0 = vcmp.eq.s32.totalorder %v5457_v46, %v5329_v23 }
 0x5d7   : > { %v7030_v61 = vsel %vm5725_vm12, 4294967295, %v7029_v61  ;;  %vm5731_vm6 = vmor %vm2189_vm2, %vm2383_vm15  ;;  %vm7033_vm15 = vcmask 64512  }
 0x5d8   : > { %v7032_v6 = vsel %vm5731_vm6, 4294967295, %v7031_v6  ;;  %vm2415_vm5 = vmor %vm2157_vm14, %vm2351_vm10  ;;  %vm2381_vm10 = vcmp.eq.s32.totalorder %v5457_v46, %v5331_v52  ;;  %vm2353_vm14 = vcmp.eq.s32.totalorder %v5301_v33, %v5331_v52  ;;  %vm2159_vm6 = vcmp.eq.s32.totalorder %v5296_v25, %v5333_v50  ;;  %v1681_v46 = vpop.trf.xlu2 }
 0x5d9   : > { %vm7034_vm8 = vmmov %vm7033_vm15 }
 0x5da   : > { %v1825_v11 = vpop.f32.mrf.mxu0  ;;  %v1938_v29 = vpop.f32.mrf.mxu1 }
 0x5db   : > { %v5739_v39 = vsel %vm2414_vm4, %v1825_v11, -inf  ;;  %v5741_v8 = vsel %vm2415_vm5, %v1938_v29, -inf }
 0x5dc   : > { %v2550_v40 = vmax.f32 %v5739_v39, %v5741_v8  ;;  %v2113_v0 = vpop.permute.xlu1 %2112 }
 0x5dd   : > { %vm2186_vm2 = vcmp.eq.s32.totalorder %v2113_v0, %v5324_v36  ;;  %vm2187_vm1 = vcmp.eq.s32.totalorder %v2113_v0, %v5333_v50  ;;  %3395 = vmatmul.msk.f32.gmra.mxu0 %vm7033_vm15, %v1679_v21  ;;  %3427 = vmatmul.msk.f32.gmra.mxu1 %vm7034_vm8, %v1679_v21  ;;  %vm2158_vm15 = vcmp.eq.s32.totalorder %v5296_v25, %v5324_v36 }
 0x5de   : > { %2551 = vmax.xlane.f32.xlu2 %v2550_v40  ;;  %vm5755_vm4 = vmor %vm2186_vm2, %vm2380_vm0  ;;  %vm2374_vm2 = vcmp.eq.s32.totalorder %v5477_v17, %v5329_v23 }
 0x5df   : > { %vm5761_vm5 = vmor %vm2187_vm1, %vm2381_vm10 }
 0x5e0   : > { %vm2416_vm8 = vmor %vm2158_vm15, %vm2352_vm11  ;;  %vm7039_vm11 = vcmask 64512  }
 0x5e1   : > { %vm2417_vm0 = vmor %vm2159_vm6, %vm2353_vm14  ;;  %vm2375_vm6 = vcmp.eq.s32.totalorder %v5477_v17, %v5331_v52  ;;  %vm2354_vm14 = vcmp.eq.s32.totalorder %v5291_v56, %v5329_v23 }
 0x5e2   : > { %v1828_v21 = vpop.f32.mrf.mxu0  ;;  %v1941_v27 = vpop.f32.mrf.mxu1  ;;  %vm7040_vm15 = vmmov %vm7039_vm11 }
 0x5e3   : > { %v5769_v11 = vsel %vm2416_vm8, %v1828_v21, -inf  ;;  %v5771_v29 = vsel %vm2417_vm0, %v1941_v27, -inf  ;;  %vm2355_vm0 = vcmp.eq.s32.totalorder %v5291_v56, %v5331_v52 }
 0x5e4   : > { %v2553_v33 = vmax.f32 %v5769_v11, %v5771_v29  ;;  %v2104_v40 = vpop.permute.xlu1 %2103 }
 0x5e5   : > { %vm2180_vm1 = vcmp.eq.s32.totalorder %v2104_v40, %v5324_v36  ;;  %vm2181_vm10 = vcmp.eq.s32.totalorder %v2104_v40, %v5333_v50  ;;  %3396 = vmatmul.msk.f32.gmra.mxu0 %vm7039_vm11, %v1680_v18  ;;  %3428 = vmatmul.msk.f32.gmra.mxu1 %vm7040_vm15, %v1680_v18  ;;  %vm2160_vm11 = vcmp.eq.s32.totalorder %v5286_v34, %v5324_v36 }
 0x5e6   : > { %2554 = vmax.xlane.f32.xlu0 %v2553_v33  ;;  %vm5785_vm8 = vmor %vm2180_vm1, %vm2374_vm2  ;;  %v1682_v33 = vpop.trf.xlu2  ;;  %vm7045_vm1 = vcmask 64512  }
 0x5e7   : > { %vm5791_vm12 = vmor %vm2181_vm10, %vm2375_vm6  ;;  %vm2356_vm6 = vcmp.eq.s32.totalorder %v5281_v38, %v5329_v23 }
 0x5e8   : > { %vm2418_vm15 = vmor %vm2160_vm11, %vm2354_vm14  ;;  %vm2357_vm14 = vcmp.eq.s32.totalorder %v5281_v38, %v5331_v52  ;;  %vm2163_vm11 = vcmp.eq.s32.totalorder %v5276_v37, %v5333_v50 }
 0x5e9   : > { %vm2419_vm2 = vmor %vm2161_vm9, %vm2355_vm0  ;;  %vm2162_vm9 = vcmp.eq.s32.totalorder %v5276_v37, %v5324_v36 }
 0x5ea   : > { %v1831_v17 = vpop.f32.mrf.mxu0  ;;  %v1944_v18 = vpop.f32.mrf.mxu1  ;;  %vm7046_vm10 = vmmov %vm7045_vm1 }
 0x5eb   : > { %v5799_v21 = vsel %vm2418_vm15, %v1831_v17, -inf  ;;  %v5801_v27 = vsel %vm2419_vm2, %v1944_v18, -inf  ;;  %vm2420_vm0 = vmor %vm2162_vm9, %vm2356_vm6  ;;  %vm2359_vm6 = vcmp.eq.s32.totalorder %v5271_v10, %v5331_v52 }
 0x5ec   : > { %v2556_v56 = vmax.f32 %v5799_v21, %v5801_v27  ;;  %vm2421_vm15 = vmor %vm2163_vm11, %vm2357_vm14  ;;  %vm2164_vm14 = vcmp.eq.s32.totalorder %v5266_v20, %v5324_v36 }
 0x5ed   : > { %3397 = vmatmul.msk.f32.gmra.mxu0 %vm7045_vm1, %v1681_v46  ;;  %3429 = vmatmul.msk.f32.gmra.mxu1 %vm7046_vm10, %v1681_v46  ;;  %vm7047_vm2 = vmmov %vm7045_vm1  ;;  %vm2358_vm10 = vcmp.eq.s32.totalorder %v5271_v10, %v5329_v23 }
 0x5ee   : > { %2557 = vmax.xlane.f32.xlu2 %v2556_v56  ;;  %v1683_v38 = vpop.trf.xlu2  ;;  %vm2422_vm9 = vmor %vm2164_vm14, %vm2358_vm10  ;;  %vm2361_vm10 = vcmp.eq.s32.totalorder %v5261_v49, %v5331_v52 }
 0x5f2   : > { %v1834_v34 = vpop.f32.mrf.mxu0  ;;  %v1947_v40 = vpop.f32.mrf.mxu1 }
 0x5f3   : > { %v5815_v17 = vsel %vm2420_vm0, %v1834_v34, -inf  ;;  %v5817_v46 = vsel %vm2421_vm15, %v1947_v40, -inf  ;;  %vm2165_vm0 = vcmp.eq.s32.totalorder %v5266_v20, %v5333_v50  ;;  %vm7048_vm15 = vmmov %vm7045_vm1 }
 0x5f4   : > { %v2559_v18 = vmax.f32 %v5815_v17, %v5817_v46  ;;  %vm2423_vm11 = vmor %vm2165_vm0, %vm2359_vm6  ;;  %vm2166_vm6 = vcmp.eq.s32.totalorder %v5256_v41, %v5324_v36 }
 0x5f5   : > { %3398 = vmatmul.msk.f32.gmra.mxu0 %vm7047_vm2, %v1682_v33  ;;  %3430 = vmatmul.msk.f32.gmra.mxu1 %vm7045_vm1, %v1682_v33  ;;  %vm7049_vm2 = vmmov %vm7045_vm1  ;;  %vm2360_vm1 = vcmp.eq.s32.totalorder %v5261_v49, %v5329_v23 }
 0x5f6   : > { %2560 = vmax.xlane.f32.xlu1 %v2559_v18  ;;  %v1684_v10 = vpop.trf.xlu2  ;;  %vm2424_vm14 = vmor %vm2166_vm6, %vm2360_vm1  ;;  %vm2362_vm1 = vcmp.eq.s32.totalorder %v5246_v22, %v5329_v23  ;;  %vm2363_vm6 = vcmp.eq.s32.totalorder %v5246_v22, %v5331_v52  ;;  %v2292_v22 = vpop.permute.xlu1 %2291 }
 0x5fa   : > { %v1837_v37 = vpop.f32.mrf.mxu0  ;;  %v1950_v56 = vpop.f32.mrf.mxu1 }
 0x5fb   : > { %v5831_v34 = vsel %vm2422_vm9, %v1837_v37, -inf  ;;  %v5833_v33 = vsel %vm2423_vm11, %v1950_v56, -inf  ;;  %vm2167_vm9 = vcmp.eq.s32.totalorder %v5256_v41, %v5333_v50  ;;  %vm7050_vm11 = vmmov %vm7049_vm2 }
 0x5fc   : > { %v2562_v40 = vmax.f32 %v5831_v34, %v5833_v33  ;;  %vm2425_vm0 = vmor %vm2167_vm9, %vm2361_vm10  ;;  %vm2169_vm10 = vcmp.eq.s32.totalorder %v5405_v7, %v5333_v50 }
 0x5fd   : > { %3399 = vmatmul.msk.f32.gmra.mxu0 %vm7048_vm15, %v1683_v38  ;;  %3431 = vmatmul.msk.f32.gmra.mxu1 %vm7049_vm2, %v1683_v38  ;;  %vm7051_vm15 = vmmov %vm7049_vm2  ;;  %vm2168_vm2 = vcmp.eq.s32.totalorder %v5405_v7, %v5324_v36 }
 0x5fe   : > { %2563 = vmax.xlane.f32.xlu2 %v2562_v40  ;;  %v1685_v41 = vpop.trf.xlu2  ;;  %vm2427_vm9 = vmor %vm2169_vm10, %vm2363_vm6  ;;  %vm2171_vm6 = vcmp.eq.s32.totalorder %v5226_v51, %v5333_v50 }
 0x602   : > { %v1840_v20 = vpop.f32.mrf.mxu0  ;;  %v1953_v18 = vpop.f32.mrf.mxu1 }
 0x603   : > { %v5847_v37 = vsel %vm2424_vm14, %v1840_v20, -inf  ;;  %v5849_v38 = vsel %vm2425_vm0, %v1953_v18, -inf  ;;  %vm2426_vm14 = vmor %vm2168_vm2, %vm2362_vm1  ;;  %vm2365_vm2 = vcmp.eq.s32.totalorder %v5236_v4, %v5331_v52  ;;  %vm2170_vm1 = vcmp.eq.s32.totalorder %v5226_v51, %v5324_v36 }
 0x604   : > { %v2565_v56 = vmax.f32 %v5847_v37, %v5849_v38  ;;  %vm7052_vm0 = vmmov %vm7050_vm11 }
 0x605   : > { %3400 = vmatmul.msk.f32.gmra.mxu0 %vm7050_vm11, %v1684_v10  ;;  %3432 = vmatmul.msk.f32.gmra.mxu1 %vm7051_vm15, %v1684_v10  ;;  %vm7053_vm11 = vmmov %vm7052_vm0  ;;  %vm2364_vm15 = vcmp.eq.s32.totalorder %v5236_v4, %v5329_v23 }
 0x606   : > { %2566 = vmax.xlane.f32.xlu0 %v2565_v56  ;;  %vm2428_vm10 = vmor %vm2170_vm1, %vm2364_vm15  ;;  %v1686_v4 = vpop.trf.xlu2  ;;  %vm2175_vm1 = vcmp.eq.s32.totalorder %v2095_v54, %v5333_v50 }
 0x60a   : > { %v1843_v49 = vpop.f32.mrf.mxu0  ;;  %v1956_v40 = vpop.f32.mrf.mxu1 }
 0x60b   : > { %v5863_v20 = vsel %vm2426_vm14, %v1843_v49, -inf  ;;  %v5865_v10 = vsel %vm2427_vm9, %v1956_v40, -inf  ;;  %vm2429_vm14 = vmor %vm2171_vm6, %vm2365_vm2  ;;  %v2220_v40 = vld [vmem:[%s6606_s15 + $0x80] sm:$0xff]  ;;  %vm2174_vm2 = vcmp.eq.s32.totalorder %v2095_v54, %v5324_v36 }
 0x60c   : > { %v2568_v18 = vmax.f32 %v5863_v20, %v5865_v10  ;;  %vm7054_vm9 = vmmov %vm7052_vm0 }
 0x60d   : > { %3401 = vmatmul.msk.f32.gmra.mxu0 %vm7052_vm0, %v1685_v41  ;;  %3433 = vmatmul.msk.f32.gmra.mxu1 %vm7053_vm11, %v1685_v41 }
 0x60e   : > { %2569 = vmax.xlane.f32.xlu0 %v2568_v18 }
 0x612   : > { %v1846_v7 = vpop.f32.mrf.mxu0  ;;  %v1959_v56 = vpop.f32.mrf.mxu1 }
 0x613   : > { %v5879_v49 = vsel %vm2428_vm10, %v1846_v7, -inf  ;;  %v5881_v41 = vsel %vm2429_vm14, %v1959_v56, -inf  ;;  %v2289_v56 = vpop.permute.xlu1 %2288  ;;  %vm2370_vm14 = vcmp.eq.s32.totalorder %v2292_v22, %v5329_v23 }
 0x614   : > { %v2571_v18 = vmax.f32 %v5879_v49, %v5881_v41  ;;  %vm2368_vm11 = vcmp.eq.s32.totalorder %v2289_v56, %v5329_v23  ;;  %vm2369_vm15 = vcmp.eq.s32.totalorder %v2289_v56, %v5331_v52 }
 0x615   : > { %3402 = vmatmul.msk.f32.gmra.mxu0 %vm7054_vm9, %v1686_v4  ;;  %3434 = vmatmul.msk.f32.gmra.mxu1 %vm7052_vm0, %v1686_v4  ;;  %vm2432_vm10 = vmor %vm2174_vm2, %vm2368_vm11  ;;  %vm2371_vm9 = vcmp.eq.s32.totalorder %v2292_v22, %v5331_v52  ;;  %vm2176_vm0 = vcmp.eq.s32.totalorder %v5541_v63, %v5324_v36  ;;  %vm2177_vm11 = vcmp.eq.s32.totalorder %v5541_v63, %v5333_v50 }
 0x616   : > { %2572 = vmax.xlane.f32.xlu0 %v2571_v18  ;;  %2285 = vperm.xlu2 %3473, %v2220_v40   ;;  %vm2433_vm6 = vmor %vm2175_vm1, %vm2369_vm15  ;;  %v2026_v18 = vld [vmem:[%s6605_s14 + $0x80] sm:$0xff]  ;;  %vm7061_vm1 = vnez %v7003_v2 }
 0x617   : > { %vm2434_vm2 = vmor %vm2176_vm0, %vm2370_vm14  ;;  %vm7069_vm14 = vnez %v7001_v9  ;;  %vm7082_vm0 = vnez %v6984_v26 }
 0x618   : > { %vm2435_vm15 = vmor %vm2177_vm11, %vm2371_vm9  ;;  %vm7078_vm9 = vnez %v7019_v16 }
 0x61a   : > { %v5890_v51 = vpop.f32.mrf.mxu0  ;;  %v5892_v7 = vpop.f32.mrf.mxu1 }
 0x61b   : > { %7055 = vst [vmem:[#allocation32_spill] sm:$0xff] %v5890_v51 }
 0x61c   : > { %7056 = vst [vmem:[#allocation33_spill] sm:$0xff] %v5892_v7 }
 0x622   : > { %v1852_v5 = vpop.f32.mrf.mxu0  ;;  %v1965_v14 = vpop.f32.mrf.mxu1 }
 0x623   : > { %v5898_v4 = vsel %vm2432_vm10, %v1852_v5, -inf  ;;  %v5900_v40 = vsel %vm2433_vm6, %v1965_v14, -inf  ;;  %vm7063_vm10 = vnez %v7005_v3  ;;  %vm7067_vm6 = vnez %v6999_v1 }
 0x624   : > { %7057 = vst [vmem:[#allocation34_spill] sm:$0xff] %v5898_v4 }
 0x625   : > { %7058 = vst [vmem:[#allocation35_spill] sm:$0xff] %v5900_v40 }
 0x62a   : > { %v1855_v54 = vpop.f32.mrf.mxu0  ;;  %v1968_v5 = vpop.f32.mrf.mxu1  ;;  %2091 = vperm.xlu0 %3472, %v2026_v18  }
 0x62b   : > { %v5911_v14 = vsel %vm2434_vm2, %v1855_v54, -inf  ;;  %v5913_v56 = vsel %vm2435_vm15, %v1968_v5, -inf  ;;  %v5933_v5 = vpop.xlane.xlu2 %2530  ;;  %vm7089_vm15 = vnez %v7030_v61 }
 0x62c   : > { %7059 = vst [vmem:[#allocation36_spill] sm:$0xff] %v5911_v14 }
 0x62d   : > { %7060 = vst [vmem:[#allocation37_spill] sm:$0xff] %v5913_v56 }
 0x62e   : > { %7066 = vst [vmem:[#allocation41_spill] sm:$0xff] %v5933_v5 }
 0x632   : > { %v1858_v22 = vpop.f32.mrf.mxu0  ;;  %v1971_v7 = vpop.f32.mrf.mxu1 }
 0x633   : > { %v5917_v51 = vsel %vm7061_vm1, %v1858_v22, -inf  ;;  %v5921_v4 = vsel %vm7063_vm10, %v1971_v7, -inf  ;;  %vm7090_vm1 = vnez %v7032_v6 }
 0x634   : > { %7062 = vst [vmem:[#allocation38_spill] sm:$0xff] %v5917_v51 }
 0x635   : > { %7064 = vst [vmem:[#allocation39_spill] sm:$0xff] %v5921_v4 }
 0x636   : > { %v5931_v54 = vpop.xlane.xlu0 %2527 }
 0x637   : > { %7065 = vst [vmem:[#allocation40_spill] sm:$0xff] %v5931_v54 }
 0x63a   : > { %v1861_v63 = vpop.f32.mrf.mxu0  ;;  %v1974_v40 = vpop.f32.mrf.mxu1 }
 0x63b   : > { %v5925_v32 = vsel %vm5785_vm8, %v1861_v63, -inf  ;;  %v5929_v18 = vsel %vm5791_vm12, %v1974_v40, -inf  ;;  %v5945_v63 = vpop.xlane.xlu2 %2536  ;;  %vm7071_vm12 = vnez %v6995_v47  ;;  %vm7073_vm8 = vnez %v6997_v28  ;;  %v5967_v47 = vpop.xlane.xlu1 %2539 }
 0x63c   : > { %7075 = vst [vmem:[#allocation46_spill] sm:$0xff] %v5967_v47 }
 0x63e   : > { %v5943_v25 = vpop.xlane.xlu0 %2533 }
 0x642   : > { %v1864_v2 = vpop.f32.mrf.mxu0  ;;  %v1977_v22 = vpop.f32.mrf.mxu1 }
 0x643   : > { %v5937_v3 = vsel %vm7067_vm6, %v1864_v2, -inf  ;;  %v5941_v7 = vsel %vm7069_vm14, %v1977_v22, -inf  ;;  %v5955_v1 = vpop.xlane.xlu2 %2542 }
 0x644   : > { %7068 = vst [vmem:[#allocation42_spill] sm:$0xff] %v5937_v3 }
 0x645   : > { %7070 = vst [vmem:[#allocation43_spill] sm:$0xff] %v5941_v7 }
 0x646   : > { %v5957_v2 = vpop.xlane.xlu0 %2545 }
 0x64a   : > { %v1867_v0 = vpop.f32.mrf.mxu0  ;;  %v1980_v40 = vpop.f32.mrf.mxu1 }
 0x64b   : > { %v5949_v51 = vsel %vm7071_vm12, %v1867_v0, -inf  ;;  %v5953_v4 = vsel %vm7073_vm8, %v1980_v40, -inf }
 0x64c   : > { %7072 = vst [vmem:[#allocation44_spill] sm:$0xff] %v5949_v51 }
 0x64d   : > { %7074 = vst [vmem:[#allocation45_spill] sm:$0xff] %v5953_v4  ;;  %v5977_v4 = vpop.xlane.xlu1 %2548 }
 0x651   : > { %v5969_v0 = vpop.xlane.xlu2 %2551 }
 0x652   : > { %v1870_v9 = vpop.f32.mrf.mxu0  ;;  %v1983_v22 = vpop.f32.mrf.mxu1 }
 0x653   : > { %v5961_v54 = vsel %vm5755_vm4, %v1870_v9, -inf  ;;  %v5965_v14 = vsel %vm5761_vm5, %v1983_v22, -inf  ;;  %vm7076_vm4 = vnez %v6990_v24  ;;  %vm7077_vm5 = vnez %v6992_v60 }
 0x659   : > { %v2555_v28 = vpop.xlane.xlu0 %2554 }
 0x65a   : > { %v2640_v40 = vsub.f32 %v5769_v11, %v2555_v28  ;;  %v5972_v56 = vpop.f32.mrf.mxu0  ;;  %v5974_v5 = vpop.f32.mrf.mxu1  ;;  %v2641_v51 = vsub.f32 %v5771_v29, %v2555_v28 }
 0x65c   : > { %v2722_v57 = vmul.f32 1.442695, %v2640_v40  ;;  %v2724_v9 = vmul.f32 1.442695, %v2641_v51 }
 0x65e   : > { %3484 = vpow2.f32 %v2722_v57 }
 0x65f   : > { %3486 = vpow2.f32 %v2724_v9 }
 0x661   : > { %v2558_v48 = vpop.xlane.xlu2 %2557 }
 0x662   : > { %v2642_v22 = vsub.f32 %v5799_v21, %v2558_v48  ;;  %v2643_v3 = vsub.f32 %v5801_v27, %v2558_v48  ;;  %v1876_v7 = vpop.f32.mrf.mxu0  ;;  %v1989_v47 = vpop.f32.mrf.mxu1 }
 0x663   : > { %v5983_v11 = vsel %vm7076_vm4, %v1876_v7, -inf  ;;  %v5987_v29 = vsel %vm7077_vm5, %v1989_v47, -inf }
 0x664   : > { %v2726_v51 = vmul.f32 1.442695, %v2642_v22  ;;  %v2728_v28 = vmul.f32 1.442695, %v2643_v3  ;;  %v2601_v40 = vmax.f32 %v5983_v11, %v5987_v29  ;;  %v5991_v21 = vpop.eup %3484 }
 0x665   : > { %v5993_v27 = vpop.eup %3486 }
 0x666   : > { %3488 = vpow2.f32 %v2726_v51  ;;  %2602 = vmax.xlane.f32.xlu1 %v2601_v40  ;;  %v2841_v22 = vadd.f32 %v5993_v27, %v5991_v21 }
 0x667   : > { %3490 = vpow2.f32 %v2728_v28 }
 0x669   : > { %v2561_v57 = vpop.xlane.xlu1 %2560 }
 0x66a   : > { %v2644_v24 = vsub.f32 %v5815_v17, %v2561_v57  ;;  %v2645_v7 = vsub.f32 %v5817_v46, %v2561_v57  ;;  %v1879_v60 = vpop.f32.mrf.mxu0  ;;  %v1992_v47 = vpop.f32.mrf.mxu1 }
 0x66b   : > { %v6007_v17 = vsel %vm5695_vm3, %v1879_v60, -inf  ;;  %v6011_v46 = vsel %vm5699_vm7, %v1992_v47, -inf  ;;  %vm7080_vm3 = vnez %v6988_v15  ;;  %vm7081_vm7 = vnez %v6982_v55 }
 0x66c   : > { %v5997_v9 = vpop.eup %3488  ;;  %v2730_v3 = vmul.f32 1.442695, %v2644_v24  ;;  %v2732_v48 = vmul.f32 1.442695, %v2645_v7  ;;  %v2604_v42 = vmax.f32 %v6007_v17, %v6011_v46  ;;  %v2639_v55 = vsub.f32 %v5741_v8, %v5969_v0 }
 0x66d   : > { %v6001_v51 = vpop.eup %3490  ;;  %v2627_v8 = vsub.f32 %v5667_v53, %v5943_v25 }
 0x66e   : > { %3492 = vpow2.f32 %v2730_v3  ;;  %2842 = vadd.xlane.f32.xlu1 %v2841_v22  ;;  %v2844_v28 = vadd.f32 %v6001_v51, %v5997_v9 }
 0x66f   : > { %3494 = vpow2.f32 %v2732_v48 }
 0x670   : > { %2845 = vadd.xlane.f32.xlu2 %v2844_v28  ;;  %v2632_v28 = vsub.f32 %v5651_v44, %v5955_v1 }
 0x671   : > { %v2564_v40 = vpop.xlane.xlu2 %2563 }
 0x672   : > { %v2646_v57 = vsub.f32 %v5831_v34, %v2564_v40  ;;  %v2647_v24 = vsub.f32 %v5833_v33, %v2564_v40  ;;  %v1882_v7 = vpop.f32.mrf.mxu0  ;;  %v1995_v3 = vpop.f32.mrf.mxu1 }
 0x673   : > { %v6017_v22 = vsel %vm5669_vm13, %v1882_v7, -inf  ;;  %v6021_v45 = vsel %vm7078_vm9, %v1995_v3, -inf  ;;  %v2633_v3 = vsub.f32 %v5649_v59, %v5955_v1  ;;  %vm7079_vm13 = vnez %v6986_v19 }
 0x674   : > { %v6023_v60 = vpop.eup %3492  ;;  %v2734_v47 = vmul.f32 1.442695, %v2646_v57  ;;  %v2736_v48 = vmul.f32 1.442695, %v2647_v24  ;;  %v2607_v34 = vmax.f32 %v6017_v22, %v6021_v45 }
 0x675   : > { %v6029_v33 = vpop.eup %3494  ;;  %v2708_v59 = vmul.f32 1.442695, %v2633_v3  ;;  %v2638_v3 = vsub.f32 %v5739_v39, %v5969_v0  ;;  %v7085_v0 = vld [vmem:[#allocation22_spill] sm:$0xff] }
 0x676   : > { %3496 = vpow2.f32 %v2734_v47  ;;  %2608 = vmax.xlane.f32.xlu0 %v2607_v34  ;;  %2605 = vmax.xlane.f32.xlu1 %v2604_v42  ;;  %v2847_v35 = vadd.f32 %v6029_v33, %v6023_v60  ;;  %vm7086_vm11 = vnez %v7085_v0 }
 0x677   : > { %3498 = vpow2.f32 %v2736_v48 }
 0x678   : > { %2848 = vadd.xlane.f32.xlu2 %v2847_v35  ;;  %v2706_v35 = vmul.f32 1.442695, %v2632_v28 }
 0x679   : > { %v2567_v16 = vpop.xlane.xlu0 %2566 }
 0x67a   : > { %v2648_v40 = vsub.f32 %v5847_v37, %v2567_v16  ;;  %v2649_v57 = vsub.f32 %v5849_v38, %v2567_v16  ;;  %v1885_v24 = vpop.f32.mrf.mxu0  ;;  %v1998_v7 = vpop.f32.mrf.mxu1 }
 0x67b   : > { %v6041_v42 = vsel %vm7079_vm13, %v1885_v24, -inf  ;;  %v6045_v47 = vsel %vm7080_vm3, %v1998_v7, -inf }
 0x67c   : > { %v6047_v48 = vpop.eup %3496  ;;  %v2738_v44 = vmul.f32 1.442695, %v2648_v40  ;;  %v2740_v34 = vmul.f32 1.442695, %v2649_v57  ;;  %v2610_v37 = vmax.f32 %v6041_v42, %v6045_v47 }
 0x67d   : > { %v6051_v38 = vpop.eup %3498 }
 0x67e   : > { %3500 = vpow2.f32 %v2738_v44  ;;  %2611 = vmax.xlane.f32.xlu1 %v2610_v37  ;;  %v2850_v19 = vadd.f32 %v6051_v38, %v6047_v48 }
 0x67f   : > { %3502 = vpow2.f32 %v2740_v34 }
 0x680   : > { %2851 = vadd.xlane.f32.xlu0 %v2850_v19  ;;  %3504 = vpow2.f32 %v2706_v35  ;;  %v2718_v35 = vmul.f32 1.442695, %v2638_v3  ;;  %v2720_v19 = vmul.f32 1.442695, %v2639_v55 }
 0x681   : > { %v2570_v15 = vpop.xlane.xlu0 %2569  ;;  %3506 = vpow2.f32 %v2708_v59  ;;  %v2626_v59 = vsub.f32 %v5664_v31, %v5943_v25 }
 0x682   : > { %v2650_v1 = vsub.f32 %v5863_v20, %v2570_v15  ;;  %v2651_v16 = vsub.f32 %v5865_v10, %v2570_v15  ;;  %v1888_v40 = vpop.f32.mrf.mxu0  ;;  %v2001_v57 = vpop.f32.mrf.mxu1 }
 0x683   : > { %v6059_v28 = vsel %vm7081_vm7, %v1888_v40, -inf  ;;  %v6063_v24 = vsel %vm7082_vm0, %v2001_v57, -inf  ;;  %v7087_v40 = vld [vmem:[#allocation23_spill] sm:$0xff] }
 0x684   : > { %v6065_v7 = vpop.eup %3500  ;;  %v2742_v44 = vmul.f32 1.442695, %v2650_v1  ;;  %v2744_v20 = vmul.f32 1.442695, %v2651_v16  ;;  %v2613_v10 = vmax.f32 %v6059_v28, %v6063_v24  ;;  %vm7088_vm2 = vnez %v7087_v40 }
 0x685   : > { %v6071_v34 = vpop.eup %3502 }
 0x686   : > { %3508 = vpow2.f32 %v2742_v44  ;;  %2614 = vmax.xlane.f32.xlu2 %v2613_v10  ;;  %v2853_v26 = vadd.f32 %v6071_v34, %v6065_v7  ;;  %v6077_v37 = vpop.eup %3504  ;;  %v2636_v44 = vsub.f32 %v5707_v12, %v5977_v4  ;;  %v2694_v10 = vmul.f32 1.442695, %v2626_v59 }
 0x687   : > { %3510 = vpow2.f32 %v2744_v20  ;;  %7083 = vst [vmem:[#allocation47_spill] sm:$0xff] %v6077_v37  ;;  %v6079_v39 = vpop.eup %3506  ;;  %v2637_v20 = vsub.f32 %v5711_v13, %v5977_v4  ;;  %v6114_v13 = vsel %vm7089_vm15, %v5972_v56, -inf  ;;  %v6119_v4 = vsel %vm7090_vm1, %v5974_v5, -inf }
 0x688   : > { %2854 = vadd.xlane.f32.xlu1 %v2853_v26  ;;  %7084 = vst [vmem:[#allocation48_spill] sm:$0xff] %v6079_v39  ;;  %3512 = vpow2.f32 %v2718_v35  ;;  %v2829_v53 = vadd.f32 %v6079_v39, %v6077_v37  ;;  %v2696_v26 = vmul.f32 1.442695, %v2627_v8  ;;  %v2714_v12 = vmul.f32 1.442695, %v2636_v44 }
 0x689   : > { %3514 = vpow2.f32 %v2720_v19  ;;  %v2716_v35 = vmul.f32 1.442695, %v2637_v20  ;;  %v2586_v19 = vmax.f32 %v5925_v32, %v5929_v18  ;;  %v2634_v59 = vsub.f32 %v5693_v43, %v5957_v2  ;;  %v2573_v40 = vpop.xlane.xlu0 %2572  ;;  %v7093_v20 = vld [vmem:[#allocation24_spill] sm:$0xff] }
 0x68a   : > { %v1891_v15 = vpop.f32.mrf.mxu0  ;;  %v2004_v1 = vpop.f32.mrf.mxu1  ;;  %3516 = vpow2.f32 %v2694_v10  ;;  %v2635_v8 = vsub.f32 %v5689_v62, %v5957_v2  ;;  %v2598_v61 = vmax.f32 %v6114_v13, %v6119_v4  ;;  %v2652_v2 = vsub.f32 %v5879_v49, %v2573_v40 }
 0x68b   : > { %v6087_v16 = vsel %vm7086_vm11, %v1891_v15, -inf  ;;  %v6091_v57 = vsel %vm7088_vm2, %v2004_v1, -inf  ;;  %3518 = vpow2.f32 %v2696_v26  ;;  %v2710_v5 = vmul.f32 1.442695, %v2634_v59 }
 0x68c   : > { %v6093_v3 = vpop.eup %3508  ;;  %v2616_v31 = vmax.f32 %v6087_v16, %v6091_v57  ;;  %3520 = vpow2.f32 %v2714_v12  ;;  %v2712_v43 = vmul.f32 1.442695, %v2635_v8  ;;  %vm2202_vm10 = vcmp.eq.s32.totalorder %v7093_v20, %v5324_v36 }
 0x68d   : > { %v6101_v25 = vpop.eup %3510  ;;  %3522 = vpow2.f32 %v2716_v35  ;;  %v2595_v10 = vmax.f32 %v5961_v54, %v5965_v14  ;;  %vm2203_vm14 = vcmp.eq.s32.totalorder %v7093_v20, %v5333_v50  ;;  %v2746_v49 = vmul.f32 1.442695, %v2652_v2 }
 0x68e   : > { %2830 = vadd.xlane.f32.xlu2 %v2829_v53  ;;  %v2856_v55 = vadd.f32 %v6101_v25, %v6093_v3  ;;  %v6107_v15 = vpop.eup %3512  ;;  %3524 = vpow2.f32 %v2710_v5  ;;  %v2653_v53 = vsub.f32 %v5881_v41, %v2573_v40  ;;  %v2629_v5 = vsub.f32 %v5597_v58, %v5945_v63  ;;  %v7099_v58 = vld [vmem:[#allocation29_spill] sm:$0xff] }
 0x68f   : > { %v6109_v1 = vpop.eup %3514  ;;  %3526 = vpow2.f32 %v2712_v43  ;;  %vm7132_vm11 = vcmask 457728  }
 0x690   : > { %2617 = vmax.xlane.f32.xlu1 %v2616_v31  ;;  %2857 = vadd.xlane.f32.xlu0 %v2856_v55  ;;  %v2838_v6 = vadd.f32 %v6109_v1, %v6107_v15  ;;  %v6131_v56 = vpop.eup %3516  ;;  %v7094_v55 = vld [vmem:[#allocation25_spill] sm:$0xff]  ;;  %v2748_v35 = vmul.f32 1.442695, %v2653_v53  ;;  %3528 = vpow2.f32 %v2746_v49  ;;  %v7101_v49 = vld [vmem:[#allocation42_spill] sm:$0xff]  ;;  %vm7133_vm2 = vmmov %vm7132_vm11 }
 0x691   : > { %7091 = vst [vmem:[#allocation22_spill] sm:$0xff] %v6131_v56  ;;  %v6133_v0 = vpop.eup %3518  ;;  %vm2396_vm6 = vcmp.eq.s32.totalorder %v7094_v55, %v5329_v23  ;;  %vm2397_vm12 = vcmp.eq.s32.totalorder %v7094_v55, %v5331_v52  ;;  %vm7134_vm15 = vmmov %vm7133_vm2 }
 0x692   : > { %7092 = vst [vmem:[#allocation23_spill] sm:$0xff] %v6133_v0  ;;  %v6135_v44 = vpop.eup %3520  ;;  %v2820_v31 = vadd.f32 %v6133_v0, %v6131_v56  ;;  %v1894_v41 = vpop.f32.mrf.mxu0  ;;  %vm2460_vm8 = vmor %vm2202_vm10, %vm2396_vm6  ;;  %3530 = vpow2.f32 %v2748_v35 }
 0x693   : > { %v6137_v62 = vpop.eup %3522  ;;  %v2007_v12 = vpop.f32.mrf.mxu1  ;;  %vm2461_vm4 = vmor %vm2203_vm14, %vm2397_vm12  ;;  %v6159_v8 = vsel %vm2460_vm8, %v1894_v41, -inf }
 0x694   : > { %v2835_v26 = vadd.f32 %v6137_v62, %v6135_v44  ;;  %vm7135_vm1 = vmmov %vm7133_vm2 }
 0x695   : > { %vm7168_vm10 = vmmov %vm7135_vm1 }
 0x696   : > { %2587 = vmax.xlane.f32.xlu2 %v2586_v19  ;;  %v6155_v19 = vpop.eup %3524  ;;  %vm7169_vm6 = vmmov %vm7135_vm1 }
 0x697   : > { %7095 = vst [vmem:[#allocation24_spill] sm:$0xff] %v6155_v19  ;;  %v6157_v59 = vpop.eup %3526  ;;  %vm7177_vm14 = vmmov %vm7135_vm1 }
 0x698   : > { %2599 = vmax.xlane.f32.xlu1 %v2598_v61  ;;  %2839 = vadd.xlane.f32.xlu0 %v2838_v6  ;;  %7096 = vst [vmem:[#allocation25_spill] sm:$0xff] %v6157_v59  ;;  %v6161_v61 = vsel %vm2461_vm4, %v2007_v12, -inf  ;;  %v2628_v6 = vsub.f32 %v5595_v30, %v5945_v63  ;;  %v2832_v40 = vadd.f32 %v6157_v59, %v6155_v19  ;;  %v6171_v53 = vpop.eup %3528  ;;  %v7097_v30 = vld [vmem:[#allocation46_spill] sm:$0xff]  ;;  %vm7178_vm12 = vmmov %vm7135_vm1 }
 0x699   : > { %v2619_v43 = vmax.f32 %v6159_v8, %v6161_v61  ;;  %v6173_v20 = vpop.eup %3530  ;;  %v2631_v63 = vsub.f32 %v7099_v58, %v7097_v30  ;;  %v7107_v58 = vld [vmem:[#allocation41_spill] sm:$0xff]  ;;  %v7113_v59 = vld [vmem:[#allocation30_spill] sm:$0xff] }
 0x69a   : > { %v2698_v2 = vmul.f32 1.442695, %v2628_v6  ;;  %v2859_v12 = vadd.f32 %v6173_v20, %v6171_v53 }
 0x69b   : > { %v2704_v6 = vmul.f32 1.442695, %v2631_v63  ;;  %v7108_v63 = vld [vmem:[#allocation26_spill] sm:$0xff] }
 0x69c   : > { %3532 = vpow2.f32 %v2698_v2  ;;  %v7105_v2 = vld [vmem:[#allocation44_spill] sm:$0xff] }
 0x69e   : > { %2821 = vadd.xlane.f32.xlu2 %v2820_v31  ;;  %v2700_v31 = vmul.f32 1.442695, %v2629_v5 }
 0x6a0   : > { %2596 = vmax.xlane.f32.xlu1 %v2595_v10  ;;  %2836 = vadd.xlane.f32.xlu0 %v2835_v26  ;;  %v7098_v10 = vld [vmem:[#allocation28_spill] sm:$0xff]  ;;  %3534 = vpow2.f32 %v2700_v31  ;;  %v7100_v26 = vld [vmem:[#allocation43_spill] sm:$0xff] }
 0x6a1   : > { %v2630_v55 = vsub.f32 %v7098_v10, %v7097_v30  ;;  %v2589_v41 = vmax.f32 %v7101_v49, %v7100_v26 }
 0x6a2   : > { %v6183_v5 = vpop.eup %3532 }
 0x6a3   : > { %v2702_v35 = vmul.f32 1.442695, %v2630_v55  ;;  %7102 = vst [vmem:[#allocation46_spill] sm:$0xff] %v6183_v5 }
 0x6a5   : > { %3536 = vpow2.f32 %v2702_v35  ;;  %v7110_v35 = vld [vmem:[#allocation37_spill] sm:$0xff] }
 0x6a6   : > { %3538 = vpow2.f32 %v2704_v6  ;;  %v7111_v6 = vld [vmem:[#allocation36_spill] sm:$0xff] }
 0x6a7   : > { %v2580_v56 = vmax.f32 %v7111_v6, %v7110_v35 }
 0x6a8   : > { %2620 = vmax.xlane.f32.xlu1 %v2619_v43  ;;  %2833 = vadd.xlane.f32.xlu0 %v2832_v40  ;;  %v6185_v43 = vpop.eup %3534  ;;  %v7104_v40 = vld [vmem:[#allocation45_spill] sm:$0xff] }
 0x6a9   : > { %7103 = vst [vmem:[#allocation28_spill] sm:$0xff] %v6185_v43  ;;  %v2592_v31 = vmax.f32 %v7105_v2, %v7104_v40  ;;  %v2823_v30 = vadd.f32 %v6185_v43, %v6183_v5  ;;  %v2286_v43 = vpop.permute.xlu2 %2285  ;;  %v7112_v5 = vld [vmem:[#allocation40_spill] sm:$0xff] }
 0x6aa   : > { %v2622_v19 = vsub.f32 %v7113_v59, %v7112_v5  ;;  %vm2366_vm13 = vcmp.eq.s32.totalorder %v2286_v43, %v5329_v23  ;;  %vm2367_vm3 = vcmp.eq.s32.totalorder %v2286_v43, %v5331_v52 }
 0x6ab   : > { %v6191_v10 = vpop.eup %3536 }
 0x6ac   : > { %v6193_v55 = vpop.eup %3538 }
 0x6ad   : > { %7106 = vst [vmem:[#allocation29_spill] sm:$0xff] %v6193_v55  ;;  %v2826_v39 = vadd.f32 %v6193_v55, %v6191_v10  ;;  %v7116_v55 = vld [vmem:[#allocation34_spill] sm:$0xff] }
 0x6b0   : > { %2590 = vmax.xlane.f32.xlu0 %v2589_v41  ;;  %2860 = vadd.xlane.f32.xlu1 %v2859_v12  ;;  %v2624_v41 = vsub.f32 %v7108_v63, %v7107_v58  ;;  %v7109_v12 = vld [vmem:[#allocation27_spill] sm:$0xff] }
 0x6b1   : > { %v2625_v0 = vsub.f32 %v7109_v12, %v7107_v58  ;;  %v7114_v58 = vld [vmem:[#allocation31_spill] sm:$0xff] }
 0x6b2   : > { %v2690_v37 = vmul.f32 1.442695, %v2624_v41  ;;  %v2623_v63 = vsub.f32 %v7114_v58, %v7112_v5  ;;  %v7115_v12 = vld [vmem:[#allocation35_spill] sm:$0xff] }
 0x6b3   : > { %v2577_v41 = vmax.f32 %v7116_v55, %v7115_v12 }
 0x6b4   : > { %3540 = vpow2.f32 %v2690_v37  ;;  %v2686_v37 = vmul.f32 1.442695, %v2622_v19 }
 0x6b8   : > { %2824 = vadd.xlane.f32.xlu0 %v2823_v30  ;;  %2593 = vmax.xlane.f32.xlu1 %v2592_v31  ;;  %v2692_v31 = vmul.f32 1.442695, %v2625_v0  ;;  %v2092_v30 = vpop.permute.xlu0 %2091 }
 0x6b9   : > { %vm2172_vm5 = vcmp.eq.s32.totalorder %v2092_v30, %v5324_v36  ;;  %vm2173_vm9 = vcmp.eq.s32.totalorder %v2092_v30, %v5333_v50  ;;  %v2688_v36 = vmul.f32 1.442695, %v2623_v63  ;;  %v7120_v50 = vld [vmem:[#allocation32_spill] sm:$0xff]  ;;  %v7121_v30 = vld [vmem:[#allocation33_spill] sm:$0xff] }
 0x6ba   : > { %3542 = vpow2.f32 %v2692_v31  ;;  %vm2430_vm7 = vmor %vm2172_vm5, %vm2366_vm13  ;;  %v6215_v59 = vpop.eup %3540 }
 0x6bb   : > { %vm2431_vm0 = vmor %vm2173_vm9, %vm2367_vm3  ;;  %v6220_v31 = vsel %vm2430_vm7, %v7120_v50, -inf  ;;  %3544 = vpow2.f32 %v2686_v37 }
 0x6bc   : > { %v6223_v58 = vsel %vm2431_vm0, %v7121_v30, -inf  ;;  %3546 = vpow2.f32 %v2688_v36 }
 0x6bd   : > { %v2574_v52 = vmax.f32 %v6220_v31, %v6223_v58 }
 0x6c0   : > { %2581 = vmax.xlane.f32.xlu0 %v2580_v56  ;;  %2827 = vadd.xlane.f32.xlu1 %v2826_v39  ;;  %v7117_v56 = vld [vmem:[#allocation39_spill] sm:$0xff]  ;;  %v7118_v39 = vld [vmem:[#allocation38_spill] sm:$0xff]  ;;  %v6217_v5 = vpop.eup %3542 }
 0x6c1   : > { %v2583_v0 = vmax.f32 %v7118_v39, %v7117_v56  ;;  %7119 = vst [vmem:[#allocation43_spill] sm:$0xff] %v6217_v5  ;;  %v2817_v23 = vadd.f32 %v6217_v5, %v6215_v59  ;;  %v6229_v19 = vpop.eup %3544 }
 0x6c2   : > { %7122 = vst [vmem:[#allocation42_spill] sm:$0xff] %v6229_v19  ;;  %v6231_v43 = vpop.eup %3546 }
 0x6c3   : > { %7123 = vst [vmem:[#allocation45_spill] sm:$0xff] %v6231_v43  ;;  %v2814_v63 = vadd.f32 %v6231_v43, %v6229_v19 }
 0x6c8   : > { %2578 = vmax.xlane.f32.xlu0 %v2577_v41  ;;  %2584 = vmax.xlane.f32.xlu1 %v2583_v0 }
 0x6d0   : > { %2818 = vadd.xlane.f32.xlu1 %v2817_v23  ;;  %2575 = vmax.xlane.f32.xlu0 %v2574_v52 }
 0x6d8   : > { %2815 = vadd.xlane.f32.xlu1 %v2814_v63 }
 0x6d9   : > { %v2603_v41 = vpop.xlane.xlu1 %2602 }
 0x6da   : > { %v2672_v0 = vsub.f32 %v5983_v11, %v2603_v41  ;;  %v2673_v37 = vsub.f32 %v5987_v29, %v2603_v41 }
 0x6dc   : > { %v2786_v36 = vmul.f32 1.442695, %v2672_v0  ;;  %v2788_v50 = vmul.f32 1.442695, %v2673_v37 }
 0x6de   : > { %3548 = vpow2.f32 %v2786_v36 }
 0x6df   : > { %3550 = vpow2.f32 %v2788_v50 }
 0x6e1   : > { %v6237_v30 = vpop.xlane.xlu1 %2842 }
 0x6e4   : > { %v6239_v23 = vpop.eup %3548 }
 0x6e5   : > { %7124 = vst [vmem:[#allocation44_spill] sm:$0xff] %v6239_v23  ;;  %v6241_v52 = vpop.eup %3550 }
 0x6e6   : > { %7125 = vst [vmem:[#allocation41_spill] sm:$0xff] %v6241_v52  ;;  %v2889_v5 = vadd.f32 %v6241_v52, %v6239_v23 }
 0x6e8   : > { %2890 = vadd.xlane.f32.xlu2 %v2889_v5 }
 0x6e9   : > { %v2606_v63 = vpop.xlane.xlu1 %2605  ;;  %v2609_v43 = vpop.xlane.xlu0 %2608 }
 0x6ea   : > { %v2674_v11 = vsub.f32 %v6007_v17, %v2606_v63  ;;  %v2675_v29 = vsub.f32 %v6011_v46, %v2606_v63  ;;  %v2676_v41 = vsub.f32 %v6017_v22, %v2609_v43  ;;  %v2677_v0 = vsub.f32 %v6021_v45, %v2609_v43  ;;  %v6253_v46 = vpop.xlane.xlu2 %2845 }
 0x6ec   : > { %v2790_v37 = vmul.f32 1.442695, %v2674_v11  ;;  %v2792_v36 = vmul.f32 1.442695, %v2675_v29  ;;  %v2794_v50 = vmul.f32 1.442695, %v2676_v41 }
 0x6ed   : > { %v2796_v19 = vmul.f32 1.442695, %v2677_v0 }
 0x6ee   : > { %3552 = vpow2.f32 %v2790_v37 }
 0x6ef   : > { %3554 = vpow2.f32 %v2792_v36 }
 0x6f0   : > { %3556 = vpow2.f32 %v2794_v50 }
 0x6f1   : > { %3558 = vpow2.f32 %v2796_v19  ;;  %v2612_v52 = vpop.xlane.xlu1 %2611 }
 0x6f2   : > { %v2678_v5 = vsub.f32 %v6041_v42, %v2612_v52  ;;  %v2679_v23 = vsub.f32 %v6045_v47, %v2612_v52  ;;  %v6273_v41 = vpop.xlane.xlu2 %2848 }
 0x6f3   : > { %v6265_v47 = vpop.xlane.xlu0 %2851 }
 0x6f4   : > { %v6251_v17 = vpop.eup %3552  ;;  %v2798_v22 = vmul.f32 1.442695, %v2678_v5  ;;  %v2800_v63 = vmul.f32 1.442695, %v2679_v23 }
 0x6f5   : > { %7126 = vst [vmem:[#allocation26_spill] sm:$0xff] %v6251_v17  ;;  %v6255_v45 = vpop.eup %3554 }
 0x6f6   : > { %7127 = vst [vmem:[#allocation27_spill] sm:$0xff] %v6255_v45  ;;  %v6257_v43 = vpop.eup %3556  ;;  %3560 = vpow2.f32 %v2798_v22  ;;  %v2892_v11 = vadd.f32 %v6255_v45, %v6251_v17 }
 0x6f7   : > { %7128 = vst [vmem:[#allocation37_spill] sm:$0xff] %v6257_v43  ;;  %v6261_v19 = vpop.eup %3558  ;;  %3562 = vpow2.f32 %v2800_v63 }
 0x6f8   : > { %7129 = vst [vmem:[#allocation36_spill] sm:$0xff] %v6261_v19  ;;  %2893 = vadd.xlane.f32.xlu1 %v2892_v11  ;;  %v2895_v42 = vadd.f32 %v6261_v19, %v6257_v43 }
 0x6fa   : > { %2896 = vadd.xlane.f32.xlu0 %v2895_v42  ;;  %v2615_v22 = vpop.xlane.xlu2 %2614 }
 0x6fb   : > { %v6267_v52 = vpop.xlane.xlu1 %2854 }
 0x6fc   : > { %v6269_v23 = vpop.eup %3560 }
 0x6fd   : > { %7130 = vst [vmem:[#allocation40_spill] sm:$0xff] %v6269_v23  ;;  %v6271_v29 = vpop.eup %3562 }
 0x6fe   : > { %7131 = vst [vmem:[#allocation30_spill] sm:$0xff] %v6271_v29  ;;  %v2898_v0 = vadd.f32 %v6271_v29, %v6269_v23 }
 0x700   : > { %2899 = vadd.xlane.f32.xlu2 %v2898_v0 }
 0x703   : > { %v2618_v37 = vpop.xlane.xlu1 %2617  ;;  %v6277_v36 = vpop.xlane.xlu0 %2857 }
 0x704   : > { %v2682_v50 = vsub.f32 %v6087_v16, %v2618_v37  ;;  %v2683_v5 = vsub.f32 %v6091_v57, %v2618_v37  ;;  %v6289_v16 = vpop.xlane.xlu2 %2830 }
 0x706   : > { %v2806_v63 = vmul.f32 1.442695, %v2682_v50  ;;  %v2808_v11 = vmul.f32 1.442695, %v2683_v5 }
 0x708   : > { %3564 = vpow2.f32 %v2806_v63 }
 0x709   : > { %3566 = vpow2.f32 %v2808_v11 }
 0x70b   : > { %v2600_v42 = vpop.xlane.xlu1 %2599  ;;  %v6281_v45 = vpop.xlane.xlu0 %2839 }
 0x70c   : > { %v2670_v17 = vsub.f32 %v6114_v13, %v2600_v42  ;;  %v2671_v19 = vsub.f32 %v6119_v4, %v2600_v42  ;;  %v2588_v42 = vpop.xlane.xlu2 %2587 }
 0x70e   : > { %v6285_v0 = vpop.eup %3564  ;;  %v2782_v43 = vmul.f32 1.442695, %v2670_v17  ;;  %v2784_v29 = vmul.f32 1.442695, %v2671_v19  ;;  %v2680_v17 = vsub.f32 %v6059_v28, %v2615_v22 }
 0x70f   : > { %v6287_v23 = vpop.eup %3566 }
 0x710   : > { %3568 = vpow2.f32 %v2782_v43  ;;  %v2904_v57 = vadd.f32 %v6287_v23, %v6285_v0  ;;  %v2681_v43 = vsub.f32 %v6063_v24, %v2615_v22 }
 0x711   : > { %3570 = vpow2.f32 %v2784_v29 }
 0x712   : > { %2905 = vadd.xlane.f32.xlu2 %v2904_v57  ;;  %v2804_v28 = vmul.f32 1.442695, %v2681_v43  ;;  %v2663_v43 = vsub.f32 %v5929_v18, %v2588_v42 }
 0x713   : > { %v2597_v37 = vpop.xlane.xlu1 %2596  ;;  %v6293_v50 = vpop.xlane.xlu0 %2836 }
 0x714   : > { %v2668_v13 = vsub.f32 %v5961_v54, %v2597_v37  ;;  %v2669_v4 = vsub.f32 %v5965_v14, %v2597_v37  ;;  %v1482_v54 = vld [vmem:[%s6598_s7 + $0x28] sm:$0xff]  ;;  %v2802_v14 = vmul.f32 1.442695, %v2680_v17 }
 0x715   : > { %3362 = vmatmul.msk.f32.gmra.mxu2 %vm7132_vm11, %v1482_v54  ;;  %3369 = vmatmul.msk.f32.gmra.mxu3 %vm7133_vm2, %v1482_v54 }
 0x716   : > { %v6297_v5 = vpop.eup %3568  ;;  %v2778_v19 = vmul.f32 1.442695, %v2668_v13  ;;  %v2780_v63 = vmul.f32 1.442695, %v2669_v4  ;;  %v2662_v4 = vsub.f32 %v5925_v32, %v2588_v42 }
 0x717   : > { %v6300_v11 = vpop.eup %3570 }
 0x718   : > { %3572 = vpow2.f32 %v2778_v19  ;;  %v2886_v29 = vadd.f32 %v6300_v11, %v6297_v5 }
 0x719   : > { %3574 = vpow2.f32 %v2780_v63 }
 0x71a   : > { %2887 = vadd.xlane.f32.xlu0 %v2886_v29  ;;  %3576 = vpow2.f32 %v2802_v14 }
 0x71b   : > { %v2621_v57 = vpop.xlane.xlu1 %2620  ;;  %v6309_v37 = vpop.xlane.xlu0 %2833  ;;  %3578 = vpow2.f32 %v2804_v28 }
 0x71c   : > { %v2684_v24 = vsub.f32 %v6159_v8, %v2621_v57  ;;  %v2685_v22 = vsub.f32 %v6161_v61, %v2621_v57  ;;  %v2766_v8 = vmul.f32 1.442695, %v2662_v4  ;;  %v2768_v61 = vmul.f32 1.442695, %v2663_v43 }
 0x71e   : > { %v6314_v13 = vpop.eup %3572  ;;  %v2810_v17 = vmul.f32 1.442695, %v2684_v24  ;;  %v2812_v19 = vmul.f32 1.442695, %v2685_v22 }
 0x71f   : > { %v6317_v63 = vpop.eup %3574 }
 0x720   : > { %3580 = vpow2.f32 %v2810_v17  ;;  %v2883_v29 = vadd.f32 %v6317_v63, %v6314_v13  ;;  %v6322_v14 = vpop.eup %3576 }
 0x721   : > { %3582 = vpow2.f32 %v2812_v19  ;;  %v6326_v28 = vpop.eup %3578 }
 0x722   : > { %2884 = vadd.xlane.f32.xlu1 %v2883_v29 }
 0x723   : > { %v2861_v54 = vpop.xlane.xlu1 %2860  ;;  %v2591_v57 = vpop.xlane.xlu0 %2590 }
 0x724   : > { %3584 = vrcp.f32 %v2861_v54  ;;  %v2664_v32 = vsub.f32 %v7101_v49, %v2591_v57  ;;  %v2665_v24 = vsub.f32 %v7100_v26, %v2591_v57  ;;  %v2901_v49 = vadd.f32 %v6326_v28, %v6322_v14  ;;  %v1483_v26 = vld [vmem:[%s6598_s7 + $0x30] sm:$0xff] }
 0x725   : > { %3586 = vrcp.f32 %v6277_v36  ;;  %3363 = vmatmul.msk.f32.gmra.mxu2 %vm7134_vm15, %v1483_v26  ;;  %3370 = vmatmul.msk.f32.gmra.mxu3 %vm7135_vm1, %v1483_v26 }
 0x726   : > { %v6329_v18 = vpop.eup %3580  ;;  %3588 = vpow2.f32 %v2766_v8  ;;  %v2770_v42 = vmul.f32 1.442695, %v2664_v32  ;;  %v2772_v22 = vmul.f32 1.442695, %v2665_v24 }
 0x727   : > { %v6331_v4 = vpop.eup %3582  ;;  %3590 = vpow2.f32 %v2768_v61 }
 0x728   : > { %3592 = vpow2.f32 %v2770_v42  ;;  %v2907_v17 = vadd.f32 %v6331_v4, %v6329_v18 }
 0x729   : > { %3594 = vpow2.f32 %v2772_v22 }
 0x72a   : > { %v3585_v36 = vpop.eup %3584  ;;  %3596 = vrcp.f32 %v6267_v52  ;;  %2908 = vadd.xlane.f32.xlu2 %v2907_v17  ;;  %2902 = vadd.xlane.f32.xlu1 %v2901_v49 }
 0x72b   : > { %v3587_v19 = vpop.eup %3586  ;;  %v2594_v43 = vpop.xlane.xlu1 %2593  ;;  %v2972_v8 = vmul.f32 %v3585_v36, %v6171_v53  ;;  %v2973_v61 = vmul.f32 %v3585_v36, %v6173_v20  ;;  %3598 = vrcp.f32 %v6265_v47 }
 0x72c   : > { %v6341_v29 = vpop.xlane.xlu0 %2824  ;;  %v6347_v54 = vpop.eup %3588  ;;  %v2666_v57 = vsub.f32 %v7105_v2, %v2594_v43  ;;  %v2667_v52 = vsub.f32 %v7104_v40, %v2594_v43  ;;  %v2970_v22 = vmul.f32 %v3587_v19, %v6093_v3  ;;  %v2971_v17 = vmul.f32 %v3587_v19, %v6101_v25 }
 0x72d   : > { %v6351_v32 = vpop.eup %3590  ;;  %3006 = vmatpush.xpose.msra.mxu2 %v2972_v8  ;;  %3044 = vmatpush.xpose.msra.mxu3 %v2973_v61 }
 0x72e   : > { %v6353_v24 = vpop.eup %3592  ;;  %v2774_v53 = vmul.f32 1.442695, %v2666_v57  ;;  %v2776_v20 = vmul.f32 1.442695, %v2667_v52  ;;  %v2874_v40 = vadd.f32 %v6351_v32, %v6347_v54 }
 0x72f   : > { %v6356_v42 = vpop.eup %3594 }
 0x730   : > { %v3597_v49 = vpop.eup %3596  ;;  %3600 = vpow2.f32 %v2774_v53  ;;  %v2877_v2 = vadd.f32 %v6356_v42, %v6353_v24 }
 0x731   : > { %3602 = vpow2.f32 %v2776_v20  ;;  %3007 = vmatpush.xpose.msra.mxu2 %v2970_v22  ;;  %3045 = vmatpush.xpose.msra.mxu3 %v2971_v17  ;;  %v2968_v25 = vmul.f32 %v3597_v49, %v6065_v7  ;;  %v2969_v26 = vmul.f32 %v3597_v49, %v6071_v34  ;;  %v3599_v36 = vpop.eup %3598 }
 0x732   : > { %3604 = vrcp.f32 %v6273_v41  ;;  %2875 = vadd.xlane.f32.xlu1 %v2874_v40  ;;  %2878 = vadd.xlane.f32.xlu0 %v2877_v2  ;;  %v2966_v52 = vmul.f32 %v3599_v36, %v6047_v48  ;;  %v2967_v7 = vmul.f32 %v3599_v36, %v6051_v38 }
 0x733   : > { %v6365_v47 = vpop.xlane.xlu1 %2827  ;;  %3606 = vrcp.f32 %v6253_v46 }
 0x734   : > { %v2582_v3 = vpop.xlane.xlu0 %2581 }
 0x735   : > { %v2658_v19 = vsub.f32 %v7111_v6, %v2582_v3  ;;  %v2659_v43 = vsub.f32 %v7110_v35, %v2582_v3  ;;  %3008 = vmatpush.xpose.msra.mxu2 %v2968_v25  ;;  %3046 = vmatpush.xpose.msra.mxu3 %v2969_v26 }
 0x736   : > { %v6371_v8 = vpop.eup %3600 }
 0x737   : > { %v2758_v41 = vmul.f32 1.442695, %v2658_v19  ;;  %v2760_v61 = vmul.f32 1.442695, %v2659_v43  ;;  %v6374_v57 = vpop.eup %3602 }
 0x738   : > { %v3605_v34 = vpop.eup %3604  ;;  %v2880_v6 = vadd.f32 %v6374_v57, %v6371_v8 }
 0x739   : > { %3608 = vpow2.f32 %v2758_v41  ;;  %3009 = vmatpush.xpose.msra.mxu2 %v2966_v52  ;;  %3047 = vmatpush.xpose.msra.mxu3 %v2967_v7  ;;  %v2964_v53 = vmul.f32 %v3605_v34, %v6023_v60  ;;  %v2965_v20 = vmul.f32 %v3605_v34, %v6029_v33  ;;  %v3607_v48 = vpop.eup %3606 }
 0x73a   : > { %3610 = vpow2.f32 %v2760_v61  ;;  %2881 = vadd.xlane.f32.xlu2 %v2880_v6  ;;  %v2962_v33 = vmul.f32 %v3607_v48, %v5997_v9 }
 0x73b   : > { %3612 = vrcp.f32 %v6237_v30  ;;  %v2585_v35 = vpop.xlane.xlu1 %2584 }
 0x73c   : > { %v2579_v46 = vpop.xlane.xlu0 %2578  ;;  %v2660_v38 = vsub.f32 %v7118_v39, %v2585_v35  ;;  %v2661_v22 = vsub.f32 %v7117_v56, %v2585_v35  ;;  %3614 = vrcp.f32 %v6281_v45  ;;  %v2963_v39 = vmul.f32 %v3607_v48, %v6001_v51  ;;  %v3195_v48 = vld [vmem:[%s6602_s11] sm:$0xff] }
 0x73d   : > { %3010 = vmatpush.xpose.msra.mxu2 %v2964_v53  ;;  %3048 = vmatpush.xpose.msra.mxu3 %v2965_v20  ;;  %v2656_v40 = vsub.f32 %v7116_v55, %v2579_v46  ;;  %v2657_v60 = vsub.f32 %v7115_v12, %v2579_v46  ;;  %v7137_v46 = vld [vmem:[#allocation25_spill] sm:$0xff] }
 0x73e   : > { %v2762_v49 = vmul.f32 1.442695, %v2660_v38  ;;  %v2764_v30 = vmul.f32 1.442695, %v2661_v22  ;;  %v7138_v22 = vld [vmem:[#allocation47_spill] sm:$0xff] }
 0x73f   : > { %v6385_v17 = vpop.eup %3608  ;;  %v2754_v45 = vmul.f32 1.442695, %v2656_v40  ;;  %v2756_v55 = vmul.f32 1.442695, %v2657_v60 }
 0x740   : > { %v6389_v2 = vpop.eup %3610  ;;  %3616 = vpow2.f32 %v2762_v49 }
 0x741   : > { %v3613_v3 = vpop.eup %3612  ;;  %v2868_v56 = vadd.f32 %v6389_v2, %v6385_v17  ;;  %3618 = vpow2.f32 %v2764_v30  ;;  %3011 = vmatpush.xpose.msra.mxu2 %v2962_v33  ;;  %3049 = vmatpush.xpose.msra.mxu3 %v2963_v39  ;;  %v7139_v30 = vld [vmem:[#allocation48_spill] sm:$0xff]  ;;  %v7140_v39 = vld [vmem:[#allocation29_spill] sm:$0xff] }
 0x742   : > { %3620 = vrcp.f32 %v6293_v50  ;;  %v2960_v12 = vmul.f32 %v3613_v3, %v5991_v21  ;;  %v2961_v9 = vmul.f32 %v3613_v3, %v5993_v27  ;;  %v3615_v26 = vpop.eup %3614 }
 0x743   : > { %2869 = vadd.xlane.f32.xlu0 %v2868_v56  ;;  %3622 = vrcp.f32 %v6309_v37  ;;  %v2958_v21 = vmul.f32 %v3615_v26, %v6107_v15  ;;  %v2959_v27 = vmul.f32 %v3615_v26, %v6109_v1  ;;  %v2819_v38 = vpop.xlane.xlu1 %2818  ;;  %v1564_v26 = vpop.f32.mrf.mxu2 }
 0x744   : > { %v2576_v25 = vpop.xlane.xlu0 %2575  ;;  %3624 = vpow2.f32 %v2754_v45  ;;  %v7141_v45 = vld [vmem:[#allocation46_spill] sm:$0xff] }
 0x745   : > { %v2654_v51 = vsub.f32 %v6220_v31, %v2576_v25  ;;  %v2655_v36 = vsub.f32 %v6223_v58, %v2576_v25  ;;  %3012 = vmatpush.xpose.msra.mxu2 %v2960_v12  ;;  %3050 = vmatpush.xpose.msra.mxu3 %v2961_v9  ;;  %3626 = vpow2.f32 %v2756_v55  ;;  %v1489_v58 = vld [vmem:[%s6599_s8 + $0x28] sm:$0xff] }
 0x746   : > { %v6402_v19 = vpop.eup %3616  ;;  %v7142_v25 = vld [vmem:[#allocation28_spill] sm:$0xff] }
 0x747   : > { %v2750_v50 = vmul.f32 1.442695, %v2654_v51  ;;  %v2752_v43 = vmul.f32 1.442695, %v2655_v36  ;;  %v6404_v41 = vpop.eup %3618  ;;  %v1602_v51 = vpop.f32.mrf.mxu3  ;;  %v7143_v36 = vld [vmem:[#allocation22_spill] sm:$0xff] }
 0x748   : > { %v3621_v61 = vpop.eup %3620  ;;  %v2871_v31 = vadd.f32 %v6404_v41, %v6402_v19 }
 0x749   : > { %3628 = vpow2.f32 %v2750_v50  ;;  %3013 = vmatpush.xpose.msra.mxu2 %v2958_v21  ;;  %3051 = vmatpush.xpose.msra.mxu3 %v2959_v27  ;;  %v3623_v37 = vpop.eup %3622  ;;  %v2956_v15 = vmul.f32 %v3621_v61, %v6135_v44  ;;  %v2957_v1 = vmul.f32 %v3621_v61, %v6137_v62  ;;  %v3475_v27 = vld [vmem:[#allocation2] ss:$0 sm:$0xff] }
 0x74a   : > { %3630 = vpow2.f32 %v2752_v43  ;;  %2872 = vadd.xlane.f32.xlu2 %v2871_v31  ;;  %v6416_v52 = vpop.eup %3624  ;;  %v2955_v53 = vmul.f32 %v3623_v37, %v7137_v46  ;;  %v7145_v31 = vld [vmem:[#allocation43_spill] sm:$0xff]  ;;  %v1490_v46 = vld [vmem:[%s6599_s8 + $0x30] sm:$0xff] }
 0x74b   : > { %3632 = vrcp.f32 %v6289_v16  ;;  %1518 = vperm.xlu1 %3474, %v1489_v58   ;;  %v6418_v7 = vpop.eup %3626  ;;  %v7136_v16 = vld [vmem:[#allocation24_spill] sm:$0xff] }
 0x74c   : > { %3634 = vrcp.f32 %v6365_v47  ;;  %v2954_v35 = vmul.f32 %v3623_v37, %v7136_v16  ;;  %v2865_v44 = vadd.f32 %v6418_v7, %v6416_v52  ;;  %v2822_v47 = vpop.xlane.xlu2 %2821  ;;  %v7147_v16 = vld [vmem:[#allocation45_spill] sm:$0xff] }
 0x74d   : > { %3014 = vmatpush.xpose.msra.mxu2 %v2956_v15  ;;  %3052 = vmatpush.xpose.msra.mxu3 %v2957_v1  ;;  %3636 = vrcp.f32 %v6341_v29  ;;  %v2816_v29 = vpop.xlane.xlu1 %2815  ;;  %v7146_v15 = vld [vmem:[#allocation42_spill] sm:$0xff] }
 0x74e   : > { %3638 = vrcp.f32 %v2822_v47 }
 0x74f   : > { %v6420_v34 = vpop.eup %3628  ;;  %3640 = vrcp.f32 %v2819_v38  ;;  %v7149_v38 = vld [vmem:[#allocation18_spill] sm:$0xff] }
 0x750   : > { %v6423_v6 = vpop.eup %3630  ;;  %3642 = vrcp.f32 %v2816_v29 }
 0x751   : > { %v3633_v20 = vpop.eup %3632  ;;  %v2862_v62 = vadd.f32 %v6423_v6, %v6420_v34  ;;  %3015 = vmatpush.xpose.msra.mxu2 %v2954_v35  ;;  %3053 = vmatpush.xpose.msra.mxu3 %v2955_v53  ;;  %v1567_v53 = vpop.f32.mrf.mxu2 }
 0x752   : > { %2866 = vadd.xlane.f32.xlu2 %v2865_v44  ;;  %v2952_v49 = vmul.f32 %v3633_v20, %v7138_v22  ;;  %v2953_v40 = vmul.f32 %v3633_v20, %v7139_v30  ;;  %v3635_v60 = vpop.eup %3634  ;;  %v1605_v20 = vpop.f32.mrf.mxu3  ;;  %v7148_v44 = vld [vmem:[#allocation17_spill] sm:$0xff]  ;;  %v6462_v47 = vadd.f32 %v1567_v53, %v7149_v38 }
 0x753   : > { %2863 = vadd.xlane.f32.xlu0 %v2862_v62  ;;  %3199 = vperm.xlu1 %3474, %v3195_v48   ;;  %v2950_v33 = vmul.f32 %v3635_v60, %v6191_v10  ;;  %v2951_v3 = vmul.f32 %v3635_v60, %v7140_v39  ;;  %v3637_v56 = vpop.eup %3636  ;;  %v7144_v10 = vld [vmem:[#allocation23_spill] sm:$0xff]  ;;  %v6454_v62 = vadd.f32 %v1602_v51, %v7148_v44 }
 0x754   : > { %v2948_v55 = vmul.f32 %v3637_v56, %v7141_v45  ;;  %v2949_v12 = vmul.f32 %v3637_v56, %v7142_v25  ;;  %v3639_v9 = vpop.eup %3638  ;;  %v3196_v48 = vld [vmem:[%s6602_s11 + $0x8] sm:$0xff]  ;;  %v6465_v22 = vadd.f32 %v1605_v20, %v7149_v38 }
 0x755   : > { %3016 = vmatpush.xpose.msra.mxu2 %v2952_v49  ;;  %3054 = vmatpush.xpose.msra.mxu3 %v2953_v40  ;;  %v2946_v50 = vmul.f32 %v3639_v9, %v7143_v36  ;;  %v2947_v43 = vmul.f32 %v3639_v9, %v7144_v10  ;;  %v3641_v21 = vpop.eup %3640  ;;  %v7150_v40 = vld [vmem:[#allocation19_spill] sm:$0xff]  ;;  %v7151_v56 = vld [vmem:[#allocation20_spill] sm:$0xff]  ;;  %v7152_v9 = vld [vmem:[#allocation21_spill] sm:$0xff] }
 0x756   : > { %v2944_v61 = vmul.f32 %v3641_v21, %v6215_v59  ;;  %v2945_v58 = vmul.f32 %v3641_v21, %v7145_v31  ;;  %v3643_v37 = vpop.eup %3642  ;;  %v6451_v59 = vadd.f32 %v1564_v26, %v7148_v44  ;;  %v7154_v44 = vld [vmem:[#allocation30_spill] sm:$0xff] }
 0x757   : > { %v2942_v1 = vmul.f32 %v3643_v37, %v7146_v15  ;;  %v2943_v35 = vmul.f32 %v3643_v37, %v7147_v16 }
 0x759   : > { %3017 = vmatpush.xpose.msra.mxu2 %v2950_v33  ;;  %3055 = vmatpush.xpose.msra.mxu3 %v2951_v3  ;;  %v1570_v49 = vpop.f32.mrf.mxu2 }
 0x75a   : > { %v1608_v30 = vpop.f32.mrf.mxu3  ;;  %v6470_v60 = vadd.f32 %v1570_v49, %v7150_v40 }
 0x75b   : > { %v6473_v33 = vadd.f32 %v1608_v30, %v7150_v40  ;;  %v7155_v30 = vld [vmem:[#allocation37_spill] sm:$0xff] }
 0x75d   : > { %3018 = vmatpush.xpose.msra.mxu2 %v2948_v55  ;;  %3056 = vmatpush.xpose.msra.mxu3 %v2949_v12  ;;  %v2891_v55 = vpop.xlane.xlu2 %2890 }
 0x761   : > { %3019 = vmatpush.xpose.msra.mxu2 %v2946_v50  ;;  %3057 = vmatpush.xpose.msra.mxu3 %v2947_v43  ;;  %v1573_v39 = vpop.f32.mrf.mxu2 }
 0x762   : > { %v1611_v3 = vpop.f32.mrf.mxu3  ;;  %v6478_v29 = vadd.f32 %v1573_v39, %v7151_v56 }
 0x763   : > { %v6481_v45 = vadd.f32 %v1611_v3, %v7151_v56  ;;  %v7157_v3 = vld [vmem:[#allocation26_spill] sm:$0xff] }
 0x765   : > { %3020 = vmatpush.xpose.msra.mxu2 %v2944_v61  ;;  %3058 = vmatpush.xpose.msra.mxu3 %v2945_v58 }
 0x767   : > { %3162 = vperm.xlu0 %3472, %v3475_v27  }
 0x769   : > { %3021 = vmatpush.xpose.msra.mxu2 %v2942_v1  ;;  %3059 = vmatpush.xpose.msra.mxu3 %v2943_v35  ;;  %v1576_v25 = vpop.f32.mrf.mxu2 }
 0x76a   : > { %1523 = vperm.xlu2 %3473, %v1490_v46   ;;  %v1614_v12 = vpop.f32.mrf.mxu3  ;;  %v6486_v26 = vadd.f32 %v1576_v25, %v7152_v9  ;;  %v7158_v25 = vld [vmem:[#allocation27_spill] sm:$0xff] }
 0x76b   : > { %v6489_v51 = vadd.f32 %v1614_v12, %v7152_v9  ;;  %v2894_v50 = vpop.xlane.xlu1 %2893 }
 0x76c   : > { %3022 = vmatmul.f32.vlgmr.msra.gmra.mxu2 %v6451_v59  ;;  %3060 = vmatmul.f32.vlgmr.msra.gmra.mxu3 %v6454_v62 }
 0x76d   : > { %v2897_v15 = vpop.xlane.xlu0 %2896 }
 0x76f   : > { %3204 = vperm.xlu0 %3472, %v3196_v48  }
 0x773   : > { %v2900_v36 = vpop.xlane.xlu2 %2899 }
 0x774   : > { %3025 = vmatmul.f32.gmra.mxu2 %v6462_v47  ;;  %3063 = vmatmul.f32.gmra.mxu3 %v6465_v22 }
 0x77c   : > { %3028 = vmatmul.f32.gmra.mxu2 %v6470_v60  ;;  %3066 = vmatmul.f32.gmra.mxu3 %v6473_v33 }
 0x784   : > { %3031 = vmatmul.f32.gmra.mxu2 %v6478_v29  ;;  %3069 = vmatmul.f32.gmra.mxu3 %v6481_v45 }
 0x785   : > { %v2906_v10 = vpop.xlane.xlu2 %2905 }
 0x78c   : > { %3034 = vmatmul.f32.gmra.mxu2 %v6486_v26  ;;  %3072 = vmatmul.f32.gmra.mxu3 %v6489_v51 }
 0x795   : > { %v2885_v43 = vpop.xlane.xlu1 %2884 }
 0x79d   : > { %v2909_v21 = vpop.xlane.xlu2 %2908  ;;  %v2903_v27 = vpop.xlane.xlu1 %2902 }
 0x79e   : > { %3644 = vrcp.f32 %v2909_v21  ;;  %v7159_v21 = vld [vmem:[#allocation44_spill] sm:$0xff] }
 0x79f   : > { %3646 = vrcp.f32 %v2906_v10 }
 0x7a0   : > { %3648 = vrcp.f32 %v2903_v27 }
 0x7a1   : > { %3650 = vrcp.f32 %v2900_v36  ;;  %v1579_v36 = vpop.f32.mrf.mxu2 }
 0x7a2   : > { %3652 = vrcp.f32 %v2897_v15 }
 0x7a3   : > { %3654 = vrcp.f32 %v2894_v50 }
 0x7a4   : > { %v3645_v61 = vpop.eup %3644  ;;  %3656 = vrcp.f32 %v2891_v55  ;;  %v1617_v55 = vpop.f32.mrf.mxu3 }
 0x7a5   : > { %v3004_v31 = vmul.f32 %v3645_v61, %v6329_v18  ;;  %v3005_v58 = vmul.f32 %v3645_v61, %v6331_v4  ;;  %v3647_v37 = vpop.eup %3646  ;;  %v7153_v4 = vld [vmem:[#allocation40_spill] sm:$0xff]  ;;  %v7160_v61 = vld [vmem:[#allocation41_spill] sm:$0xff] }
 0x7a6   : > { %v3002_v1 = vmul.f32 %v3647_v37, %v6285_v0  ;;  %v3003_v16 = vmul.f32 %v3647_v37, %v6287_v23  ;;  %v3649_v35 = vpop.eup %3648  ;;  %v2888_v23 = vpop.xlane.xlu0 %2887 }
 0x7a7   : > { %3082 = vmatpush.xpose.msrb.mxu2 %v3004_v31  ;;  %3120 = vmatpush.xpose.msrb.mxu3 %v3005_v58  ;;  %v3000_v46 = vmul.f32 %v3649_v35, %v6322_v14  ;;  %v3001_v53 = vmul.f32 %v3649_v35, %v6326_v28  ;;  %v3651_v18 = vpop.eup %3650  ;;  %v2876_v0 = vpop.xlane.xlu1 %2875  ;;  %v7156_v14 = vld [vmem:[#allocation36_spill] sm:$0xff]  ;;  %3658 = vrcp.f32 %v2888_v23 }
 0x7a8   : > { %v2998_v20 = vmul.f32 %v3651_v18, %v7153_v4  ;;  %v2999_v48 = vmul.f32 %v3651_v18, %v7154_v44  ;;  %v3653_v38 = vpop.eup %3652  ;;  %3660 = vrcp.f32 %v2885_v43 }
 0x7a9   : > { %v2996_v40 = vmul.f32 %v3653_v38, %v7155_v30  ;;  %v2997_v39 = vmul.f32 %v3653_v38, %v7156_v14  ;;  %v3655_v28 = vpop.eup %3654 }
 0x7aa   : > { %v2994_v56 = vmul.f32 %v3655_v28, %v7157_v3  ;;  %v2995_v12 = vmul.f32 %v3655_v28, %v7158_v25  ;;  %v3657_v9 = vpop.eup %3656 }
 0x7ab   : > { %3083 = vmatpush.xpose.msrb.mxu2 %v3002_v1  ;;  %3121 = vmatpush.xpose.msrb.mxu3 %v3003_v16  ;;  %v2992_v27 = vmul.f32 %v3657_v9, %v7159_v21  ;;  %v2993_v31 = vmul.f32 %v3657_v9, %v7160_v61 }
 0x7ad   : > { %v2882_v49 = vpop.xlane.xlu2 %2881  ;;  %v3659_v58 = vpop.eup %3658 }
 0x7ae   : > { %3662 = vrcp.f32 %v2882_v49  ;;  %v2879_v1 = vpop.xlane.xlu0 %2878  ;;  %v2990_v43 = vmul.f32 %v3659_v58, %v6297_v5  ;;  %v2991_v16 = vmul.f32 %v3659_v58, %v6300_v11  ;;  %v3661_v35 = vpop.eup %3660 }
 0x7af   : > { %3084 = vmatpush.xpose.msrb.mxu2 %v3000_v46  ;;  %3122 = vmatpush.xpose.msrb.mxu3 %v3001_v53  ;;  %3664 = vrcp.f32 %v2879_v1  ;;  %v2988_v53 = vmul.f32 %v3661_v35, %v6314_v13  ;;  %v2989_v18 = vmul.f32 %v3661_v35, %v6317_v63  ;;  %v1582_v11 = vpop.f32.mrf.mxu2 }
 0x7b0   : > { %3666 = vrcp.f32 %v2876_v0 }
 0x7b3   : > { %3085 = vmatpush.xpose.msrb.mxu2 %v2998_v20  ;;  %3123 = vmatpush.xpose.msrb.mxu3 %v2999_v48  ;;  %v1620_v48 = vpop.f32.mrf.mxu3 }
 0x7b4   : > { %v3663_v4 = vpop.eup %3662 }
 0x7b5   : > { %v2986_v20 = vmul.f32 %v3663_v4, %v6371_v8  ;;  %v2987_v44 = vmul.f32 %v3663_v4, %v6374_v57  ;;  %v3665_v5 = vpop.eup %3664 }
 0x7b6   : > { %v2870_v38 = vpop.xlane.xlu0 %2869  ;;  %v2984_v13 = vmul.f32 %v3665_v5, %v6353_v24  ;;  %v2985_v63 = vmul.f32 %v3665_v5, %v6356_v42  ;;  %v3667_v49 = vpop.eup %3666  ;;  %v7166_v5 = vld [vmem:[#allocation5_spill] sm:$0xff] }
 0x7b7   : > { %3086 = vmatpush.xpose.msrb.mxu2 %v2996_v40  ;;  %3124 = vmatpush.xpose.msrb.mxu3 %v2997_v39  ;;  %v2982_v8 = vmul.f32 %v3667_v49, %v6347_v54  ;;  %v2983_v57 = vmul.f32 %v3667_v49, %v6351_v32  ;;  %v3194_v49 = vld [vmem:[%s6601_s10 + $0x8] sm:$0xff] }
 0x7bb   : > { %3087 = vmatpush.xpose.msrb.mxu2 %v2994_v56  ;;  %3125 = vmatpush.xpose.msrb.mxu3 %v2995_v12 }
 0x7bd   : > { %v2873_v50 = vpop.xlane.xlu2 %2872  ;;  %v1519_v10 = vpop.permute.xlu1 %1518 }
 0x7be   : > { %v6507_v37 = vadd.f32 %v1579_v36, %v1519_v10  ;;  %v6509_v15 = vadd.f32 %v1617_v55, %v1519_v10  ;;  %3668 = vrcp.f32 %v2873_v50 }
 0x7bf   : > { %3088 = vmatpush.xpose.msrb.mxu2 %v2992_v27  ;;  %3126 = vmatpush.xpose.msrb.mxu3 %v2993_v31  ;;  %3670 = vrcp.f32 %v2870_v38  ;;  %v7161_v27 = vld [vmem:[#allocation9_spill] sm:$0xff] }
 0x7c0   : > { %3037 = vmatmul.f32.gmra.mxu2 %v6507_v37  ;;  %3075 = vmatmul.f32.gmra.mxu3 %v6509_v15 }
 0x7c3   : > { %3089 = vmatpush.xpose.msrb.mxu2 %v2990_v43  ;;  %3127 = vmatpush.xpose.msrb.mxu3 %v2991_v16  ;;  %v7163_v16 = vld [vmem:[#allocation13_spill] sm:$0xff] }
 0x7c4   : > { %v3669_v0 = vpop.eup %3668 }
 0x7c5   : > { %v2867_v46 = vpop.xlane.xlu2 %2866  ;;  %v2980_v24 = vmul.f32 %v3669_v0, %v6402_v19  ;;  %v2981_v42 = vmul.f32 %v3669_v0, %v6404_v41  ;;  %v3671_v39 = vpop.eup %3670 }
 0x7c6   : > { %3672 = vrcp.f32 %v2867_v46  ;;  %v2864_v14 = vpop.xlane.xlu0 %2863  ;;  %v2978_v28 = vmul.f32 %v3671_v39, %v6385_v17  ;;  %v2979_v3 = vmul.f32 %v3671_v39, %v6389_v2 }
 0x7c7   : > { %3090 = vmatpush.xpose.msrb.mxu2 %v2988_v53  ;;  %3128 = vmatpush.xpose.msrb.mxu3 %v2989_v18  ;;  %3674 = vrcp.f32 %v2864_v14  ;;  %v7164_v53 = vld [vmem:[#allocation15_spill] sm:$0xff] }
 0x7cb   : > { %3091 = vmatpush.xpose.msrb.mxu2 %v2986_v20  ;;  %3129 = vmatpush.xpose.msrb.mxu3 %v2987_v44  ;;  %v7165_v20 = vld [vmem:[#allocation7_spill] sm:$0xff] }
 0x7cc   : > { %v3673_v54 = vpop.eup %3672 }
 0x7cd   : > { %v1524_v23 = vpop.permute.xlu2 %1523  ;;  %v2976_v32 = vmul.f32 %v3673_v54, %v6416_v52  ;;  %v2977_v56 = vmul.f32 %v3673_v54, %v6418_v7  ;;  %v3675_v25 = vpop.eup %3674 }
 0x7ce   : > { %v1583_v30 = vadd.f32 %v1582_v11, %v1524_v23  ;;  %v1621_v40 = vadd.f32 %v1620_v48, %v1524_v23  ;;  %v2974_v19 = vmul.f32 %v3675_v25, %v6420_v34  ;;  %v2975_v41 = vmul.f32 %v3675_v25, %v6423_v6  ;;  %v7167_v48 = vld [vmem:[#allocation3_spill] sm:$0xff] }
 0x7cf   : > { %3092 = vmatpush.xpose.msrb.mxu2 %v2984_v13  ;;  %3130 = vmatpush.xpose.msrb.mxu3 %v2985_v63  ;;  %v3193_v23 = vld [vmem:[%s6601_s10] sm:$0xff] }
 0x7d0   : > { %3040 = vmatmul.f32.gmra.mxu2 %v1583_v30  ;;  %3078 = vmatmul.f32.gmra.mxu3 %v1621_v40 }
 0x7d3   : > { %3093 = vmatpush.xpose.msrb.mxu2 %v2982_v8  ;;  %3131 = vmatpush.xpose.msrb.mxu3 %v2983_v57 }
 0x7d7   : > { %3094 = vmatpush.xpose.msrb.mxu2 %v2980_v24  ;;  %3132 = vmatpush.xpose.msrb.mxu3 %v2981_v42 }
 0x7d9   : > { %v6543_v9 = vpop.permute.xlu0 %3162 }
 0x7db   : > { %3095 = vmatpush.xpose.msrb.mxu2 %v2978_v28  ;;  %3133 = vmatpush.xpose.msrb.mxu3 %v2979_v3 }
 0x7df   : > { %3096 = vmatpush.xpose.msrb.mxu2 %v2976_v32  ;;  %3134 = vmatpush.xpose.msrb.mxu3 %v2977_v56 }
 0x7e3   : > { %3097 = vmatpush.xpose.msrb.mxu2 %v2974_v19  ;;  %3135 = vmatpush.xpose.msrb.mxu3 %v2975_v41 }
 0x7e6   : > { %3098 = vmatmul.f32.vlgmr.msrb.gmra.mxu2 %v6451_v59  ;;  %3136 = vmatmul.f32.vlgmr.msrb.gmra.mxu3 %v6454_v62 }
 0x7ee   : > { %3101 = vmatmul.f32.gmra.mxu2 %v6462_v47  ;;  %3139 = vmatmul.f32.gmra.mxu3 %v6465_v22 }
 0x7ef   : > { %v3023_v17 = vpop.f32.mrf.mxu2  ;;  %v3061_v2 = vpop.f32.mrf.mxu3 }
 0x7f0   : > { %v3062_v1 = vadd.f32 %v3061_v2, %v3023_v17 }
 0x7f2   : > { %v3165_v4 = vmul.f32 %v6543_v9, %v3062_v1 }
 0x7f4   : > { %v3179_v38 = vadd.f32 %v3165_v4, %v7167_v48 }
 0x7f6   : > { %3104 = vmatmul.f32.gmra.mxu2 %v6470_v60  ;;  %3142 = vmatmul.f32.gmra.mxu3 %v6473_v33 }
 0x7f7   : > { %v3026_v52 = vpop.f32.mrf.mxu2  ;;  %v3064_v7 = vpop.f32.mrf.mxu3 }
 0x7f8   : > { %v3065_v31 = vadd.f32 %v3064_v7, %v3026_v52  ;;  %v7170_v7 = vld [vmem:[#allocation10_spill] sm:$0xff] }
 0x7fa   : > { %v3167_v46 = vmul.f32 %v6543_v9, %v3065_v31 }
 0x7fc   : > { %v3181_v11 = vadd.f32 %v3167_v46, %v7166_v5 }
 0x7fe   : > { %3107 = vmatmul.f32.gmra.mxu2 %v6478_v29  ;;  %3145 = vmatmul.f32.gmra.mxu3 %v6481_v45 }
 0x7ff   : > { %v3029_v34 = vpop.f32.mrf.mxu2  ;;  %v3067_v6 = vpop.f32.mrf.mxu3 }
 0x800   : > { %v3068_v10 = vadd.f32 %v3067_v6, %v3029_v34 }
 0x802   : > { %v3169_v43 = vmul.f32 %v6543_v9, %v3068_v10 }
 0x804   : > { %v3183_v44 = vadd.f32 %v3169_v43, %v7165_v20 }
 0x806   : > { %3110 = vmatmul.f32.gmra.mxu2 %v6486_v26  ;;  %3148 = vmatmul.f32.gmra.mxu3 %v6489_v51 }
 0x807   : > { %v3032_v59 = vpop.f32.mrf.mxu2  ;;  %v3070_v62 = vpop.f32.mrf.mxu3 }
 0x808   : > { %v3071_v36 = vadd.f32 %v3070_v62, %v3032_v59  ;;  %v7171_v62 = vld [vmem:[#allocation12_spill] sm:$0xff] }
 0x80a   : > { %v3171_v58 = vmul.f32 %v6543_v9, %v3071_v36  ;;  %v7174_v36 = vld [vmem:[#allocation8_spill] sm:$0xff] }
 0x80c   : > { %v3185_v18 = vadd.f32 %v3171_v58, %v7164_v53 }
 0x80e   : > { %3113 = vmatmul.f32.gmra.mxu2 %v6507_v37  ;;  %3151 = vmatmul.f32.gmra.mxu3 %v6509_v15  ;;  %v7162_v37 = vld [vmem:[#allocation11_spill] sm:$0xff] }
 0x80f   : > { %v3035_v47 = vpop.f32.mrf.mxu2  ;;  %v3073_v22 = vpop.f32.mrf.mxu3 }
 0x810   : > { %v3074_v51 = vadd.f32 %v3073_v22, %v3035_v47 }
 0x812   : > { %v3173_v21 = vmul.f32 %v6543_v9, %v3074_v51 }
 0x814   : > { %v3187_v35 = vadd.f32 %v3173_v21, %v7163_v16  ;;  %v7176_v21 = vld [vmem:[#allocation4_spill] sm:$0xff] }
 0x816   : > { %3116 = vmatmul.f32.gmra.mxu2 %v1583_v30  ;;  %3154 = vmatmul.f32.gmra.mxu3 %v1621_v40 }
 0x843   : > { %v3038_v60 = vpop.f32.mrf.mxu2  ;;  %v3076_v33 = vpop.f32.mrf.mxu3 }
 0x844   : > { %v3077_v29 = vadd.f32 %v3076_v33, %v3038_v60  ;;  %v7172_v33 = vld [vmem:[#allocation14_spill] sm:$0xff] }
 0x846   : > { %v3175_v55 = vmul.f32 %v6543_v9, %v3077_v29 }
 0x848   : > { %v3189_v15 = vadd.f32 %v3175_v55, %v7162_v37 }
 0x853   : > { %v3041_v45 = vpop.f32.mrf.mxu2  ;;  %v3079_v26 = vpop.f32.mrf.mxu3 }
 0x854   : > { %v3080_v12 = vadd.f32 %v3079_v26, %v3041_v45  ;;  %v7173_v26 = vld [vmem:[#allocation16_spill] sm:$0xff] }
 0x856   : > { %v3177_v50 = vmul.f32 %v6543_v9, %v3080_v12 }
 0x858   : > { %v3191_v61 = vadd.f32 %v3177_v50, %v7161_v27  ;;  %v7175_v50 = vld [vmem:[#allocation6_spill] sm:$0xff] }
 0x85a   : > { %3222 = vmatpush.msra.mxu2 %v3191_v61  ;;  %v3200_v61 = vpop.permute.xlu1 %3199 }
 0x85c   : > { %3223 = vmatpush.msra.mxu2 %v3189_v15  ;;  %v3205_v15 = vpop.permute.xlu0 %3204 }
 0x85e   : > { %3224 = vmatpush.msra.mxu2 %v3187_v35 }
 0x860   : > { %3225 = vmatpush.msra.mxu2 %v3185_v18 }
 0x862   : > { %3226 = vmatpush.msra.mxu2 %v3183_v44 }
 0x864   : > { %3227 = vmatpush.msra.mxu2 %v3181_v11 }
 0x866   : > { %3228 = vmatpush.msra.mxu2 %v3179_v38 }
 0x867   : > { %3435 = vmatmul.msk.f32.vlgmr.msra.gmra.mxu2 %vm7168_vm10, %v3193_v23 }
 0x869   : > { %v3099_v13 = vpop.f32.mrf.mxu2  ;;  %v3137_v63 = vpop.f32.mrf.mxu3 }
 0x86a   : > { %v3138_v22 = vadd.f32 %v3137_v63, %v3099_v13 }
 0x86c   : > { %v3166_v12 = vmul.f32 %v6543_v9, %v3138_v22 }
 0x86e   : > { %v3180_v27 = vadd.f32 %v3166_v12, %v7176_v21 }
 0x86f   : > { %3436 = vmatmul.msk.f32.gmra.mxu2 %vm7169_vm6, %v3194_v49 }
 0x871   : > { %v3102_v30 = vpop.f32.mrf.mxu2  ;;  %v3140_v40 = vpop.f32.mrf.mxu3 }
 0x872   : > { %v3141_v6 = vadd.f32 %v3140_v40, %v3102_v30 }
 0x874   : > { %v3168_v45 = vmul.f32 %v6543_v9, %v3141_v6 }
 0x876   : > { %v3182_v10 = vadd.f32 %v3168_v45, %v7175_v50 }
 0x879   : > { %v3105_v8 = vpop.f32.mrf.mxu2  ;;  %v3143_v57 = vpop.f32.mrf.mxu3 }
 0x87a   : > { %v3144_v2 = vadd.f32 %v3143_v57, %v3105_v8 }
 0x87c   : > { %v3170_v60 = vmul.f32 %v6543_v9, %v3144_v2 }
 0x87e   : > { %v3184_v55 = vadd.f32 %v3170_v60, %v7174_v36 }
 0x881   : > { %v3108_v0 = vpop.f32.mrf.mxu2  ;;  %v3146_v14 = vpop.f32.mrf.mxu3 }
 0x882   : > { %v3147_v19 = vadd.f32 %v3146_v14, %v3108_v0 }
 0x884   : > { %v3172_v59 = vmul.f32 %v6543_v9, %v3147_v19 }
 0x886   : > { %v3186_v51 = vadd.f32 %v3172_v59, %v7173_v26 }
 0x889   : > { %v3111_v24 = vpop.f32.mrf.mxu2  ;;  %v3149_v42 = vpop.f32.mrf.mxu3 }
 0x88a   : > { %v3150_v56 = vadd.f32 %v3149_v42, %v3111_v24 }
 0x88c   : > { %v3174_v52 = vmul.f32 %v6543_v9, %v3150_v56 }
 0x88e   : > { %v3188_v29 = vadd.f32 %v3174_v52, %v7172_v33 }
 0x891   : > { %v3114_v39 = vpop.f32.mrf.mxu2  ;;  %v3152_v28 = vpop.f32.mrf.mxu3 }
 0x892   : > { %v3153_v3 = vadd.f32 %v3152_v28, %v3114_v39 }
 0x894   : > { %v3176_v41 = vmul.f32 %v6543_v9, %v3153_v3 }
 0x896   : > { %v3190_v47 = vadd.f32 %v3176_v41, %v7171_v62 }
 0x899   : > { %v3117_v54 = vpop.f32.mrf.mxu2  ;;  %v3155_v32 = vpop.f32.mrf.mxu3 }
 0x89a   : > { %v3156_v25 = vadd.f32 %v3155_v32, %v3117_v54 }
 0x89c   : > { %v3178_v17 = vmul.f32 %v6543_v9, %v3156_v25 }
 0x89e   : > { %v3192_v34 = vadd.f32 %v3178_v17, %v7170_v7 }
 0x8a0   : > { %3245 = vmatpush.msra.mxu3 %v3192_v34 }
 0x8a2   : > { %3246 = vmatpush.msra.mxu3 %v3190_v47 }
 0x8a4   : > { %3247 = vmatpush.msra.mxu3 %v3188_v29 }
 0x8a6   : > { %3248 = vmatpush.msra.mxu3 %v3186_v51 }
 0x8a8   : > { %3249 = vmatpush.msra.mxu3 %v3184_v55 }
 0x8aa   : > { %3250 = vmatpush.msra.mxu3 %v3182_v10 }
 0x8ac   : > { %3251 = vmatpush.msra.mxu3 %v3180_v27 }
 0x8ad   : > { %3437 = vmatmul.msk.f32.vlgmr.msra.gmra.mxu3 %vm7177_vm14, %v3193_v23 }
 0x8b5   : > { %3438 = vmatmul.msk.f32.gmra.mxu3 %vm7178_vm12, %v3194_v49 }
 0x8ea   : > { %v3230_v31 = vpop.f32.mrf.mxu2 }
 0x8eb   : > { %v3231_v58 = vadd.f32 %v3230_v31, %v3200_v61 }
 0x8ed   : > { %v3259_v37 = vsub.f32 0.0, %v3231_v58 }
 0x8ef   : > { %v3263_v9 = vmul.f32 1.442695, %v3259_v37 }
 0x8f1   : > { %3676 = vpow2.f32 %v3263_v9 }
 0x8f2   : > { %v3233_v1 = vpop.f32.mrf.mxu2 }
 0x8f3   : > { %v3234_v43 = vadd.f32 %v3233_v1, %v3205_v15 }
 0x8f5   : > { %v3261_v16 = vsub.f32 0.0, %v3234_v43 }
 0x8f7   : > { %v3677_v35 = vpop.eup %3676  ;;  %v3267_v46 = vmul.f32 1.442695, %v3261_v16 }
 0x8f8   : > { %v3271_v53 = vadd.f32 1.0, %v3677_v35 }
 0x8f9   : > { %3678 = vpow2.f32 %v3267_v46 }
 0x8fa   : > { %3680 = vrcp.f32 %v3271_v53 }
 0x8ff   : > { %v3679_v18 = vpop.eup %3678 }
 0x900   : > { %v3681_v4 = vpop.eup %3680  ;;  %v3273_v20 = vadd.f32 1.0, %v3679_v18 }
 0x901   : > { %v3279_v44 = vmul.f32 %v3681_v4, %v3231_v58 }
 0x902   : > { %3682 = vrcp.f32 %v3273_v20 }
 0x903   : > { %3283 = vst [vmem:[%s523_s30] sm:$0xff] %v3279_v44 }
 0x908   : > { %v3683_v5 = vpop.eup %3682 }
 0x909   : > { %v3281_v11 = vmul.f32 %v3683_v5, %v3234_v43 }
 0x90b   : > { %3285 = vst [vmem:[%s523_s30 + $0x10] sm:$0xff] %v3281_v11 }
 0x930   : > { %v3253_v48 = vpop.f32.mrf.mxu3 }
 0x931   : > { %v3254_v38 = vadd.f32 %v3253_v48, %v3200_v61 }
 0x933   : > { %v3260_v23 = vsub.f32 0.0, %v3254_v38 }
 0x935   : > { %v3265_v13 = vmul.f32 1.442695, %v3260_v23 }
 0x937   : > { %3684 = vpow2.f32 %v3265_v13 }
 0x938   : > { %v3256_v63 = vpop.f32.mrf.mxu3 }
 0x939   : > { %v3257_v49 = vadd.f32 %v3256_v63, %v3205_v15 }
 0x93b   : > { %v3262_v30 = vsub.f32 0.0, %v3257_v49 }
 0x93d   : > { %v3685_v40 = vpop.eup %3684  ;;  %v3269_v8 = vmul.f32 1.442695, %v3262_v30 }
 0x93e   : > { %v3272_v57 = vadd.f32 1.0, %v3685_v40 }
 0x93f   : > { %3686 = vpow2.f32 %v3269_v8 }
 0x940   : > { %3688 = vrcp.f32 %v3272_v57 }
 0x945   : > { %v3687_v0 = vpop.eup %3686 }
 0x946   : > { %v3689_v14 = vpop.eup %3688  ;;  %v3274_v24 = vadd.f32 1.0, %v3687_v0 }
 0x947   : > { %v3280_v42 = vmul.f32 %v3689_v14, %v3254_v38 }
 0x948   : > { %3690 = vrcp.f32 %v3274_v24 }
 0x949   : > { %3284 = vst [vmem:[%s523_s30 + $0x8] sm:$0xff] %v3280_v42 }
 0x94e   : > { %v3691_v39 = vpop.eup %3690 }
 0x94f   : > { %v3282_v28 = vmul.f32 %v3691_v39, %v3257_v49 }
 0x951   : > { %3286 = vst [vmem:[%s523_s30 + $0x18] sm:$0xff] %v3282_v28 }
 0x952 PF: > { %s28_s23 = sadd.s32 1, %s3700_s23  }
 0x953   : > { %p25_p4 = scmp.ge.s32.totalorder %s28_s23, 4  }
 0x955   :  { %27 = sbr.rel (!%p25_p4) target bundleno = 3 (0x3), region = 114 }

</bundles_post_ra>
